<compile_context>
chip_gen: v7x
topology: tpu7x:2x2x1
jax: 0.10.0
libtpu: 0.0.40
codegen_flags: <defaults>
</compile_context>

<pallas_src>
import functools

import jax
import jax.numpy as jnp
from jax.experimental import pallas as pl
from jax.experimental.pallas import tpu as pltpu


# ----------------------------- helpers -------------------------------------
def _clean(x):
    """zeroNanInfs: zero out NaN / +-Inf."""
    finite = (x == x) & (jnp.abs(x) < jnp.float32(jnp.inf))
    return jnp.where(finite, x, jnp.zeros_like(x))


def _stencil_shifts(H, W):
    """Lane-roll amounts for the 9 taps of a 3x3 conv on a row-major flattened image."""
    npix = H * W
    shifts = []
    for k in range(9):
        dy, dx = k // 3 - 1, k % 3 - 1
        shifts.append(int((-(dy * W + dx)) % npix))
    return tuple(shifts)


def _stencil_masks(H, W):
    """(9, H*W) float32 validity masks (zero-padding boundary handling) per 3x3 tap."""
    npix = H * W
    q = jnp.arange(npix)
    yy, xx = q // W, q % W
    rows = []
    for k in range(9):
        dy, dx = k // 3 - 1, k % 3 - 1
        valid = ((yy + dy) >= 0) & ((yy + dy) < H) & ((xx + dx) >= 0) & ((xx + dx) < W)
        rows.append(valid.astype(jnp.float32))
    return jnp.stack(rows, axis=0)


# ----------------------------- fused FBSEM kernel ---------------------------
def _fbsem_kernel(gamma_ref, prompts_ref, a_ref, at_ref, isens_ref, masks_ref, *rest,
                  depth, niters, nsubs, shifts, cin_bts, approx_recip):
    # rest = (W_0, b_0, ..., W_{depth-1}, b_{depth-1}, out_ref, patches_scratch)
    w_refs = [rest[2 * l] for l in range(depth)]
    b_refs = [rest[2 * l + 1] for l in range(depth)]
    out_ref = rest[2 * depth]
    patches_ref = rest[2 * depth + 1]

    gamma = gamma_ref[0]                       # SMEM scalar
    bt, npix = out_ref.shape                   # (Bt, npix)

    # Zero the patches scratch once so layer-0's zero-padded weight columns never meet
    # uninitialized VMEM (0 * garbage could be NaN).
    patches_ref[...] = jnp.zeros_like(patches_ref)

    def conv3x3(h, l, relu):
        # h: (Cin*Bt, npix); rows interleaved as c*Bt + b, lanes = pixels.
        cb = cin_bts[l]
        for k in range(9):
            if shifts[k] == 0:                 # center tap: no shift, mask is all-ones
                tap = h
            else:
                tap = pltpu.roll(h, shifts[k], 1) * masks_ref[k:k + 1, :]
            patches_ref[k * cb:(k + 1) * cb, :] = tap        # static sublane slice store
        # Block-diagonal expanded, zero-padded folded conv+BN weights: one MXU matmul
        # covers the whole batch tile (K <= 256 -> single MXU pass).
        out = jnp.dot(w_refs[l][...], patches_ref[...],
                      preferred_element_type=jnp.float32) + b_refs[l][...]
        return jnp.maximum(out, 0.0) if relu else out

    def regularize(imgt):
        # ResUnit_v2: (conv+BN+ReLU) x (depth-1), conv+BN, + identity, ReLU, zeroNanInfs.
        h = imgt
        for l in range(depth - 1):
            h = conv3x3(h, l, True)
        out = conv3x3(h, depth - 1, False)
        return _clean(jnp.maximum(out + imgt, 0.0))

    def one_subset(img, imgt, s):
        S = isens_ref[s:s + 1, :]                              # (1, npix), pre-cleaned
        prompts = prompts_ref[...]                             # (Bt, nbins)
        # forward projection with resident A^T: standard (Bt,npix)x(npix,nbins) matmul
        proj = jnp.dot(img, at_ref[...], preferred_element_type=jnp.float32)
        # divide (EUP reciprocal; masked so proj==0 bins contribute 0, matching torch)
        ratio = jnp.where(proj > 0.0,
                          prompts * pl.reciprocal(proj, approx=approx_recip),
                          0.0)
        # backprojection: (Bt,nbins) x (nbins,npix)
        back = jnp.dot(ratio, a_ref[...], preferred_element_type=jnp.float32)
        em = _clean(img * back * S)                            # toTorch(img_em)
        reg = regularize(imgt)
        # fusion fixed-point update
        gs = gamma * S
        d = 1.0 - gs * reg
        denom = d + jnp.sqrt(d * d + 4.0 * gs * em)
        imgt_new = 2.0 * em * pl.reciprocal(denom, approx=approx_recip)
        return _clean(imgt_new), imgt_new                      # (img = toNumpy(imgt), imgt)

    img = jnp.ones((bt, npix), jnp.float32)                    # default img = ones
    imgt = img
    for _ in range(niters):                                    # fully unrolled (static, small)
        for s in range(nsubs):
            img, imgt = one_subset(img, imgt, s)
    out_ref[...] = _clean(imgt)                                # final zeroNanInfs


# ----------------------------- wrapper ---------------------------------------
def _expand_layer(Wt, bf, Bt, kmax, npix):
    """Block-diagonal batch expansion of folded conv+BN weights.

    Wt: (Cout, 9, Cin) folded weights, bf: (Cout,) folded bias.
    Returns W_exp (Cout*Bt, kmax) and lane-dense bias (Cout*Bt, npix) matching the
    batch-interleaved activation row layout (row = c*Bt + b).
    """
    cout, _, cin = Wt.shape
    eye = jnp.eye(Bt, dtype=jnp.float32)
    w_exp = jnp.einsum('okc,bd->obkcd', Wt, eye).reshape(cout * Bt, 9 * cin * Bt)
    w_exp = jnp.pad(w_exp, ((0, 0), (0, kmax - 9 * cin * Bt)))
    bias = jnp.broadcast_to(jnp.repeat(bf, Bt)[:, None], (cout * Bt, npix))
    return w_exp.astype(jnp.float32), bias.astype(jnp.float32)


def fbsem_forward(params, A, prompts, H, W, niters=3, nsubs=1,
                  batch_tile=None, approx_recip=True):
    B, nbins = prompts.shape
    npix = H * W
    Bt = B if batch_tile is None else int(batch_tile)
    assert B % Bt == 0, "batch_tile must divide batch"
    layers = params["layers"]
    depth = len(layers)
    cins = [int(Wt.shape[2]) for (Wt, _) in layers]
    cin_bts = tuple(c * Bt for c in cins)
    kmax = 9 * max(cin_bts)

    # Sensitivity-image stand-in for PET.iSensImageBatch2D: iSens = 1 / (A^T @ 1).
    # (nsubs, npix), batch-invariant, already finite (== zeroNanInfs of S).
    sens = jnp.sum(A, axis=0)
    iSens = jnp.where(sens > 0, 1.0 / sens, 0.0).astype(jnp.float32)
    iSens = jnp.broadcast_to(iSens[None, :], (nsubs, npix))

    masks = _stencil_masks(H, W)
    shifts = _stencil_shifts(H, W)
    A = A.astype(jnp.float32)
    A_T = jnp.transpose(A)                                     # resident A^T for forward proj
    prompts = prompts.astype(jnp.float32)

    in_specs = [
        pl.BlockSpec(memory_space=pltpu.MemorySpace.SMEM),     # gamma (scalar)
        pl.BlockSpec((Bt, nbins), lambda b: (b, 0)),           # prompts (batch tile)
        pl.BlockSpec((nbins, npix), lambda b: (0, 0)),         # A       (grid-invariant)
        pl.BlockSpec((npix, nbins), lambda b: (0, 0)),         # A^T     (grid-invariant)
        pl.BlockSpec((nsubs, npix), lambda b: (0, 0)),         # iSens   (grid-invariant)
        pl.BlockSpec((9, npix), lambda b: (0, 0)),             # stencil masks
    ]
    args = [params["gamma"].astype(jnp.float32), prompts, A, A_T, iSens, masks]
    for (Wt, bf) in layers:
        w_exp, bias = _expand_layer(Wt, bf, Bt, kmax, npix)
        in_specs.append(pl.BlockSpec(w_exp.shape, lambda b: (0, 0)))
        in_specs.append(pl.BlockSpec(bias.shape, lambda b: (0, 0)))
        args.extend([w_exp, bias])

    kern = functools.partial(_fbsem_kernel, depth=depth, niters=niters, nsubs=nsubs,
                             shifts=shifts, cin_bts=cin_bts, approx_recip=approx_recip)
    out = pl.pallas_call(
        kern,
        out_shape=jax.ShapeDtypeStruct((B, npix), jnp.float32),
        grid=(B // Bt,),
        in_specs=in_specs,
        out_specs=pl.BlockSpec((Bt, npix), lambda b: (b, 0)),  # lane-dense (npix lanes)
        scratch_shapes=[pltpu.VMEM((kmax, npix), jnp.float32)],  # stencil patches buffer
        compiler_params=pltpu.CompilerParams(dimension_semantics=("parallel",)),
    )(*args)
    # unCrop(imgt): return in the (B, 1, H, W) layout of the torch output.
    return out.reshape(B, 1, H, W)


# ----------------------------- parameters -----------------------------------
def _conv_bn_fold(key, cin, cout, eps=1e-5):
    """Random conv + eval-mode BN folded into (Cout, 9, Cin) weights + (Cout,) bias."""
    k1, k2, k3, k4, k5, k6 = jax.random.split(key, 6)
    w = 0.1 * jax.random.normal(k1, (3, 3, cin, cout), jnp.float32)
    b = 0.1 * jax.random.normal(k2, (cout,), jnp.float32)
    bn_w = 1.0 + 0.1 * jax.random.normal(k3, (cout,), jnp.float32)
    bn_b = 0.1 * jax.random.normal(k4, (cout,), jnp.float32)
    bn_mean = 0.1 * jax.random.normal(k5, (cout,), jnp.float32)
    bn_var = 1.0 + jnp.abs(jax.random.normal(k6, (cout,), jnp.float32))
    scale = bn_w / jnp.sqrt(bn_var + eps)
    wf = (w * scale).reshape(9, cin, cout)                     # tap-major, ci, co
    Wt = jnp.transpose(wf, (2, 0, 1))                          # (Cout, 9, Cin)
    bf = (b - bn_mean) * scale + bn_b
    return Wt.astype(jnp.float32), bf.astype(jnp.float32)


def init_params(key, depth, num_kernels, in_channels):
    cins = [in_channels] + [num_kernels] * (depth - 1)
    couts = [num_kernels] * (depth - 1) + [1]
    layers = []
    for ci, co in zip(cins, couts):
        key, k = jax.random.split(key)
        layers.append(_conv_bn_fold(k, ci, co))
    key, kg = jax.random.split(key)
    gamma = jax.random.uniform(kg, (1,), jnp.float32)          # nn.Parameter(torch.rand(1))
    return {"layers": layers, "gamma": gamma}


# ----------------------------- driver ----------------------------------------
if __name__ == "__main__":
    B, H, W = 2, 16, 16
    nbins = 128
    depth, num_kernels, in_channels = 3, 8, 1
    niters, nsubs = 3, 1
    npix = H * W

    key = jax.random.PRNGKey(0)
    kp, kA, kpr = jax.random.split(key, 3)
    params = init_params(kp, depth, num_kernels, in_channels)
    # Synthetic dense, non-negative system matrix (nbins x npix).
    A = jax.random.uniform(kA, (nbins, npix), jnp.float32, minval=0.0, maxval=0.1)
    prompts = jax.random.uniform(kpr, (B, nbins), jnp.float32, minval=0.0, maxval=50.0)

    out = fbsem_forward(params, A, prompts, H, W, niters=niters, nsubs=nsubs)
    out = jax.block_until_ready(out)
    assert out.shape == (B, 1, H, W)
    assert bool(jnp.all((out == out) & (jnp.abs(out) < jnp.inf)))
    print("KERNEL_OK")
</pallas_src>

<mosaic_0001>
module attributes {stable_mosaic.version = 11 : i64} {
  func.func @_fbsem_kernel(%arg0: i32, %arg1: memref<1xf32, #tpu.memory_space<smem>>, %arg2: memref<2x128xf32, #tpu.memory_space<vmem>>, %arg3: memref<128x256xf32, #tpu.memory_space<vmem>>, %arg4: memref<256x128xf32, #tpu.memory_space<vmem>>, %arg5: memref<1x256xf32, #tpu.memory_space<vmem>>, %arg6: memref<9x256xf32, #tpu.memory_space<vmem>>, %arg7: memref<16x144xf32, #tpu.memory_space<vmem>>, %arg8: memref<16x256xf32, #tpu.memory_space<vmem>>, %arg9: memref<16x144xf32, #tpu.memory_space<vmem>>, %arg10: memref<16x256xf32, #tpu.memory_space<vmem>>, %arg11: memref<2x144xf32, #tpu.memory_space<vmem>>, %arg12: memref<2x256xf32, #tpu.memory_space<vmem>>, %arg13: memref<2x256xf32, #tpu.memory_space<vmem>>, %arg14: memref<144x256xf32, #tpu.memory_space<vmem>>) attributes {dimension_semantics = [#tpu.dimension_semantics<parallel>], iteration_bounds = array<i64: 1>, scalar_prefetch = 0 : i64, scratch_operands = 1 : i64, tpu.core_type = #tpu.core_type<tc>, window_params = [{transform_indices = @transform_0, window_bounds = array<i64: 1>}, {transform_indices = @transform_1, window_bounds = array<i64: 2, 128>}, {pipeline_mode = #tpu.pipeline_mode<synchronous>, transform_indices = @transform_2, window_bounds = array<i64: 128, 256>}, {pipeline_mode = #tpu.pipeline_mode<synchronous>, transform_indices = @transform_3, window_bounds = array<i64: 256, 128>}, {pipeline_mode = #tpu.pipeline_mode<synchronous>, transform_indices = @transform_4, window_bounds = array<i64: 1, 256>}, {pipeline_mode = #tpu.pipeline_mode<synchronous>, transform_indices = @transform_5, window_bounds = array<i64: 9, 256>}, {pipeline_mode = #tpu.pipeline_mode<synchronous>, transform_indices = @transform_6, window_bounds = array<i64: 16, 144>}, {pipeline_mode = #tpu.pipeline_mode<synchronous>, transform_indices = @transform_7, window_bounds = array<i64: 16, 256>}, {pipeline_mode = #tpu.pipeline_mode<synchronous>, transform_indices = @transform_8, window_bounds = array<i64: 16, 144>}, {pipeline_mode = #tpu.pipeline_mode<synchronous>, transform_indices = @transform_9, window_bounds = array<i64: 16, 256>}, {pipeline_mode = #tpu.pipeline_mode<synchronous>, transform_indices = @transform_10, window_bounds = array<i64: 2, 144>}, {pipeline_mode = #tpu.pipeline_mode<synchronous>, transform_indices = @transform_11, window_bounds = array<i64: 2, 256>}, {transform_indices = @transform_12, window_bounds = array<i64: 2, 256>}]} {
    %c0 = arith.constant 0 : index
    %0 = memref.load %arg1[%c0] : memref<1xf32, #tpu.memory_space<smem>>
    %cst = arith.constant 0.000000e+00 : f32
    %1 = vector.broadcast %cst : f32 to vector<144x256xf32>
    %c0_0 = arith.constant 0 : index
    %c0_1 = arith.constant 0 : index
    %2 = vector.load %arg14[%c0_0, %c0_1] : memref<144x256xf32, #tpu.memory_space<vmem>>, vector<144x256xf32>
    tpu.vector_store %arg14[%c0_0, %c0_1], %1 {strides = array<i32>} : memref<144x256xf32, #tpu.memory_space<vmem>>, vector<144x256xf32>,
    %cst_2 = arith.constant 1.000000e+00 : f32
    %3 = vector.broadcast %cst_2 : f32 to vector<2x256xf32>
    %c0_3 = arith.constant 0 : index
    %c0_4 = arith.constant 0 : index
    %4 = vector.load %arg5[%c0_3, %c0_4] : memref<1x256xf32, #tpu.memory_space<vmem>>, vector<1x256xf32>
    %c0_5 = arith.constant 0 : index
    %c0_6 = arith.constant 0 : index
    %5 = vector.load %arg2[%c0_5, %c0_6] : memref<2x128xf32, #tpu.memory_space<vmem>>, vector<2x128xf32>
    %c0_7 = arith.constant 0 : index
    %c0_8 = arith.constant 0 : index
    %6 = vector.load %arg4[%c0_7, %c0_8] : memref<256x128xf32, #tpu.memory_space<vmem>>, vector<256x128xf32>
    %cst_9 = arith.constant dense<0.000000e+00> : vector<2x128xf32>
    %7 = tpu.matmul %3, %6, %cst_9 {dimension_numbers = #tpu.dot_dimension_numbers<[1], [0], [0], [1], [0, 0, 1, 1], [], []>} : vector<2x256xf32>, vector<256x128xf32>, vector<2x128xf32> -> vector<2x128xf32>
    %cst_10 = arith.constant 0.000000e+00 : f32
    %8 = vector.broadcast %cst_10 : f32 to vector<2x128xf32>
    %9 = arith.cmpf ogt, %7, %8 : vector<2x128xf32>
    %10 = tpu.reciprocal %7 {approx = true} : vector<2x128xf32> -> vector<2x128xf32>
    %11 = arith.mulf %5, %10 : vector<2x128xf32>
    %cst_11 = arith.constant 0.000000e+00 : f32
    %12 = vector.broadcast %cst_11 : f32 to vector<2x128xf32>
    %13 = arith.select %9, %11, %12 : vector<2x128xi1>, vector<2x128xf32>
    %c0_12 = arith.constant 0 : index
    %c0_13 = arith.constant 0 : index
    %14 = vector.load %arg3[%c0_12, %c0_13] : memref<128x256xf32, #tpu.memory_space<vmem>>, vector<128x256xf32>
    %cst_14 = arith.constant dense<0.000000e+00> : vector<2x256xf32>
    %15 = tpu.matmul %13, %14, %cst_14 {dimension_numbers = #tpu.dot_dimension_numbers<[1], [0], [0], [1], [0, 0, 1, 1], [], []>} : vector<2x128xf32>, vector<128x256xf32>, vector<2x256xf32> -> vector<2x256xf32>
    %16 = arith.mulf %3, %15 : vector<2x256xf32>
    %17 = vector.broadcast %4 : vector<1x256xf32> to vector<2x256xf32>
    %18 = arith.mulf %16, %17 : vector<2x256xf32>
    %19 = arith.cmpf oeq, %18, %18 : vector<2x256xf32>
    %20 = math.absf %18 : vector<2x256xf32>
    %cst_15 = arith.constant 0x7F800000 : f32
    %21 = vector.broadcast %cst_15 : f32 to vector<2x256xf32>
    %22 = arith.cmpf olt, %20, %21 : vector<2x256xf32>
    %23 = arith.andi %19, %22 : vector<2x256xi1>
    %cst_16 = arith.constant 0.000000e+00 : f32
    %24 = vector.broadcast %cst_16 : f32 to vector<2x256xf32>
    %25 = arith.select %23, %18, %24 : vector<2x256xi1>, vector<2x256xf32>
    %c17_i32 = arith.constant 17 : i32
    %26 = tpu.dynamic_rotate %3 by %c17_i32 dim 1 : vector<2x256xf32>, i32 -> vector<2x256xf32>
    %c0_17 = arith.constant 0 : index
    %c0_18 = arith.constant 0 : index
    %27 = vector.load %arg6[%c0_17, %c0_18] : memref<9x256xf32, #tpu.memory_space<vmem>>, vector<1x256xf32>
    %28 = vector.broadcast %27 : vector<1x256xf32> to vector<2x256xf32>
    %29 = arith.mulf %26, %28 : vector<2x256xf32>
    %c0_19 = arith.constant 0 : index
    %c0_20 = arith.constant 0 : index
    %30 = vector.load %arg14[%c0_19, %c0_20] : memref<144x256xf32, #tpu.memory_space<vmem>>, vector<2x256xf32>
    tpu.vector_store %arg14[%c0_19, %c0_20], %29 {strides = array<i32>} : memref<144x256xf32, #tpu.memory_space<vmem>>, vector<2x256xf32>,
    %c16_i32 = arith.constant 16 : i32
    %31 = tpu.dynamic_rotate %3 by %c16_i32 dim 1 : vector<2x256xf32>, i32 -> vector<2x256xf32>
    %c1 = arith.constant 1 : index
    %c0_21 = arith.constant 0 : index
    %32 = vector.load %arg6[%c1, %c0_21] : memref<9x256xf32, #tpu.memory_space<vmem>>, vector<1x256xf32>
    %33 = vector.broadcast %32 : vector<1x256xf32> to vector<2x256xf32>
    %34 = arith.mulf %31, %33 : vector<2x256xf32>
    %c2 = arith.constant 2 : index
    %c0_22 = arith.constant 0 : index
    %35 = vector.load %arg14[%c2, %c0_22] : memref<144x256xf32, #tpu.memory_space<vmem>>, vector<2x256xf32>
    tpu.vector_store %arg14[%c2, %c0_22], %34 {strides = array<i32>} : memref<144x256xf32, #tpu.memory_space<vmem>>, vector<2x256xf32>,
    %c15_i32 = arith.constant 15 : i32
    %36 = tpu.dynamic_rotate %3 by %c15_i32 dim 1 : vector<2x256xf32>, i32 -> vector<2x256xf32>
    %c2_23 = arith.constant 2 : index
    %c0_24 = arith.constant 0 : index
    %37 = vector.load %arg6[%c2_23, %c0_24] : memref<9x256xf32, #tpu.memory_space<vmem>>, vector<1x256xf32>
    %38 = vector.broadcast %37 : vector<1x256xf32> to vector<2x256xf32>
    %39 = arith.mulf %36, %38 : vector<2x256xf32>
    %c4 = arith.constant 4 : index
    %c0_25 = arith.constant 0 : index
    %40 = vector.load %arg14[%c4, %c0_25] : memref<144x256xf32, #tpu.memory_space<vmem>>, vector<2x256xf32>
    tpu.vector_store %arg14[%c4, %c0_25], %39 {strides = array<i32>} : memref<144x256xf32, #tpu.memory_space<vmem>>, vector<2x256xf32>,
    %c1_i32 = arith.constant 1 : i32
    %41 = tpu.dynamic_rotate %3 by %c1_i32 dim 1 : vector<2x256xf32>, i32 -> vector<2x256xf32>
    %c3 = arith.constant 3 : index
    %c0_26 = arith.constant 0 : index
    %42 = vector.load %arg6[%c3, %c0_26] : memref<9x256xf32, #tpu.memory_space<vmem>>, vector<1x256xf32>
    %43 = vector.broadcast %42 : vector<1x256xf32> to vector<2x256xf32>
    %44 = arith.mulf %41, %43 : vector<2x256xf32>
    %c6 = arith.constant 6 : index
    %c0_27 = arith.constant 0 : index
    %45 = vector.load %arg14[%c6, %c0_27] : memref<144x256xf32, #tpu.memory_space<vmem>>, vector<2x256xf32>
    tpu.vector_store %arg14[%c6, %c0_27], %44 {strides = array<i32>} : memref<144x256xf32, #tpu.memory_space<vmem>>, vector<2x256xf32>,
    %c8 = arith.constant 8 : index
    %c0_28 = arith.constant 0 : index
    %46 = vector.load %arg14[%c8, %c0_28] : memref<144x256xf32, #tpu.memory_space<vmem>>, vector<2x256xf32>
    tpu.vector_store %arg14[%c8, %c0_28], %3 {strides = array<i32>} : memref<144x256xf32, #tpu.memory_space<vmem>>, vector<2x256xf32>,
    %c255_i32 = arith.constant 255 : i32
    %47 = tpu.dynamic_rotate %3 by %c255_i32 dim 1 : vector<2x256xf32>, i32 -> vector<2x256xf32>
    %c5 = arith.constant 5 : index
    %c0_29 = arith.constant 0 : index
    %48 = vector.load %arg6[%c5, %c0_29] : memref<9x256xf32, #tpu.memory_space<vmem>>, vector<1x256xf32>
    %49 = vector.broadcast %48 : vector<1x256xf32> to vector<2x256xf32>
    %50 = arith.mulf %47, %49 : vector<2x256xf32>
    %c10 = arith.constant 10 : index
    %c0_30 = arith.constant 0 : index
    %51 = vector.load %arg14[%c10, %c0_30] : memref<144x256xf32, #tpu.memory_space<vmem>>, vector<2x256xf32>
    tpu.vector_store %arg14[%c10, %c0_30], %50 {strides = array<i32>} : memref<144x256xf32, #tpu.memory_space<vmem>>, vector<2x256xf32>,
    %c241_i32 = arith.constant 241 : i32
    %52 = tpu.dynamic_rotate %3 by %c241_i32 dim 1 : vector<2x256xf32>, i32 -> vector<2x256xf32>
    %c6_31 = arith.constant 6 : index
    %c0_32 = arith.constant 0 : index
    %53 = vector.load %arg6[%c6_31, %c0_32] : memref<9x256xf32, #tpu.memory_space<vmem>>, vector<1x256xf32>
    %54 = vector.broadcast %53 : vector<1x256xf32> to vector<2x256xf32>
    %55 = arith.mulf %52, %54 : vector<2x256xf32>
    %c12 = arith.constant 12 : index
    %c0_33 = arith.constant 0 : index
    %56 = vector.load %arg14[%c12, %c0_33] : memref<144x256xf32, #tpu.memory_space<vmem>>, vector<2x256xf32>
    tpu.vector_store %arg14[%c12, %c0_33], %55 {strides = array<i32>} : memref<144x256xf32, #tpu.memory_space<vmem>>, vector<2x256xf32>,
    %c240_i32 = arith.constant 240 : i32
    %57 = tpu.dynamic_rotate %3 by %c240_i32 dim 1 : vector<2x256xf32>, i32 -> vector<2x256xf32>
    %c7 = arith.constant 7 : index
    %c0_34 = arith.constant 0 : index
    %58 = vector.load %arg6[%c7, %c0_34] : memref<9x256xf32, #tpu.memory_space<vmem>>, vector<1x256xf32>
    %59 = vector.broadcast %58 : vector<1x256xf32> to vector<2x256xf32>
    %60 = arith.mulf %57, %59 : vector<2x256xf32>
    %c14 = arith.constant 14 : index
    %c0_35 = arith.constant 0 : index
    %61 = vector.load %arg14[%c14, %c0_35] : memref<144x256xf32, #tpu.memory_space<vmem>>, vector<2x256xf32>
    tpu.vector_store %arg14[%c14, %c0_35], %60 {strides = array<i32>} : memref<144x256xf32, #tpu.memory_space<vmem>>, vector<2x256xf32>,
    %c239_i32 = arith.constant 239 : i32
    %62 = tpu.dynamic_rotate %3 by %c239_i32 dim 1 : vector<2x256xf32>, i32 -> vector<2x256xf32>
    %c8_36 = arith.constant 8 : index
    %c0_37 = arith.constant 0 : index
    %63 = vector.load %arg6[%c8_36, %c0_37] : memref<9x256xf32, #tpu.memory_space<vmem>>, vector<1x256xf32>
    %64 = vector.broadcast %63 : vector<1x256xf32> to vector<2x256xf32>
    %65 = arith.mulf %62, %64 : vector<2x256xf32>
    %c16 = arith.constant 16 : index
    %c0_38 = arith.constant 0 : index
    %66 = vector.load %arg14[%c16, %c0_38] : memref<144x256xf32, #tpu.memory_space<vmem>>, vector<2x256xf32>
    tpu.vector_store %arg14[%c16, %c0_38], %65 {strides = array<i32>} : memref<144x256xf32, #tpu.memory_space<vmem>>, vector<2x256xf32>,
    %c0_39 = arith.constant 0 : index
    %c0_40 = arith.constant 0 : index
    %67 = vector.load %arg7[%c0_39, %c0_40] : memref<16x144xf32, #tpu.memory_space<vmem>>, vector<16x144xf32>
    %c0_41 = arith.constant 0 : index
    %c0_42 = arith.constant 0 : index
    %68 = vector.load %arg14[%c0_41, %c0_42] : memref<144x256xf32, #tpu.memory_space<vmem>>, vector<144x256xf32>
    %cst_43 = arith.constant dense<0.000000e+00> : vector<16x256xf32>
    %69 = tpu.matmul %67, %68, %cst_43 {dimension_numbers = #tpu.dot_dimension_numbers<[1], [0], [0], [1], [0, 0, 1, 1], [], []>} : vector<16x144xf32>, vector<144x256xf32>, vector<16x256xf32> -> vector<16x256xf32>
    %c0_44 = arith.constant 0 : index
    %c0_45 = arith.constant 0 : index
    %70 = vector.load %arg8[%c0_44, %c0_45] : memref<16x256xf32, #tpu.memory_space<vmem>>, vector<16x256xf32>
    %71 = arith.addf %69, %70 : vector<16x256xf32>
    %cst_46 = arith.constant 0.000000e+00 : f32
    %72 = vector.broadcast %cst_46 : f32 to vector<16x256xf32>
    %73 = arith.maximumf %71, %72 : vector<16x256xf32>
    %c17_i32_47 = arith.constant 17 : i32
    %74 = tpu.dynamic_rotate %73 by %c17_i32_47 dim 1 : vector<16x256xf32>, i32 -> vector<16x256xf32>
    %c0_48 = arith.constant 0 : index
    %c0_49 = arith.constant 0 : index
    %75 = vector.load %arg6[%c0_48, %c0_49] : memref<9x256xf32, #tpu.memory_space<vmem>>, vector<1x256xf32>
    %76 = vector.broadcast %75 : vector<1x256xf32> to vector<16x256xf32>
    %77 = arith.mulf %74, %76 : vector<16x256xf32>
    %c0_50 = arith.constant 0 : index
    %c0_51 = arith.constant 0 : index
    %78 = vector.load %arg14[%c0_50, %c0_51] : memref<144x256xf32, #tpu.memory_space<vmem>>, vector<16x256xf32>
    tpu.vector_store %arg14[%c0_50, %c0_51], %77 {strides = array<i32>} : memref<144x256xf32, #tpu.memory_space<vmem>>, vector<16x256xf32>,
    %c16_i32_52 = arith.constant 16 : i32
    %79 = tpu.dynamic_rotate %73 by %c16_i32_52 dim 1 : vector<16x256xf32>, i32 -> vector<16x256xf32>
    %c1_53 = arith.constant 1 : index
    %c0_54 = arith.constant 0 : index
    %80 = vector.load %arg6[%c1_53, %c0_54] : memref<9x256xf32, #tpu.memory_space<vmem>>, vector<1x256xf32>
    %81 = vector.broadcast %80 : vector<1x256xf32> to vector<16x256xf32>
    %82 = arith.mulf %79, %81 : vector<16x256xf32>
    %c16_55 = arith.constant 16 : index
    %c0_56 = arith.constant 0 : index
    %83 = vector.load %arg14[%c16_55, %c0_56] : memref<144x256xf32, #tpu.memory_space<vmem>>, vector<16x256xf32>
    tpu.vector_store %arg14[%c16_55, %c0_56], %82 {strides = array<i32>} : memref<144x256xf32, #tpu.memory_space<vmem>>, vector<16x256xf32>,
    %c15_i32_57 = arith.constant 15 : i32
    %84 = tpu.dynamic_rotate %73 by %c15_i32_57 dim 1 : vector<16x256xf32>, i32 -> vector<16x256xf32>
    %c2_58 = arith.constant 2 : index
    %c0_59 = arith.constant 0 : index
    %85 = vector.load %arg6[%c2_58, %c0_59] : memref<9x256xf32, #tpu.memory_space<vmem>>, vector<1x256xf32>
    %86 = vector.broadcast %85 : vector<1x256xf32> to vector<16x256xf32>
    %87 = arith.mulf %84, %86 : vector<16x256xf32>
    %c32 = arith.constant 32 : index
    %c0_60 = arith.constant 0 : index
    %88 = vector.load %arg14[%c32, %c0_60] : memref<144x256xf32, #tpu.memory_space<vmem>>, vector<16x256xf32>
    tpu.vector_store %arg14[%c32, %c0_60], %87 {strides = array<i32>} : memref<144x256xf32, #tpu.memory_space<vmem>>, vector<16x256xf32>,
    %c1_i32_61 = arith.constant 1 : i32
    %89 = tpu.dynamic_rotate %73 by %c1_i32_61 dim 1 : vector<16x256xf32>, i32 -> vector<16x256xf32>
    %c3_62 = arith.constant 3 : index
    %c0_63 = arith.constant 0 : index
    %90 = vector.load %arg6[%c3_62, %c0_63] : memref<9x256xf32, #tpu.memory_space<vmem>>, vector<1x256xf32>
    %91 = vector.broadcast %90 : vector<1x256xf32> to vector<16x256xf32>
    %92 = arith.mulf %89, %91 : vector<16x256xf32>
    %c48 = arith.constant 48 : index
    %c0_64 = arith.constant 0 : index
    %93 = vector.load %arg14[%c48, %c0_64] : memref<144x256xf32, #tpu.memory_space<vmem>>, vector<16x256xf32>
    tpu.vector_store %arg14[%c48, %c0_64], %92 {strides = array<i32>} : memref<144x256xf32, #tpu.memory_space<vmem>>, vector<16x256xf32>,
    %c64 = arith.constant 64 : index
    %c0_65 = arith.constant 0 : index
    %94 = vector.load %arg14[%c64, %c0_65] : memref<144x256xf32, #tpu.memory_space<vmem>>, vector<16x256xf32>
    tpu.vector_store %arg14[%c64, %c0_65], %73 {strides = array<i32>} : memref<144x256xf32, #tpu.memory_space<vmem>>, vector<16x256xf32>,
    %c255_i32_66 = arith.constant 255 : i32
    %95 = tpu.dynamic_rotate %73 by %c255_i32_66 dim 1 : vector<16x256xf32>, i32 -> vector<16x256xf32>
    %c5_67 = arith.constant 5 : index
    %c0_68 = arith.constant 0 : index
    %96 = vector.load %arg6[%c5_67, %c0_68] : memref<9x256xf32, #tpu.memory_space<vmem>>, vector<1x256xf32>
    %97 = vector.broadcast %96 : vector<1x256xf32> to vector<16x256xf32>
    %98 = arith.mulf %95, %97 : vector<16x256xf32>
    %c80 = arith.constant 80 : index
    %c0_69 = arith.constant 0 : index
    %99 = vector.load %arg14[%c80, %c0_69] : memref<144x256xf32, #tpu.memory_space<vmem>>, vector<16x256xf32>
    tpu.vector_store %arg14[%c80, %c0_69], %98 {strides = array<i32>} : memref<144x256xf32, #tpu.memory_space<vmem>>, vector<16x256xf32>,
    %c241_i32_70 = arith.constant 241 : i32
    %100 = tpu.dynamic_rotate %73 by %c241_i32_70 dim 1 : vector<16x256xf32>, i32 -> vector<16x256xf32>
    %c6_71 = arith.constant 6 : index
    %c0_72 = arith.constant 0 : index
    %101 = vector.load %arg6[%c6_71, %c0_72] : memref<9x256xf32, #tpu.memory_space<vmem>>, vector<1x256xf32>
    %102 = vector.broadcast %101 : vector<1x256xf32> to vector<16x256xf32>
    %103 = arith.mulf %100, %102 : vector<16x256xf32>
    %c96 = arith.constant 96 : index
    %c0_73 = arith.constant 0 : index
    %104 = vector.load %arg14[%c96, %c0_73] : memref<144x256xf32, #tpu.memory_space<vmem>>, vector<16x256xf32>
    tpu.vector_store %arg14[%c96, %c0_73], %103 {strides = array<i32>} : memref<144x256xf32, #tpu.memory_space<vmem>>, vector<16x256xf32>,
    %c240_i32_74 = arith.constant 240 : i32
    %105 = tpu.dynamic_rotate %73 by %c240_i32_74 dim 1 : vector<16x256xf32>, i32 -> vector<16x256xf32>
    %c7_75 = arith.constant 7 : index
    %c0_76 = arith.constant 0 : index
    %106 = vector.load %arg6[%c7_75, %c0_76] : memref<9x256xf32, #tpu.memory_space<vmem>>, vector<1x256xf32>
    %107 = vector.broadcast %106 : vector<1x256xf32> to vector<16x256xf32>
    %108 = arith.mulf %105, %107 : vector<16x256xf32>
    %c112 = arith.constant 112 : index
    %c0_77 = arith.constant 0 : index
    %109 = vector.load %arg14[%c112, %c0_77] : memref<144x256xf32, #tpu.memory_space<vmem>>, vector<16x256xf32>
    tpu.vector_store %arg14[%c112, %c0_77], %108 {strides = array<i32>} : memref<144x256xf32, #tpu.memory_space<vmem>>, vector<16x256xf32>,
    %c239_i32_78 = arith.constant 239 : i32
    %110 = tpu.dynamic_rotate %73 by %c239_i32_78 dim 1 : vector<16x256xf32>, i32 -> vector<16x256xf32>
    %c8_79 = arith.constant 8 : index
    %c0_80 = arith.constant 0 : index
    %111 = vector.load %arg6[%c8_79, %c0_80] : memref<9x256xf32, #tpu.memory_space<vmem>>, vector<1x256xf32>
    %112 = vector.broadcast %111 : vector<1x256xf32> to vector<16x256xf32>
    %113 = arith.mulf %110, %112 : vector<16x256xf32>
    %c128 = arith.constant 128 : index
    %c0_81 = arith.constant 0 : index
    %114 = vector.load %arg14[%c128, %c0_81] : memref<144x256xf32, #tpu.memory_space<vmem>>, vector<16x256xf32>
    tpu.vector_store %arg14[%c128, %c0_81], %113 {strides = array<i32>} : memref<144x256xf32, #tpu.memory_space<vmem>>, vector<16x256xf32>,
    %c0_82 = arith.constant 0 : index
    %c0_83 = arith.constant 0 : index
    %115 = vector.load %arg9[%c0_82, %c0_83] : memref<16x144xf32, #tpu.memory_space<vmem>>, vector<16x144xf32>
    %c0_84 = arith.constant 0 : index
    %c0_85 = arith.constant 0 : index
    %116 = vector.load %arg14[%c0_84, %c0_85] : memref<144x256xf32, #tpu.memory_space<vmem>>, vector<144x256xf32>
    %cst_86 = arith.constant dense<0.000000e+00> : vector<16x256xf32>
    %117 = tpu.matmul %115, %116, %cst_86 {dimension_numbers = #tpu.dot_dimension_numbers<[1], [0], [0], [1], [0, 0, 1, 1], [], []>} : vector<16x144xf32>, vector<144x256xf32>, vector<16x256xf32> -> vector<16x256xf32>
    %c0_87 = arith.constant 0 : index
    %c0_88 = arith.constant 0 : index
    %118 = vector.load %arg10[%c0_87, %c0_88] : memref<16x256xf32, #tpu.memory_space<vmem>>, vector<16x256xf32>
    %119 = arith.addf %117, %118 : vector<16x256xf32>
    %cst_89 = arith.constant 0.000000e+00 : f32
    %120 = vector.broadcast %cst_89 : f32 to vector<16x256xf32>
    %121 = arith.maximumf %119, %120 : vector<16x256xf32>
    %c17_i32_90 = arith.constant 17 : i32
    %122 = tpu.dynamic_rotate %121 by %c17_i32_90 dim 1 : vector<16x256xf32>, i32 -> vector<16x256xf32>
    %c0_91 = arith.constant 0 : index
    %c0_92 = arith.constant 0 : index
    %123 = vector.load %arg6[%c0_91, %c0_92] : memref<9x256xf32, #tpu.memory_space<vmem>>, vector<1x256xf32>
    %124 = vector.broadcast %123 : vector<1x256xf32> to vector<16x256xf32>
    %125 = arith.mulf %122, %124 : vector<16x256xf32>
    %c0_93 = arith.constant 0 : index
    %c0_94 = arith.constant 0 : index
    %126 = vector.load %arg14[%c0_93, %c0_94] : memref<144x256xf32, #tpu.memory_space<vmem>>, vector<16x256xf32>
    tpu.vector_store %arg14[%c0_93, %c0_94], %125 {strides = array<i32>} : memref<144x256xf32, #tpu.memory_space<vmem>>, vector<16x256xf32>,
    %c16_i32_95 = arith.constant 16 : i32
    %127 = tpu.dynamic_rotate %121 by %c16_i32_95 dim 1 : vector<16x256xf32>, i32 -> vector<16x256xf32>
    %c1_96 = arith.constant 1 : index
    %c0_97 = arith.constant 0 : index
    %128 = vector.load %arg6[%c1_96, %c0_97] : memref<9x256xf32, #tpu.memory_space<vmem>>, vector<1x256xf32>
    %129 = vector.broadcast %128 : vector<1x256xf32> to vector<16x256xf32>
    %130 = arith.mulf %127, %129 : vector<16x256xf32>
    %c16_98 = arith.constant 16 : index
    %c0_99 = arith.constant 0 : index
    %131 = vector.load %arg14[%c16_98, %c0_99] : memref<144x256xf32, #tpu.memory_space<vmem>>, vector<16x256xf32>
    tpu.vector_store %arg14[%c16_98, %c0_99], %130 {strides = array<i32>} : memref<144x256xf32, #tpu.memory_space<vmem>>, vector<16x256xf32>,
    %c15_i32_100 = arith.constant 15 : i32
    %132 = tpu.dynamic_rotate %121 by %c15_i32_100 dim 1 : vector<16x256xf32>, i32 -> vector<16x256xf32>
    %c2_101 = arith.constant 2 : index
    %c0_102 = arith.constant 0 : index
    %133 = vector.load %arg6[%c2_101, %c0_102] : memref<9x256xf32, #tpu.memory_space<vmem>>, vector<1x256xf32>
    %134 = vector.broadcast %133 : vector<1x256xf32> to vector<16x256xf32>
    %135 = arith.mulf %132, %134 : vector<16x256xf32>
    %c32_103 = arith.constant 32 : index
    %c0_104 = arith.constant 0 : index
    %136 = vector.load %arg14[%c32_103, %c0_104] : memref<144x256xf32, #tpu.memory_space<vmem>>, vector<16x256xf32>
    tpu.vector_store %arg14[%c32_103, %c0_104], %135 {strides = array<i32>} : memref<144x256xf32, #tpu.memory_space<vmem>>, vector<16x256xf32>,
    %c1_i32_105 = arith.constant 1 : i32
    %137 = tpu.dynamic_rotate %121 by %c1_i32_105 dim 1 : vector<16x256xf32>, i32 -> vector<16x256xf32>
    %c3_106 = arith.constant 3 : index
    %c0_107 = arith.constant 0 : index
    %138 = vector.load %arg6[%c3_106, %c0_107] : memref<9x256xf32, #tpu.memory_space<vmem>>, vector<1x256xf32>
    %139 = vector.broadcast %138 : vector<1x256xf32> to vector<16x256xf32>
    %140 = arith.mulf %137, %139 : vector<16x256xf32>
    %c48_108 = arith.constant 48 : index
    %c0_109 = arith.constant 0 : index
    %141 = vector.load %arg14[%c48_108, %c0_109] : memref<144x256xf32, #tpu.memory_space<vmem>>, vector<16x256xf32>
    tpu.vector_store %arg14[%c48_108, %c0_109], %140 {strides = array<i32>} : memref<144x256xf32, #tpu.memory_space<vmem>>, vector<16x256xf32>,
    %c64_110 = arith.constant 64 : index
    %c0_111 = arith.constant 0 : index
    %142 = vector.load %arg14[%c64_110, %c0_111] : memref<144x256xf32, #tpu.memory_space<vmem>>, vector<16x256xf32>
    tpu.vector_store %arg14[%c64_110, %c0_111], %121 {strides = array<i32>} : memref<144x256xf32, #tpu.memory_space<vmem>>, vector<16x256xf32>,
    %c255_i32_112 = arith.constant 255 : i32
    %143 = tpu.dynamic_rotate %121 by %c255_i32_112 dim 1 : vector<16x256xf32>, i32 -> vector<16x256xf32>
    %c5_113 = arith.constant 5 : index
    %c0_114 = arith.constant 0 : index
    %144 = vector.load %arg6[%c5_113, %c0_114] : memref<9x256xf32, #tpu.memory_space<vmem>>, vector<1x256xf32>
    %145 = vector.broadcast %144 : vector<1x256xf32> to vector<16x256xf32>
    %146 = arith.mulf %143, %145 : vector<16x256xf32>
    %c80_115 = arith.constant 80 : index
    %c0_116 = arith.constant 0 : index
    %147 = vector.load %arg14[%c80_115, %c0_116] : memref<144x256xf32, #tpu.memory_space<vmem>>, vector<16x256xf32>
    tpu.vector_store %arg14[%c80_115, %c0_116], %146 {strides = array<i32>} : memref<144x256xf32, #tpu.memory_space<vmem>>, vector<16x256xf32>,
    %c241_i32_117 = arith.constant 241 : i32
    %148 = tpu.dynamic_rotate %121 by %c241_i32_117 dim 1 : vector<16x256xf32>, i32 -> vector<16x256xf32>
    %c6_118 = arith.constant 6 : index
    %c0_119 = arith.constant 0 : index
    %149 = vector.load %arg6[%c6_118, %c0_119] : memref<9x256xf32, #tpu.memory_space<vmem>>, vector<1x256xf32>
    %150 = vector.broadcast %149 : vector<1x256xf32> to vector<16x256xf32>
    %151 = arith.mulf %148, %150 : vector<16x256xf32>
    %c96_120 = arith.constant 96 : index
    %c0_121 = arith.constant 0 : index
    %152 = vector.load %arg14[%c96_120, %c0_121] : memref<144x256xf32, #tpu.memory_space<vmem>>, vector<16x256xf32>
    tpu.vector_store %arg14[%c96_120, %c0_121], %151 {strides = array<i32>} : memref<144x256xf32, #tpu.memory_space<vmem>>, vector<16x256xf32>,
    %c240_i32_122 = arith.constant 240 : i32
    %153 = tpu.dynamic_rotate %121 by %c240_i32_122 dim 1 : vector<16x256xf32>, i32 -> vector<16x256xf32>
    %c7_123 = arith.constant 7 : index
    %c0_124 = arith.constant 0 : index
    %154 = vector.load %arg6[%c7_123, %c0_124] : memref<9x256xf32, #tpu.memory_space<vmem>>, vector<1x256xf32>
    %155 = vector.broadcast %154 : vector<1x256xf32> to vector<16x256xf32>
    %156 = arith.mulf %153, %155 : vector<16x256xf32>
    %c112_125 = arith.constant 112 : index
    %c0_126 = arith.constant 0 : index
    %157 = vector.load %arg14[%c112_125, %c0_126] : memref<144x256xf32, #tpu.memory_space<vmem>>, vector<16x256xf32>
    tpu.vector_store %arg14[%c112_125, %c0_126], %156 {strides = array<i32>} : memref<144x256xf32, #tpu.memory_space<vmem>>, vector<16x256xf32>,
    %c239_i32_127 = arith.constant 239 : i32
    %158 = tpu.dynamic_rotate %121 by %c239_i32_127 dim 1 : vector<16x256xf32>, i32 -> vector<16x256xf32>
    %c8_128 = arith.constant 8 : index
    %c0_129 = arith.constant 0 : index
    %159 = vector.load %arg6[%c8_128, %c0_129] : memref<9x256xf32, #tpu.memory_space<vmem>>, vector<1x256xf32>
    %160 = vector.broadcast %159 : vector<1x256xf32> to vector<16x256xf32>
    %161 = arith.mulf %158, %160 : vector<16x256xf32>
    %c128_130 = arith.constant 128 : index
    %c0_131 = arith.constant 0 : index
    %162 = vector.load %arg14[%c128_130, %c0_131] : memref<144x256xf32, #tpu.memory_space<vmem>>, vector<16x256xf32>
    tpu.vector_store %arg14[%c128_130, %c0_131], %161 {strides = array<i32>} : memref<144x256xf32, #tpu.memory_space<vmem>>, vector<16x256xf32>,
    %c0_132 = arith.constant 0 : index
    %c0_133 = arith.constant 0 : index
    %163 = vector.load %arg11[%c0_132, %c0_133] : memref<2x144xf32, #tpu.memory_space<vmem>>, vector<2x144xf32>
    %c0_134 = arith.constant 0 : index
    %c0_135 = arith.constant 0 : index
    %164 = vector.load %arg14[%c0_134, %c0_135] : memref<144x256xf32, #tpu.memory_space<vmem>>, vector<144x256xf32>
    %cst_136 = arith.constant dense<0.000000e+00> : vector<2x256xf32>
    %165 = tpu.matmul %163, %164, %cst_136 {dimension_numbers = #tpu.dot_dimension_numbers<[1], [0], [0], [1], [0, 0, 1, 1], [], []>} : vector<2x144xf32>, vector<144x256xf32>, vector<2x256xf32> -> vector<2x256xf32>
    %c0_137 = arith.constant 0 : index
    %c0_138 = arith.constant 0 : index
    %166 = vector.load %arg12[%c0_137, %c0_138] : memref<2x256xf32, #tpu.memory_space<vmem>>, vector<2x256xf32>
    %167 = arith.addf %165, %166 : vector<2x256xf32>
    %168 = arith.addf %167, %3 : vector<2x256xf32>
    %cst_139 = arith.constant 0.000000e+00 : f32
    %169 = vector.broadcast %cst_139 : f32 to vector<2x256xf32>
    %170 = arith.maximumf %168, %169 : vector<2x256xf32>
    %171 = arith.cmpf oeq, %170, %170 : vector<2x256xf32>
    %172 = math.absf %170 : vector<2x256xf32>
    %cst_140 = arith.constant 0x7F800000 : f32
    %173 = vector.broadcast %cst_140 : f32 to vector<2x256xf32>
    %174 = arith.cmpf olt, %172, %173 : vector<2x256xf32>
    %175 = arith.andi %171, %174 : vector<2x256xi1>
    %cst_141 = arith.constant 0.000000e+00 : f32
    %176 = vector.broadcast %cst_141 : f32 to vector<2x256xf32>
    %177 = arith.select %175, %170, %176 : vector<2x256xi1>, vector<2x256xf32>
    %178 = vector.broadcast %0 : f32 to vector<1x256xf32>
    %179 = arith.mulf %178, %4 : vector<1x256xf32>
    %180 = vector.broadcast %179 : vector<1x256xf32> to vector<2x256xf32>
    %181 = arith.mulf %180, %177 : vector<2x256xf32>
    %cst_142 = arith.constant 1.000000e+00 : f32
    %182 = vector.broadcast %cst_142 : f32 to vector<2x256xf32>
    %183 = arith.subf %182, %181 : vector<2x256xf32>
    %184 = arith.mulf %183, %183 : vector<2x256xf32>
    %cst_143 = arith.constant 4.000000e+00 : f32
    %185 = vector.broadcast %cst_143 : f32 to vector<1x256xf32>
    %186 = arith.mulf %185, %179 : vector<1x256xf32>
    %187 = vector.broadcast %186 : vector<1x256xf32> to vector<2x256xf32>
    %188 = arith.mulf %187, %25 : vector<2x256xf32>
    %189 = arith.addf %184, %188 : vector<2x256xf32>
    %190 = math.sqrt %189 : vector<2x256xf32>
    %191 = arith.addf %183, %190 : vector<2x256xf32>
    %cst_144 = arith.constant 2.000000e+00 : f32
    %192 = vector.broadcast %cst_144 : f32 to vector<2x256xf32>
    %193 = arith.mulf %192, %25 : vector<2x256xf32>
    %194 = tpu.reciprocal %191 {approx = true} : vector<2x256xf32> -> vector<2x256xf32>
    %195 = arith.mulf %193, %194 : vector<2x256xf32>
    %196 = arith.cmpf oeq, %195, %195 : vector<2x256xf32>
    %197 = math.absf %195 : vector<2x256xf32>
    %cst_145 = arith.constant 0x7F800000 : f32
    %198 = vector.broadcast %cst_145 : f32 to vector<2x256xf32>
    %199 = arith.cmpf olt, %197, %198 : vector<2x256xf32>
    %200 = arith.andi %196, %199 : vector<2x256xi1>
    %cst_146 = arith.constant 0.000000e+00 : f32
    %201 = vector.broadcast %cst_146 : f32 to vector<2x256xf32>
    %202 = arith.select %200, %195, %201 : vector<2x256xi1>, vector<2x256xf32>
    %c0_147 = arith.constant 0 : index
    %c0_148 = arith.constant 0 : index
    %203 = vector.load %arg5[%c0_147, %c0_148] : memref<1x256xf32, #tpu.memory_space<vmem>>, vector<1x256xf32>
    %c0_149 = arith.constant 0 : index
    %c0_150 = arith.constant 0 : index
    %204 = vector.load %arg2[%c0_149, %c0_150] : memref<2x128xf32, #tpu.memory_space<vmem>>, vector<2x128xf32>
    %c0_151 = arith.constant 0 : index
    %c0_152 = arith.constant 0 : index
    %205 = vector.load %arg4[%c0_151, %c0_152] : memref<256x128xf32, #tpu.memory_space<vmem>>, vector<256x128xf32>
    %cst_153 = arith.constant dense<0.000000e+00> : vector<2x128xf32>
    %206 = tpu.matmul %202, %205, %cst_153 {dimension_numbers = #tpu.dot_dimension_numbers<[1], [0], [0], [1], [0, 0, 1, 1], [], []>} : vector<2x256xf32>, vector<256x128xf32>, vector<2x128xf32> -> vector<2x128xf32>
    %cst_154 = arith.constant 0.000000e+00 : f32
    %207 = vector.broadcast %cst_154 : f32 to vector<2x128xf32>
    %208 = arith.cmpf ogt, %206, %207 : vector<2x128xf32>
    %209 = tpu.reciprocal %206 {approx = true} : vector<2x128xf32> -> vector<2x128xf32>
    %210 = arith.mulf %204, %209 : vector<2x128xf32>
    %cst_155 = arith.constant 0.000000e+00 : f32
    %211 = vector.broadcast %cst_155 : f32 to vector<2x128xf32>
    %212 = arith.select %208, %210, %211 : vector<2x128xi1>, vector<2x128xf32>
    %c0_156 = arith.constant 0 : index
    %c0_157 = arith.constant 0 : index
    %213 = vector.load %arg3[%c0_156, %c0_157] : memref<128x256xf32, #tpu.memory_space<vmem>>, vector<128x256xf32>
    %cst_158 = arith.constant dense<0.000000e+00> : vector<2x256xf32>
    %214 = tpu.matmul %212, %213, %cst_158 {dimension_numbers = #tpu.dot_dimension_numbers<[1], [0], [0], [1], [0, 0, 1, 1], [], []>} : vector<2x128xf32>, vector<128x256xf32>, vector<2x256xf32> -> vector<2x256xf32>
    %215 = arith.mulf %202, %214 : vector<2x256xf32>
    %216 = vector.broadcast %203 : vector<1x256xf32> to vector<2x256xf32>
    %217 = arith.mulf %215, %216 : vector<2x256xf32>
    %218 = arith.cmpf oeq, %217, %217 : vector<2x256xf32>
    %219 = math.absf %217 : vector<2x256xf32>
    %cst_159 = arith.constant 0x7F800000 : f32
    %220 = vector.broadcast %cst_159 : f32 to vector<2x256xf32>
    %221 = arith.cmpf olt, %219, %220 : vector<2x256xf32>
    %222 = arith.andi %218, %221 : vector<2x256xi1>
    %cst_160 = arith.constant 0.000000e+00 : f32
    %223 = vector.broadcast %cst_160 : f32 to vector<2x256xf32>
    %224 = arith.select %222, %217, %223 : vector<2x256xi1>, vector<2x256xf32>
    %c17_i32_161 = arith.constant 17 : i32
    %225 = tpu.dynamic_rotate %195 by %c17_i32_161 dim 1 : vector<2x256xf32>, i32 -> vector<2x256xf32>
    %c0_162 = arith.constant 0 : index
    %c0_163 = arith.constant 0 : index
    %226 = vector.load %arg6[%c0_162, %c0_163] : memref<9x256xf32, #tpu.memory_space<vmem>>, vector<1x256xf32>
    %227 = vector.broadcast %226 : vector<1x256xf32> to vector<2x256xf32>
    %228 = arith.mulf %225, %227 : vector<2x256xf32>
    %c0_164 = arith.constant 0 : index
    %c0_165 = arith.constant 0 : index
    %229 = vector.load %arg14[%c0_164, %c0_165] : memref<144x256xf32, #tpu.memory_space<vmem>>, vector<2x256xf32>
    tpu.vector_store %arg14[%c0_164, %c0_165], %228 {strides = array<i32>} : memref<144x256xf32, #tpu.memory_space<vmem>>, vector<2x256xf32>,
    %c16_i32_166 = arith.constant 16 : i32
    %230 = tpu.dynamic_rotate %195 by %c16_i32_166 dim 1 : vector<2x256xf32>, i32 -> vector<2x256xf32>
    %c1_167 = arith.constant 1 : index
    %c0_168 = arith.constant 0 : index
    %231 = vector.load %arg6[%c1_167, %c0_168] : memref<9x256xf32, #tpu.memory_space<vmem>>, vector<1x256xf32>
    %232 = vector.broadcast %231 : vector<1x256xf32> to vector<2x256xf32>
    %233 = arith.mulf %230, %232 : vector<2x256xf32>
    %c2_169 = arith.constant 2 : index
    %c0_170 = arith.constant 0 : index
    %234 = vector.load %arg14[%c2_169, %c0_170] : memref<144x256xf32, #tpu.memory_space<vmem>>, vector<2x256xf32>
    tpu.vector_store %arg14[%c2_169, %c0_170], %233 {strides = array<i32>} : memref<144x256xf32, #tpu.memory_space<vmem>>, vector<2x256xf32>,
    %c15_i32_171 = arith.constant 15 : i32
    %235 = tpu.dynamic_rotate %195 by %c15_i32_171 dim 1 : vector<2x256xf32>, i32 -> vector<2x256xf32>
    %c2_172 = arith.constant 2 : index
    %c0_173 = arith.constant 0 : index
    %236 = vector.load %arg6[%c2_172, %c0_173] : memref<9x256xf32, #tpu.memory_space<vmem>>, vector<1x256xf32>
    %237 = vector.broadcast %236 : vector<1x256xf32> to vector<2x256xf32>
    %238 = arith.mulf %235, %237 : vector<2x256xf32>
    %c4_174 = arith.constant 4 : index
    %c0_175 = arith.constant 0 : index
    %239 = vector.load %arg14[%c4_174, %c0_175] : memref<144x256xf32, #tpu.memory_space<vmem>>, vector<2x256xf32>
    tpu.vector_store %arg14[%c4_174, %c0_175], %238 {strides = array<i32>} : memref<144x256xf32, #tpu.memory_space<vmem>>, vector<2x256xf32>,
    %c1_i32_176 = arith.constant 1 : i32
    %240 = tpu.dynamic_rotate %195 by %c1_i32_176 dim 1 : vector<2x256xf32>, i32 -> vector<2x256xf32>
    %c3_177 = arith.constant 3 : index
    %c0_178 = arith.constant 0 : index
    %241 = vector.load %arg6[%c3_177, %c0_178] : memref<9x256xf32, #tpu.memory_space<vmem>>, vector<1x256xf32>
    %242 = vector.broadcast %241 : vector<1x256xf32> to vector<2x256xf32>
    %243 = arith.mulf %240, %242 : vector<2x256xf32>
    %c6_179 = arith.constant 6 : index
    %c0_180 = arith.constant 0 : index
    %244 = vector.load %arg14[%c6_179, %c0_180] : memref<144x256xf32, #tpu.memory_space<vmem>>, vector<2x256xf32>
    tpu.vector_store %arg14[%c6_179, %c0_180], %243 {strides = array<i32>} : memref<144x256xf32, #tpu.memory_space<vmem>>, vector<2x256xf32>,
    %c8_181 = arith.constant 8 : index
    %c0_182 = arith.constant 0 : index
    %245 = vector.load %arg14[%c8_181, %c0_182] : memref<144x256xf32, #tpu.memory_space<vmem>>, vector<2x256xf32>
    tpu.vector_store %arg14[%c8_181, %c0_182], %195 {strides = array<i32>} : memref<144x256xf32, #tpu.memory_space<vmem>>, vector<2x256xf32>,
    %c255_i32_183 = arith.constant 255 : i32
    %246 = tpu.dynamic_rotate %195 by %c255_i32_183 dim 1 : vector<2x256xf32>, i32 -> vector<2x256xf32>
    %c5_184 = arith.constant 5 : index
    %c0_185 = arith.constant 0 : index
    %247 = vector.load %arg6[%c5_184, %c0_185] : memref<9x256xf32, #tpu.memory_space<vmem>>, vector<1x256xf32>
    %248 = vector.broadcast %247 : vector<1x256xf32> to vector<2x256xf32>
    %249 = arith.mulf %246, %248 : vector<2x256xf32>
    %c10_186 = arith.constant 10 : index
    %c0_187 = arith.constant 0 : index
    %250 = vector.load %arg14[%c10_186, %c0_187] : memref<144x256xf32, #tpu.memory_space<vmem>>, vector<2x256xf32>
    tpu.vector_store %arg14[%c10_186, %c0_187], %249 {strides = array<i32>} : memref<144x256xf32, #tpu.memory_space<vmem>>, vector<2x256xf32>,
    %c241_i32_188 = arith.constant 241 : i32
    %251 = tpu.dynamic_rotate %195 by %c241_i32_188 dim 1 : vector<2x256xf32>, i32 -> vector<2x256xf32>
    %c6_189 = arith.constant 6 : index
    %c0_190 = arith.constant 0 : index
    %252 = vector.load %arg6[%c6_189, %c0_190] : memref<9x256xf32, #tpu.memory_space<vmem>>, vector<1x256xf32>
    %253 = vector.broadcast %252 : vector<1x256xf32> to vector<2x256xf32>
    %254 = arith.mulf %251, %253 : vector<2x256xf32>
    %c12_191 = arith.constant 12 : index
    %c0_192 = arith.constant 0 : index
    %255 = vector.load %arg14[%c12_191, %c0_192] : memref<144x256xf32, #tpu.memory_space<vmem>>, vector<2x256xf32>
    tpu.vector_store %arg14[%c12_191, %c0_192], %254 {strides = array<i32>} : memref<144x256xf32, #tpu.memory_space<vmem>>, vector<2x256xf32>,
    %c240_i32_193 = arith.constant 240 : i32
    %256 = tpu.dynamic_rotate %195 by %c240_i32_193 dim 1 : vector<2x256xf32>, i32 -> vector<2x256xf32>
    %c7_194 = arith.constant 7 : index
    %c0_195 = arith.constant 0 : index
    %257 = vector.load %arg6[%c7_194, %c0_195] : memref<9x256xf32, #tpu.memory_space<vmem>>, vector<1x256xf32>
    %258 = vector.broadcast %257 : vector<1x256xf32> to vector<2x256xf32>
    %259 = arith.mulf %256, %258 : vector<2x256xf32>
    %c14_196 = arith.constant 14 : index
    %c0_197 = arith.constant 0 : index
    %260 = vector.load %arg14[%c14_196, %c0_197] : memref<144x256xf32, #tpu.memory_space<vmem>>, vector<2x256xf32>
    tpu.vector_store %arg14[%c14_196, %c0_197], %259 {strides = array<i32>} : memref<144x256xf32, #tpu.memory_space<vmem>>, vector<2x256xf32>,
    %c239_i32_198 = arith.constant 239 : i32
    %261 = tpu.dynamic_rotate %195 by %c239_i32_198 dim 1 : vector<2x256xf32>, i32 -> vector<2x256xf32>
    %c8_199 = arith.constant 8 : index
    %c0_200 = arith.constant 0 : index
    %262 = vector.load %arg6[%c8_199, %c0_200] : memref<9x256xf32, #tpu.memory_space<vmem>>, vector<1x256xf32>
    %263 = vector.broadcast %262 : vector<1x256xf32> to vector<2x256xf32>
    %264 = arith.mulf %261, %263 : vector<2x256xf32>
    %c16_201 = arith.constant 16 : index
    %c0_202 = arith.constant 0 : index
    %265 = vector.load %arg14[%c16_201, %c0_202] : memref<144x256xf32, #tpu.memory_space<vmem>>, vector<2x256xf32>
    tpu.vector_store %arg14[%c16_201, %c0_202], %264 {strides = array<i32>} : memref<144x256xf32, #tpu.memory_space<vmem>>, vector<2x256xf32>,
    %c0_203 = arith.constant 0 : index
    %c0_204 = arith.constant 0 : index
    %266 = vector.load %arg7[%c0_203, %c0_204] : memref<16x144xf32, #tpu.memory_space<vmem>>, vector<16x144xf32>
    %c0_205 = arith.constant 0 : index
    %c0_206 = arith.constant 0 : index
    %267 = vector.load %arg14[%c0_205, %c0_206] : memref<144x256xf32, #tpu.memory_space<vmem>>, vector<144x256xf32>
    %cst_207 = arith.constant dense<0.000000e+00> : vector<16x256xf32>
    %268 = tpu.matmul %266, %267, %cst_207 {dimension_numbers = #tpu.dot_dimension_numbers<[1], [0], [0], [1], [0, 0, 1, 1], [], []>} : vector<16x144xf32>, vector<144x256xf32>, vector<16x256xf32> -> vector<16x256xf32>
    %c0_208 = arith.constant 0 : index
    %c0_209 = arith.constant 0 : index
    %269 = vector.load %arg8[%c0_208, %c0_209] : memref<16x256xf32, #tpu.memory_space<vmem>>, vector<16x256xf32>
    %270 = arith.addf %268, %269 : vector<16x256xf32>
    %cst_210 = arith.constant 0.000000e+00 : f32
    %271 = vector.broadcast %cst_210 : f32 to vector<16x256xf32>
    %272 = arith.maximumf %270, %271 : vector<16x256xf32>
    %c17_i32_211 = arith.constant 17 : i32
    %273 = tpu.dynamic_rotate %272 by %c17_i32_211 dim 1 : vector<16x256xf32>, i32 -> vector<16x256xf32>
    %c0_212 = arith.constant 0 : index
    %c0_213 = arith.constant 0 : index
    %274 = vector.load %arg6[%c0_212, %c0_213] : memref<9x256xf32, #tpu.memory_space<vmem>>, vector<1x256xf32>
    %275 = vector.broadcast %274 : vector<1x256xf32> to vector<16x256xf32>
    %276 = arith.mulf %273, %275 : vector<16x256xf32>
    %c0_214 = arith.constant 0 : index
    %c0_215 = arith.constant 0 : index
    %277 = vector.load %arg14[%c0_214, %c0_215] : memref<144x256xf32, #tpu.memory_space<vmem>>, vector<16x256xf32>
    tpu.vector_store %arg14[%c0_214, %c0_215], %276 {strides = array<i32>} : memref<144x256xf32, #tpu.memory_space<vmem>>, vector<16x256xf32>,
    %c16_i32_216 = arith.constant 16 : i32
    %278 = tpu.dynamic_rotate %272 by %c16_i32_216 dim 1 : vector<16x256xf32>, i32 -> vector<16x256xf32>
    %c1_217 = arith.constant 1 : index
    %c0_218 = arith.constant 0 : index
    %279 = vector.load %arg6[%c1_217, %c0_218] : memref<9x256xf32, #tpu.memory_space<vmem>>, vector<1x256xf32>
    %280 = vector.broadcast %279 : vector<1x256xf32> to vector<16x256xf32>
    %281 = arith.mulf %278, %280 : vector<16x256xf32>
    %c16_219 = arith.constant 16 : index
    %c0_220 = arith.constant 0 : index
    %282 = vector.load %arg14[%c16_219, %c0_220] : memref<144x256xf32, #tpu.memory_space<vmem>>, vector<16x256xf32>
    tpu.vector_store %arg14[%c16_219, %c0_220], %281 {strides = array<i32>} : memref<144x256xf32, #tpu.memory_space<vmem>>, vector<16x256xf32>,
    %c15_i32_221 = arith.constant 15 : i32
    %283 = tpu.dynamic_rotate %272 by %c15_i32_221 dim 1 : vector<16x256xf32>, i32 -> vector<16x256xf32>
    %c2_222 = arith.constant 2 : index
    %c0_223 = arith.constant 0 : index
    %284 = vector.load %arg6[%c2_222, %c0_223] : memref<9x256xf32, #tpu.memory_space<vmem>>, vector<1x256xf32>
    %285 = vector.broadcast %284 : vector<1x256xf32> to vector<16x256xf32>
    %286 = arith.mulf %283, %285 : vector<16x256xf32>
    %c32_224 = arith.constant 32 : index
    %c0_225 = arith.constant 0 : index
    %287 = vector.load %arg14[%c32_224, %c0_225] : memref<144x256xf32, #tpu.memory_space<vmem>>, vector<16x256xf32>
    tpu.vector_store %arg14[%c32_224, %c0_225], %286 {strides = array<i32>} : memref<144x256xf32, #tpu.memory_space<vmem>>, vector<16x256xf32>,
    %c1_i32_226 = arith.constant 1 : i32
    %288 = tpu.dynamic_rotate %272 by %c1_i32_226 dim 1 : vector<16x256xf32>, i32 -> vector<16x256xf32>
    %c3_227 = arith.constant 3 : index
    %c0_228 = arith.constant 0 : index
    %289 = vector.load %arg6[%c3_227, %c0_228] : memref<9x256xf32, #tpu.memory_space<vmem>>, vector<1x256xf32>
    %290 = vector.broadcast %289 : vector<1x256xf32> to vector<16x256xf32>
    %291 = arith.mulf %288, %290 : vector<16x256xf32>
    %c48_229 = arith.constant 48 : index
    %c0_230 = arith.constant 0 : index
    %292 = vector.load %arg14[%c48_229, %c0_230] : memref<144x256xf32, #tpu.memory_space<vmem>>, vector<16x256xf32>
    tpu.vector_store %arg14[%c48_229, %c0_230], %291 {strides = array<i32>} : memref<144x256xf32, #tpu.memory_space<vmem>>, vector<16x256xf32>,
    %c64_231 = arith.constant 64 : index
    %c0_232 = arith.constant 0 : index
    %293 = vector.load %arg14[%c64_231, %c0_232] : memref<144x256xf32, #tpu.memory_space<vmem>>, vector<16x256xf32>
    tpu.vector_store %arg14[%c64_231, %c0_232], %272 {strides = array<i32>} : memref<144x256xf32, #tpu.memory_space<vmem>>, vector<16x256xf32>,
    %c255_i32_233 = arith.constant 255 : i32
    %294 = tpu.dynamic_rotate %272 by %c255_i32_233 dim 1 : vector<16x256xf32>, i32 -> vector<16x256xf32>
    %c5_234 = arith.constant 5 : index
    %c0_235 = arith.constant 0 : index
    %295 = vector.load %arg6[%c5_234, %c0_235] : memref<9x256xf32, #tpu.memory_space<vmem>>, vector<1x256xf32>
    %296 = vector.broadcast %295 : vector<1x256xf32> to vector<16x256xf32>
    %297 = arith.mulf %294, %296 : vector<16x256xf32>
    %c80_236 = arith.constant 80 : index
    %c0_237 = arith.constant 0 : index
    %298 = vector.load %arg14[%c80_236, %c0_237] : memref<144x256xf32, #tpu.memory_space<vmem>>, vector<16x256xf32>
    tpu.vector_store %arg14[%c80_236, %c0_237], %297 {strides = array<i32>} : memref<144x256xf32, #tpu.memory_space<vmem>>, vector<16x256xf32>,
    %c241_i32_238 = arith.constant 241 : i32
    %299 = tpu.dynamic_rotate %272 by %c241_i32_238 dim 1 : vector<16x256xf32>, i32 -> vector<16x256xf32>
    %c6_239 = arith.constant 6 : index
    %c0_240 = arith.constant 0 : index
    %300 = vector.load %arg6[%c6_239, %c0_240] : memref<9x256xf32, #tpu.memory_space<vmem>>, vector<1x256xf32>
    %301 = vector.broadcast %300 : vector<1x256xf32> to vector<16x256xf32>
    %302 = arith.mulf %299, %301 : vector<16x256xf32>
    %c96_241 = arith.constant 96 : index
    %c0_242 = arith.constant 0 : index
    %303 = vector.load %arg14[%c96_241, %c0_242] : memref<144x256xf32, #tpu.memory_space<vmem>>, vector<16x256xf32>
    tpu.vector_store %arg14[%c96_241, %c0_242], %302 {strides = array<i32>} : memref<144x256xf32, #tpu.memory_space<vmem>>, vector<16x256xf32>,
    %c240_i32_243 = arith.constant 240 : i32
    %304 = tpu.dynamic_rotate %272 by %c240_i32_243 dim 1 : vector<16x256xf32>, i32 -> vector<16x256xf32>
    %c7_244 = arith.constant 7 : index
    %c0_245 = arith.constant 0 : index
    %305 = vector.load %arg6[%c7_244, %c0_245] : memref<9x256xf32, #tpu.memory_space<vmem>>, vector<1x256xf32>
    %306 = vector.broadcast %305 : vector<1x256xf32> to vector<16x256xf32>
    %307 = arith.mulf %304, %306 : vector<16x256xf32>
    %c112_246 = arith.constant 112 : index
    %c0_247 = arith.constant 0 : index
    %308 = vector.load %arg14[%c112_246, %c0_247] : memref<144x256xf32, #tpu.memory_space<vmem>>, vector<16x256xf32>
    tpu.vector_store %arg14[%c112_246, %c0_247], %307 {strides = array<i32>} : memref<144x256xf32, #tpu.memory_space<vmem>>, vector<16x256xf32>,
    %c239_i32_248 = arith.constant 239 : i32
    %309 = tpu.dynamic_rotate %272 by %c239_i32_248 dim 1 : vector<16x256xf32>, i32 -> vector<16x256xf32>
    %c8_249 = arith.constant 8 : index
    %c0_250 = arith.constant 0 : index
    %310 = vector.load %arg6[%c8_249, %c0_250] : memref<9x256xf32, #tpu.memory_space<vmem>>, vector<1x256xf32>
    %311 = vector.broadcast %310 : vector<1x256xf32> to vector<16x256xf32>
    %312 = arith.mulf %309, %311 : vector<16x256xf32>
    %c128_251 = arith.constant 128 : index
    %c0_252 = arith.constant 0 : index
    %313 = vector.load %arg14[%c128_251, %c0_252] : memref<144x256xf32, #tpu.memory_space<vmem>>, vector<16x256xf32>
    tpu.vector_store %arg14[%c128_251, %c0_252], %312 {strides = array<i32>} : memref<144x256xf32, #tpu.memory_space<vmem>>, vector<16x256xf32>,
    %c0_253 = arith.constant 0 : index
    %c0_254 = arith.constant 0 : index
    %314 = vector.load %arg9[%c0_253, %c0_254] : memref<16x144xf32, #tpu.memory_space<vmem>>, vector<16x144xf32>
    %c0_255 = arith.constant 0 : index
    %c0_256 = arith.constant 0 : index
    %315 = vector.load %arg14[%c0_255, %c0_256] : memref<144x256xf32, #tpu.memory_space<vmem>>, vector<144x256xf32>
    %cst_257 = arith.constant dense<0.000000e+00> : vector<16x256xf32>
    %316 = tpu.matmul %314, %315, %cst_257 {dimension_numbers = #tpu.dot_dimension_numbers<[1], [0], [0], [1], [0, 0, 1, 1], [], []>} : vector<16x144xf32>, vector<144x256xf32>, vector<16x256xf32> -> vector<16x256xf32>
    %c0_258 = arith.constant 0 : index
    %c0_259 = arith.constant 0 : index
    %317 = vector.load %arg10[%c0_258, %c0_259] : memref<16x256xf32, #tpu.memory_space<vmem>>, vector<16x256xf32>
    %318 = arith.addf %316, %317 : vector<16x256xf32>
    %cst_260 = arith.constant 0.000000e+00 : f32
    %319 = vector.broadcast %cst_260 : f32 to vector<16x256xf32>
    %320 = arith.maximumf %318, %319 : vector<16x256xf32>
    %c17_i32_261 = arith.constant 17 : i32
    %321 = tpu.dynamic_rotate %320 by %c17_i32_261 dim 1 : vector<16x256xf32>, i32 -> vector<16x256xf32>
    %c0_262 = arith.constant 0 : index
    %c0_263 = arith.constant 0 : index
    %322 = vector.load %arg6[%c0_262, %c0_263] : memref<9x256xf32, #tpu.memory_space<vmem>>, vector<1x256xf32>
    %323 = vector.broadcast %322 : vector<1x256xf32> to vector<16x256xf32>
    %324 = arith.mulf %321, %323 : vector<16x256xf32>
    %c0_264 = arith.constant 0 : index
    %c0_265 = arith.constant 0 : index
    %325 = vector.load %arg14[%c0_264, %c0_265] : memref<144x256xf32, #tpu.memory_space<vmem>>, vector<16x256xf32>
    tpu.vector_store %arg14[%c0_264, %c0_265], %324 {strides = array<i32>} : memref<144x256xf32, #tpu.memory_space<vmem>>, vector<16x256xf32>,
    %c16_i32_266 = arith.constant 16 : i32
    %326 = tpu.dynamic_rotate %320 by %c16_i32_266 dim 1 : vector<16x256xf32>, i32 -> vector<16x256xf32>
    %c1_267 = arith.constant 1 : index
    %c0_268 = arith.constant 0 : index
    %327 = vector.load %arg6[%c1_267, %c0_268] : memref<9x256xf32, #tpu.memory_space<vmem>>, vector<1x256xf32>
    %328 = vector.broadcast %327 : vector<1x256xf32> to vector<16x256xf32>
    %329 = arith.mulf %326, %328 : vector<16x256xf32>
    %c16_269 = arith.constant 16 : index
    %c0_270 = arith.constant 0 : index
    %330 = vector.load %arg14[%c16_269, %c0_270] : memref<144x256xf32, #tpu.memory_space<vmem>>, vector<16x256xf32>
    tpu.vector_store %arg14[%c16_269, %c0_270], %329 {strides = array<i32>} : memref<144x256xf32, #tpu.memory_space<vmem>>, vector<16x256xf32>,
    %c15_i32_271 = arith.constant 15 : i32
    %331 = tpu.dynamic_rotate %320 by %c15_i32_271 dim 1 : vector<16x256xf32>, i32 -> vector<16x256xf32>
    %c2_272 = arith.constant 2 : index
    %c0_273 = arith.constant 0 : index
    %332 = vector.load %arg6[%c2_272, %c0_273] : memref<9x256xf32, #tpu.memory_space<vmem>>, vector<1x256xf32>
    %333 = vector.broadcast %332 : vector<1x256xf32> to vector<16x256xf32>
    %334 = arith.mulf %331, %333 : vector<16x256xf32>
    %c32_274 = arith.constant 32 : index
    %c0_275 = arith.constant 0 : index
    %335 = vector.load %arg14[%c32_274, %c0_275] : memref<144x256xf32, #tpu.memory_space<vmem>>, vector<16x256xf32>
    tpu.vector_store %arg14[%c32_274, %c0_275], %334 {strides = array<i32>} : memref<144x256xf32, #tpu.memory_space<vmem>>, vector<16x256xf32>,
    %c1_i32_276 = arith.constant 1 : i32
    %336 = tpu.dynamic_rotate %320 by %c1_i32_276 dim 1 : vector<16x256xf32>, i32 -> vector<16x256xf32>
    %c3_277 = arith.constant 3 : index
    %c0_278 = arith.constant 0 : index
    %337 = vector.load %arg6[%c3_277, %c0_278] : memref<9x256xf32, #tpu.memory_space<vmem>>, vector<1x256xf32>
    %338 = vector.broadcast %337 : vector<1x256xf32> to vector<16x256xf32>
    %339 = arith.mulf %336, %338 : vector<16x256xf32>
    %c48_279 = arith.constant 48 : index
    %c0_280 = arith.constant 0 : index
    %340 = vector.load %arg14[%c48_279, %c0_280] : memref<144x256xf32, #tpu.memory_space<vmem>>, vector<16x256xf32>
    tpu.vector_store %arg14[%c48_279, %c0_280], %339 {strides = array<i32>} : memref<144x256xf32, #tpu.memory_space<vmem>>, vector<16x256xf32>,
    %c64_281 = arith.constant 64 : index
    %c0_282 = arith.constant 0 : index
    %341 = vector.load %arg14[%c64_281, %c0_282] : memref<144x256xf32, #tpu.memory_space<vmem>>, vector<16x256xf32>
    tpu.vector_store %arg14[%c64_281, %c0_282], %320 {strides = array<i32>} : memref<144x256xf32, #tpu.memory_space<vmem>>, vector<16x256xf32>,
    %c255_i32_283 = arith.constant 255 : i32
    %342 = tpu.dynamic_rotate %320 by %c255_i32_283 dim 1 : vector<16x256xf32>, i32 -> vector<16x256xf32>
    %c5_284 = arith.constant 5 : index
    %c0_285 = arith.constant 0 : index
    %343 = vector.load %arg6[%c5_284, %c0_285] : memref<9x256xf32, #tpu.memory_space<vmem>>, vector<1x256xf32>
    %344 = vector.broadcast %343 : vector<1x256xf32> to vector<16x256xf32>
    %345 = arith.mulf %342, %344 : vector<16x256xf32>
    %c80_286 = arith.constant 80 : index
    %c0_287 = arith.constant 0 : index
    %346 = vector.load %arg14[%c80_286, %c0_287] : memref<144x256xf32, #tpu.memory_space<vmem>>, vector<16x256xf32>
    tpu.vector_store %arg14[%c80_286, %c0_287], %345 {strides = array<i32>} : memref<144x256xf32, #tpu.memory_space<vmem>>, vector<16x256xf32>,
    %c241_i32_288 = arith.constant 241 : i32
    %347 = tpu.dynamic_rotate %320 by %c241_i32_288 dim 1 : vector<16x256xf32>, i32 -> vector<16x256xf32>
    %c6_289 = arith.constant 6 : index
    %c0_290 = arith.constant 0 : index
    %348 = vector.load %arg6[%c6_289, %c0_290] : memref<9x256xf32, #tpu.memory_space<vmem>>, vector<1x256xf32>
    %349 = vector.broadcast %348 : vector<1x256xf32> to vector<16x256xf32>
    %350 = arith.mulf %347, %349 : vector<16x256xf32>
    %c96_291 = arith.constant 96 : index
    %c0_292 = arith.constant 0 : index
    %351 = vector.load %arg14[%c96_291, %c0_292] : memref<144x256xf32, #tpu.memory_space<vmem>>, vector<16x256xf32>
    tpu.vector_store %arg14[%c96_291, %c0_292], %350 {strides = array<i32>} : memref<144x256xf32, #tpu.memory_space<vmem>>, vector<16x256xf32>,
    %c240_i32_293 = arith.constant 240 : i32
    %352 = tpu.dynamic_rotate %320 by %c240_i32_293 dim 1 : vector<16x256xf32>, i32 -> vector<16x256xf32>
    %c7_294 = arith.constant 7 : index
    %c0_295 = arith.constant 0 : index
    %353 = vector.load %arg6[%c7_294, %c0_295] : memref<9x256xf32, #tpu.memory_space<vmem>>, vector<1x256xf32>
    %354 = vector.broadcast %353 : vector<1x256xf32> to vector<16x256xf32>
    %355 = arith.mulf %352, %354 : vector<16x256xf32>
    %c112_296 = arith.constant 112 : index
    %c0_297 = arith.constant 0 : index
    %356 = vector.load %arg14[%c112_296, %c0_297] : memref<144x256xf32, #tpu.memory_space<vmem>>, vector<16x256xf32>
    tpu.vector_store %arg14[%c112_296, %c0_297], %355 {strides = array<i32>} : memref<144x256xf32, #tpu.memory_space<vmem>>, vector<16x256xf32>,
    %c239_i32_298 = arith.constant 239 : i32
    %357 = tpu.dynamic_rotate %320 by %c239_i32_298 dim 1 : vector<16x256xf32>, i32 -> vector<16x256xf32>
    %c8_299 = arith.constant 8 : index
    %c0_300 = arith.constant 0 : index
    %358 = vector.load %arg6[%c8_299, %c0_300] : memref<9x256xf32, #tpu.memory_space<vmem>>, vector<1x256xf32>
    %359 = vector.broadcast %358 : vector<1x256xf32> to vector<16x256xf32>
    %360 = arith.mulf %357, %359 : vector<16x256xf32>
    %c128_301 = arith.constant 128 : index
    %c0_302 = arith.constant 0 : index
    %361 = vector.load %arg14[%c128_301, %c0_302] : memref<144x256xf32, #tpu.memory_space<vmem>>, vector<16x256xf32>
    tpu.vector_store %arg14[%c128_301, %c0_302], %360 {strides = array<i32>} : memref<144x256xf32, #tpu.memory_space<vmem>>, vector<16x256xf32>,
    %c0_303 = arith.constant 0 : index
    %c0_304 = arith.constant 0 : index
    %362 = vector.load %arg11[%c0_303, %c0_304] : memref<2x144xf32, #tpu.memory_space<vmem>>, vector<2x144xf32>
    %c0_305 = arith.constant 0 : index
    %c0_306 = arith.constant 0 : index
    %363 = vector.load %arg14[%c0_305, %c0_306] : memref<144x256xf32, #tpu.memory_space<vmem>>, vector<144x256xf32>
    %cst_307 = arith.constant dense<0.000000e+00> : vector<2x256xf32>
    %364 = tpu.matmul %362, %363, %cst_307 {dimension_numbers = #tpu.dot_dimension_numbers<[1], [0], [0], [1], [0, 0, 1, 1], [], []>} : vector<2x144xf32>, vector<144x256xf32>, vector<2x256xf32> -> vector<2x256xf32>
    %c0_308 = arith.constant 0 : index
    %c0_309 = arith.constant 0 : index
    %365 = vector.load %arg12[%c0_308, %c0_309] : memref<2x256xf32, #tpu.memory_space<vmem>>, vector<2x256xf32>
    %366 = arith.addf %364, %365 : vector<2x256xf32>
    %367 = arith.addf %366, %195 : vector<2x256xf32>
    %cst_310 = arith.constant 0.000000e+00 : f32
    %368 = vector.broadcast %cst_310 : f32 to vector<2x256xf32>
    %369 = arith.maximumf %367, %368 : vector<2x256xf32>
    %370 = arith.cmpf oeq, %369, %369 : vector<2x256xf32>
    %371 = math.absf %369 : vector<2x256xf32>
    %cst_311 = arith.constant 0x7F800000 : f32
    %372 = vector.broadcast %cst_311 : f32 to vector<2x256xf32>
    %373 = arith.cmpf olt, %371, %372 : vector<2x256xf32>
    %374 = arith.andi %370, %373 : vector<2x256xi1>
    %cst_312 = arith.constant 0.000000e+00 : f32
    %375 = vector.broadcast %cst_312 : f32 to vector<2x256xf32>
    %376 = arith.select %374, %369, %375 : vector<2x256xi1>, vector<2x256xf32>
    %377 = vector.broadcast %0 : f32 to vector<1x256xf32>
    %378 = arith.mulf %377, %203 : vector<1x256xf32>
    %379 = vector.broadcast %378 : vector<1x256xf32> to vector<2x256xf32>
    %380 = arith.mulf %379, %376 : vector<2x256xf32>
    %cst_313 = arith.constant 1.000000e+00 : f32
    %381 = vector.broadcast %cst_313 : f32 to vector<2x256xf32>
    %382 = arith.subf %381, %380 : vector<2x256xf32>
    %383 = arith.mulf %382, %382 : vector<2x256xf32>
    %cst_314 = arith.constant 4.000000e+00 : f32
    %384 = vector.broadcast %cst_314 : f32 to vector<1x256xf32>
    %385 = arith.mulf %384, %378 : vector<1x256xf32>
    %386 = vector.broadcast %385 : vector<1x256xf32> to vector<2x256xf32>
    %387 = arith.mulf %386, %224 : vector<2x256xf32>
    %388 = arith.addf %383, %387 : vector<2x256xf32>
    %389 = math.sqrt %388 : vector<2x256xf32>
    %390 = arith.addf %382, %389 : vector<2x256xf32>
    %cst_315 = arith.constant 2.000000e+00 : f32
    %391 = vector.broadcast %cst_315 : f32 to vector<2x256xf32>
    %392 = arith.mulf %391, %224 : vector<2x256xf32>
    %393 = tpu.reciprocal %390 {approx = true} : vector<2x256xf32> -> vector<2x256xf32>
    %394 = arith.mulf %392, %393 : vector<2x256xf32>
    %395 = arith.cmpf oeq, %394, %394 : vector<2x256xf32>
    %396 = math.absf %394 : vector<2x256xf32>
    %cst_316 = arith.constant 0x7F800000 : f32
    %397 = vector.broadcast %cst_316 : f32 to vector<2x256xf32>
    %398 = arith.cmpf olt, %396, %397 : vector<2x256xf32>
    %399 = arith.andi %395, %398 : vector<2x256xi1>
    %cst_317 = arith.constant 0.000000e+00 : f32
    %400 = vector.broadcast %cst_317 : f32 to vector<2x256xf32>
    %401 = arith.select %399, %394, %400 : vector<2x256xi1>, vector<2x256xf32>
    %c0_318 = arith.constant 0 : index
    %c0_319 = arith.constant 0 : index
    %402 = vector.load %arg5[%c0_318, %c0_319] : memref<1x256xf32, #tpu.memory_space<vmem>>, vector<1x256xf32>
    %c0_320 = arith.constant 0 : index
    %c0_321 = arith.constant 0 : index
    %403 = vector.load %arg2[%c0_320, %c0_321] : memref<2x128xf32, #tpu.memory_space<vmem>>, vector<2x128xf32>
    %c0_322 = arith.constant 0 : index
    %c0_323 = arith.constant 0 : index
    %404 = vector.load %arg4[%c0_322, %c0_323] : memref<256x128xf32, #tpu.memory_space<vmem>>, vector<256x128xf32>
    %cst_324 = arith.constant dense<0.000000e+00> : vector<2x128xf32>
    %405 = tpu.matmul %401, %404, %cst_324 {dimension_numbers = #tpu.dot_dimension_numbers<[1], [0], [0], [1], [0, 0, 1, 1], [], []>} : vector<2x256xf32>, vector<256x128xf32>, vector<2x128xf32> -> vector<2x128xf32>
    %cst_325 = arith.constant 0.000000e+00 : f32
    %406 = vector.broadcast %cst_325 : f32 to vector<2x128xf32>
    %407 = arith.cmpf ogt, %405, %406 : vector<2x128xf32>
    %408 = tpu.reciprocal %405 {approx = true} : vector<2x128xf32> -> vector<2x128xf32>
    %409 = arith.mulf %403, %408 : vector<2x128xf32>
    %cst_326 = arith.constant 0.000000e+00 : f32
    %410 = vector.broadcast %cst_326 : f32 to vector<2x128xf32>
    %411 = arith.select %407, %409, %410 : vector<2x128xi1>, vector<2x128xf32>
    %c0_327 = arith.constant 0 : index
    %c0_328 = arith.constant 0 : index
    %412 = vector.load %arg3[%c0_327, %c0_328] : memref<128x256xf32, #tpu.memory_space<vmem>>, vector<128x256xf32>
    %cst_329 = arith.constant dense<0.000000e+00> : vector<2x256xf32>
    %413 = tpu.matmul %411, %412, %cst_329 {dimension_numbers = #tpu.dot_dimension_numbers<[1], [0], [0], [1], [0, 0, 1, 1], [], []>} : vector<2x128xf32>, vector<128x256xf32>, vector<2x256xf32> -> vector<2x256xf32>
    %414 = arith.mulf %401, %413 : vector<2x256xf32>
    %415 = vector.broadcast %402 : vector<1x256xf32> to vector<2x256xf32>
    %416 = arith.mulf %414, %415 : vector<2x256xf32>
    %417 = arith.cmpf oeq, %416, %416 : vector<2x256xf32>
    %418 = math.absf %416 : vector<2x256xf32>
    %cst_330 = arith.constant 0x7F800000 : f32
    %419 = vector.broadcast %cst_330 : f32 to vector<2x256xf32>
    %420 = arith.cmpf olt, %418, %419 : vector<2x256xf32>
    %421 = arith.andi %417, %420 : vector<2x256xi1>
    %cst_331 = arith.constant 0.000000e+00 : f32
    %422 = vector.broadcast %cst_331 : f32 to vector<2x256xf32>
    %423 = arith.select %421, %416, %422 : vector<2x256xi1>, vector<2x256xf32>
    %c17_i32_332 = arith.constant 17 : i32
    %424 = tpu.dynamic_rotate %394 by %c17_i32_332 dim 1 : vector<2x256xf32>, i32 -> vector<2x256xf32>
    %c0_333 = arith.constant 0 : index
    %c0_334 = arith.constant 0 : index
    %425 = vector.load %arg6[%c0_333, %c0_334] : memref<9x256xf32, #tpu.memory_space<vmem>>, vector<1x256xf32>
    %426 = vector.broadcast %425 : vector<1x256xf32> to vector<2x256xf32>
    %427 = arith.mulf %424, %426 : vector<2x256xf32>
    %c0_335 = arith.constant 0 : index
    %c0_336 = arith.constant 0 : index
    %428 = vector.load %arg14[%c0_335, %c0_336] : memref<144x256xf32, #tpu.memory_space<vmem>>, vector<2x256xf32>
    tpu.vector_store %arg14[%c0_335, %c0_336], %427 {strides = array<i32>} : memref<144x256xf32, #tpu.memory_space<vmem>>, vector<2x256xf32>,
    %c16_i32_337 = arith.constant 16 : i32
    %429 = tpu.dynamic_rotate %394 by %c16_i32_337 dim 1 : vector<2x256xf32>, i32 -> vector<2x256xf32>
    %c1_338 = arith.constant 1 : index
    %c0_339 = arith.constant 0 : index
    %430 = vector.load %arg6[%c1_338, %c0_339] : memref<9x256xf32, #tpu.memory_space<vmem>>, vector<1x256xf32>
    %431 = vector.broadcast %430 : vector<1x256xf32> to vector<2x256xf32>
    %432 = arith.mulf %429, %431 : vector<2x256xf32>
    %c2_340 = arith.constant 2 : index
    %c0_341 = arith.constant 0 : index
    %433 = vector.load %arg14[%c2_340, %c0_341] : memref<144x256xf32, #tpu.memory_space<vmem>>, vector<2x256xf32>
    tpu.vector_store %arg14[%c2_340, %c0_341], %432 {strides = array<i32>} : memref<144x256xf32, #tpu.memory_space<vmem>>, vector<2x256xf32>,
    %c15_i32_342 = arith.constant 15 : i32
    %434 = tpu.dynamic_rotate %394 by %c15_i32_342 dim 1 : vector<2x256xf32>, i32 -> vector<2x256xf32>
    %c2_343 = arith.constant 2 : index
    %c0_344 = arith.constant 0 : index
    %435 = vector.load %arg6[%c2_343, %c0_344] : memref<9x256xf32, #tpu.memory_space<vmem>>, vector<1x256xf32>
    %436 = vector.broadcast %435 : vector<1x256xf32> to vector<2x256xf32>
    %437 = arith.mulf %434, %436 : vector<2x256xf32>
    %c4_345 = arith.constant 4 : index
    %c0_346 = arith.constant 0 : index
    %438 = vector.load %arg14[%c4_345, %c0_346] : memref<144x256xf32, #tpu.memory_space<vmem>>, vector<2x256xf32>
    tpu.vector_store %arg14[%c4_345, %c0_346], %437 {strides = array<i32>} : memref<144x256xf32, #tpu.memory_space<vmem>>, vector<2x256xf32>,
    %c1_i32_347 = arith.constant 1 : i32
    %439 = tpu.dynamic_rotate %394 by %c1_i32_347 dim 1 : vector<2x256xf32>, i32 -> vector<2x256xf32>
    %c3_348 = arith.constant 3 : index
    %c0_349 = arith.constant 0 : index
    %440 = vector.load %arg6[%c3_348, %c0_349] : memref<9x256xf32, #tpu.memory_space<vmem>>, vector<1x256xf32>
    %441 = vector.broadcast %440 : vector<1x256xf32> to vector<2x256xf32>
    %442 = arith.mulf %439, %441 : vector<2x256xf32>
    %c6_350 = arith.constant 6 : index
    %c0_351 = arith.constant 0 : index
    %443 = vector.load %arg14[%c6_350, %c0_351] : memref<144x256xf32, #tpu.memory_space<vmem>>, vector<2x256xf32>
    tpu.vector_store %arg14[%c6_350, %c0_351], %442 {strides = array<i32>} : memref<144x256xf32, #tpu.memory_space<vmem>>, vector<2x256xf32>,
    %c8_352 = arith.constant 8 : index
    %c0_353 = arith.constant 0 : index
    %444 = vector.load %arg14[%c8_352, %c0_353] : memref<144x256xf32, #tpu.memory_space<vmem>>, vector<2x256xf32>
    tpu.vector_store %arg14[%c8_352, %c0_353], %394 {strides = array<i32>} : memref<144x256xf32, #tpu.memory_space<vmem>>, vector<2x256xf32>,
    %c255_i32_354 = arith.constant 255 : i32
    %445 = tpu.dynamic_rotate %394 by %c255_i32_354 dim 1 : vector<2x256xf32>, i32 -> vector<2x256xf32>
    %c5_355 = arith.constant 5 : index
    %c0_356 = arith.constant 0 : index
    %446 = vector.load %arg6[%c5_355, %c0_356] : memref<9x256xf32, #tpu.memory_space<vmem>>, vector<1x256xf32>
    %447 = vector.broadcast %446 : vector<1x256xf32> to vector<2x256xf32>
    %448 = arith.mulf %445, %447 : vector<2x256xf32>
    %c10_357 = arith.constant 10 : index
    %c0_358 = arith.constant 0 : index
    %449 = vector.load %arg14[%c10_357, %c0_358] : memref<144x256xf32, #tpu.memory_space<vmem>>, vector<2x256xf32>
    tpu.vector_store %arg14[%c10_357, %c0_358], %448 {strides = array<i32>} : memref<144x256xf32, #tpu.memory_space<vmem>>, vector<2x256xf32>,
    %c241_i32_359 = arith.constant 241 : i32
    %450 = tpu.dynamic_rotate %394 by %c241_i32_359 dim 1 : vector<2x256xf32>, i32 -> vector<2x256xf32>
    %c6_360 = arith.constant 6 : index
    %c0_361 = arith.constant 0 : index
    %451 = vector.load %arg6[%c6_360, %c0_361] : memref<9x256xf32, #tpu.memory_space<vmem>>, vector<1x256xf32>
    %452 = vector.broadcast %451 : vector<1x256xf32> to vector<2x256xf32>
    %453 = arith.mulf %450, %452 : vector<2x256xf32>
    %c12_362 = arith.constant 12 : index
    %c0_363 = arith.constant 0 : index
    %454 = vector.load %arg14[%c12_362, %c0_363] : memref<144x256xf32, #tpu.memory_space<vmem>>, vector<2x256xf32>
    tpu.vector_store %arg14[%c12_362, %c0_363], %453 {strides = array<i32>} : memref<144x256xf32, #tpu.memory_space<vmem>>, vector<2x256xf32>,
    %c240_i32_364 = arith.constant 240 : i32
    %455 = tpu.dynamic_rotate %394 by %c240_i32_364 dim 1 : vector<2x256xf32>, i32 -> vector<2x256xf32>
    %c7_365 = arith.constant 7 : index
    %c0_366 = arith.constant 0 : index
    %456 = vector.load %arg6[%c7_365, %c0_366] : memref<9x256xf32, #tpu.memory_space<vmem>>, vector<1x256xf32>
    %457 = vector.broadcast %456 : vector<1x256xf32> to vector<2x256xf32>
    %458 = arith.mulf %455, %457 : vector<2x256xf32>
    %c14_367 = arith.constant 14 : index
    %c0_368 = arith.constant 0 : index
    %459 = vector.load %arg14[%c14_367, %c0_368] : memref<144x256xf32, #tpu.memory_space<vmem>>, vector<2x256xf32>
    tpu.vector_store %arg14[%c14_367, %c0_368], %458 {strides = array<i32>} : memref<144x256xf32, #tpu.memory_space<vmem>>, vector<2x256xf32>,
    %c239_i32_369 = arith.constant 239 : i32
    %460 = tpu.dynamic_rotate %394 by %c239_i32_369 dim 1 : vector<2x256xf32>, i32 -> vector<2x256xf32>
    %c8_370 = arith.constant 8 : index
    %c0_371 = arith.constant 0 : index
    %461 = vector.load %arg6[%c8_370, %c0_371] : memref<9x256xf32, #tpu.memory_space<vmem>>, vector<1x256xf32>
    %462 = vector.broadcast %461 : vector<1x256xf32> to vector<2x256xf32>
    %463 = arith.mulf %460, %462 : vector<2x256xf32>
    %c16_372 = arith.constant 16 : index
    %c0_373 = arith.constant 0 : index
    %464 = vector.load %arg14[%c16_372, %c0_373] : memref<144x256xf32, #tpu.memory_space<vmem>>, vector<2x256xf32>
    tpu.vector_store %arg14[%c16_372, %c0_373], %463 {strides = array<i32>} : memref<144x256xf32, #tpu.memory_space<vmem>>, vector<2x256xf32>,
    %c0_374 = arith.constant 0 : index
    %c0_375 = arith.constant 0 : index
    %465 = vector.load %arg7[%c0_374, %c0_375] : memref<16x144xf32, #tpu.memory_space<vmem>>, vector<16x144xf32>
    %c0_376 = arith.constant 0 : index
    %c0_377 = arith.constant 0 : index
    %466 = vector.load %arg14[%c0_376, %c0_377] : memref<144x256xf32, #tpu.memory_space<vmem>>, vector<144x256xf32>
    %cst_378 = arith.constant dense<0.000000e+00> : vector<16x256xf32>
    %467 = tpu.matmul %465, %466, %cst_378 {dimension_numbers = #tpu.dot_dimension_numbers<[1], [0], [0], [1], [0, 0, 1, 1], [], []>} : vector<16x144xf32>, vector<144x256xf32>, vector<16x256xf32> -> vector<16x256xf32>
    %c0_379 = arith.constant 0 : index
    %c0_380 = arith.constant 0 : index
    %468 = vector.load %arg8[%c0_379, %c0_380] : memref<16x256xf32, #tpu.memory_space<vmem>>, vector<16x256xf32>
    %469 = arith.addf %467, %468 : vector<16x256xf32>
    %cst_381 = arith.constant 0.000000e+00 : f32
    %470 = vector.broadcast %cst_381 : f32 to vector<16x256xf32>
    %471 = arith.maximumf %469, %470 : vector<16x256xf32>
    %c17_i32_382 = arith.constant 17 : i32
    %472 = tpu.dynamic_rotate %471 by %c17_i32_382 dim 1 : vector<16x256xf32>, i32 -> vector<16x256xf32>
    %c0_383 = arith.constant 0 : index
    %c0_384 = arith.constant 0 : index
    %473 = vector.load %arg6[%c0_383, %c0_384] : memref<9x256xf32, #tpu.memory_space<vmem>>, vector<1x256xf32>
    %474 = vector.broadcast %473 : vector<1x256xf32> to vector<16x256xf32>
    %475 = arith.mulf %472, %474 : vector<16x256xf32>
    %c0_385 = arith.constant 0 : index
    %c0_386 = arith.constant 0 : index
    %476 = vector.load %arg14[%c0_385, %c0_386] : memref<144x256xf32, #tpu.memory_space<vmem>>, vector<16x256xf32>
    tpu.vector_store %arg14[%c0_385, %c0_386], %475 {strides = array<i32>} : memref<144x256xf32, #tpu.memory_space<vmem>>, vector<16x256xf32>,
    %c16_i32_387 = arith.constant 16 : i32
    %477 = tpu.dynamic_rotate %471 by %c16_i32_387 dim 1 : vector<16x256xf32>, i32 -> vector<16x256xf32>
    %c1_388 = arith.constant 1 : index
    %c0_389 = arith.constant 0 : index
    %478 = vector.load %arg6[%c1_388, %c0_389] : memref<9x256xf32, #tpu.memory_space<vmem>>, vector<1x256xf32>
    %479 = vector.broadcast %478 : vector<1x256xf32> to vector<16x256xf32>
    %480 = arith.mulf %477, %479 : vector<16x256xf32>
    %c16_390 = arith.constant 16 : index
    %c0_391 = arith.constant 0 : index
    %481 = vector.load %arg14[%c16_390, %c0_391] : memref<144x256xf32, #tpu.memory_space<vmem>>, vector<16x256xf32>
    tpu.vector_store %arg14[%c16_390, %c0_391], %480 {strides = array<i32>} : memref<144x256xf32, #tpu.memory_space<vmem>>, vector<16x256xf32>,
    %c15_i32_392 = arith.constant 15 : i32
    %482 = tpu.dynamic_rotate %471 by %c15_i32_392 dim 1 : vector<16x256xf32>, i32 -> vector<16x256xf32>
    %c2_393 = arith.constant 2 : index
    %c0_394 = arith.constant 0 : index
    %483 = vector.load %arg6[%c2_393, %c0_394] : memref<9x256xf32, #tpu.memory_space<vmem>>, vector<1x256xf32>
    %484 = vector.broadcast %483 : vector<1x256xf32> to vector<16x256xf32>
    %485 = arith.mulf %482, %484 : vector<16x256xf32>
    %c32_395 = arith.constant 32 : index
    %c0_396 = arith.constant 0 : index
    %486 = vector.load %arg14[%c32_395, %c0_396] : memref<144x256xf32, #tpu.memory_space<vmem>>, vector<16x256xf32>
    tpu.vector_store %arg14[%c32_395, %c0_396], %485 {strides = array<i32>} : memref<144x256xf32, #tpu.memory_space<vmem>>, vector<16x256xf32>,
    %c1_i32_397 = arith.constant 1 : i32
    %487 = tpu.dynamic_rotate %471 by %c1_i32_397 dim 1 : vector<16x256xf32>, i32 -> vector<16x256xf32>
    %c3_398 = arith.constant 3 : index
    %c0_399 = arith.constant 0 : index
    %488 = vector.load %arg6[%c3_398, %c0_399] : memref<9x256xf32, #tpu.memory_space<vmem>>, vector<1x256xf32>
    %489 = vector.broadcast %488 : vector<1x256xf32> to vector<16x256xf32>
    %490 = arith.mulf %487, %489 : vector<16x256xf32>
    %c48_400 = arith.constant 48 : index
    %c0_401 = arith.constant 0 : index
    %491 = vector.load %arg14[%c48_400, %c0_401] : memref<144x256xf32, #tpu.memory_space<vmem>>, vector<16x256xf32>
    tpu.vector_store %arg14[%c48_400, %c0_401], %490 {strides = array<i32>} : memref<144x256xf32, #tpu.memory_space<vmem>>, vector<16x256xf32>,
    %c64_402 = arith.constant 64 : index
    %c0_403 = arith.constant 0 : index
    %492 = vector.load %arg14[%c64_402, %c0_403] : memref<144x256xf32, #tpu.memory_space<vmem>>, vector<16x256xf32>
    tpu.vector_store %arg14[%c64_402, %c0_403], %471 {strides = array<i32>} : memref<144x256xf32, #tpu.memory_space<vmem>>, vector<16x256xf32>,
    %c255_i32_404 = arith.constant 255 : i32
    %493 = tpu.dynamic_rotate %471 by %c255_i32_404 dim 1 : vector<16x256xf32>, i32 -> vector<16x256xf32>
    %c5_405 = arith.constant 5 : index
    %c0_406 = arith.constant 0 : index
    %494 = vector.load %arg6[%c5_405, %c0_406] : memref<9x256xf32, #tpu.memory_space<vmem>>, vector<1x256xf32>
    %495 = vector.broadcast %494 : vector<1x256xf32> to vector<16x256xf32>
    %496 = arith.mulf %493, %495 : vector<16x256xf32>
    %c80_407 = arith.constant 80 : index
    %c0_408 = arith.constant 0 : index
    %497 = vector.load %arg14[%c80_407, %c0_408] : memref<144x256xf32, #tpu.memory_space<vmem>>, vector<16x256xf32>
    tpu.vector_store %arg14[%c80_407, %c0_408], %496 {strides = array<i32>} : memref<144x256xf32, #tpu.memory_space<vmem>>, vector<16x256xf32>,
    %c241_i32_409 = arith.constant 241 : i32
    %498 = tpu.dynamic_rotate %471 by %c241_i32_409 dim 1 : vector<16x256xf32>, i32 -> vector<16x256xf32>
    %c6_410 = arith.constant 6 : index
    %c0_411 = arith.constant 0 : index
    %499 = vector.load %arg6[%c6_410, %c0_411] : memref<9x256xf32, #tpu.memory_space<vmem>>, vector<1x256xf32>
    %500 = vector.broadcast %499 : vector<1x256xf32> to vector<16x256xf32>
    %501 = arith.mulf %498, %500 : vector<16x256xf32>
    %c96_412 = arith.constant 96 : index
    %c0_413 = arith.constant 0 : index
    %502 = vector.load %arg14[%c96_412, %c0_413] : memref<144x256xf32, #tpu.memory_space<vmem>>, vector<16x256xf32>
    tpu.vector_store %arg14[%c96_412, %c0_413], %501 {strides = array<i32>} : memref<144x256xf32, #tpu.memory_space<vmem>>, vector<16x256xf32>,
    %c240_i32_414 = arith.constant 240 : i32
    %503 = tpu.dynamic_rotate %471 by %c240_i32_414 dim 1 : vector<16x256xf32>, i32 -> vector<16x256xf32>
    %c7_415 = arith.constant 7 : index
    %c0_416 = arith.constant 0 : index
    %504 = vector.load %arg6[%c7_415, %c0_416] : memref<9x256xf32, #tpu.memory_space<vmem>>, vector<1x256xf32>
    %505 = vector.broadcast %504 : vector<1x256xf32> to vector<16x256xf32>
    %506 = arith.mulf %503, %505 : vector<16x256xf32>
    %c112_417 = arith.constant 112 : index
    %c0_418 = arith.constant 0 : index
    %507 = vector.load %arg14[%c112_417, %c0_418] : memref<144x256xf32, #tpu.memory_space<vmem>>, vector<16x256xf32>
    tpu.vector_store %arg14[%c112_417, %c0_418], %506 {strides = array<i32>} : memref<144x256xf32, #tpu.memory_space<vmem>>, vector<16x256xf32>,
    %c239_i32_419 = arith.constant 239 : i32
    %508 = tpu.dynamic_rotate %471 by %c239_i32_419 dim 1 : vector<16x256xf32>, i32 -> vector<16x256xf32>
    %c8_420 = arith.constant 8 : index
    %c0_421 = arith.constant 0 : index
    %509 = vector.load %arg6[%c8_420, %c0_421] : memref<9x256xf32, #tpu.memory_space<vmem>>, vector<1x256xf32>
    %510 = vector.broadcast %509 : vector<1x256xf32> to vector<16x256xf32>
    %511 = arith.mulf %508, %510 : vector<16x256xf32>
    %c128_422 = arith.constant 128 : index
    %c0_423 = arith.constant 0 : index
    %512 = vector.load %arg14[%c128_422, %c0_423] : memref<144x256xf32, #tpu.memory_space<vmem>>, vector<16x256xf32>
    tpu.vector_store %arg14[%c128_422, %c0_423], %511 {strides = array<i32>} : memref<144x256xf32, #tpu.memory_space<vmem>>, vector<16x256xf32>,
    %c0_424 = arith.constant 0 : index
    %c0_425 = arith.constant 0 : index
    %513 = vector.load %arg9[%c0_424, %c0_425] : memref<16x144xf32, #tpu.memory_space<vmem>>, vector<16x144xf32>
    %c0_426 = arith.constant 0 : index
    %c0_427 = arith.constant 0 : index
    %514 = vector.load %arg14[%c0_426, %c0_427] : memref<144x256xf32, #tpu.memory_space<vmem>>, vector<144x256xf32>
    %cst_428 = arith.constant dense<0.000000e+00> : vector<16x256xf32>
    %515 = tpu.matmul %513, %514, %cst_428 {dimension_numbers = #tpu.dot_dimension_numbers<[1], [0], [0], [1], [0, 0, 1, 1], [], []>} : vector<16x144xf32>, vector<144x256xf32>, vector<16x256xf32> -> vector<16x256xf32>
    %c0_429 = arith.constant 0 : index
    %c0_430 = arith.constant 0 : index
    %516 = vector.load %arg10[%c0_429, %c0_430] : memref<16x256xf32, #tpu.memory_space<vmem>>, vector<16x256xf32>
    %517 = arith.addf %515, %516 : vector<16x256xf32>
    %cst_431 = arith.constant 0.000000e+00 : f32
    %518 = vector.broadcast %cst_431 : f32 to vector<16x256xf32>
    %519 = arith.maximumf %517, %518 : vector<16x256xf32>
    %c17_i32_432 = arith.constant 17 : i32
    %520 = tpu.dynamic_rotate %519 by %c17_i32_432 dim 1 : vector<16x256xf32>, i32 -> vector<16x256xf32>
    %c0_433 = arith.constant 0 : index
    %c0_434 = arith.constant 0 : index
    %521 = vector.load %arg6[%c0_433, %c0_434] : memref<9x256xf32, #tpu.memory_space<vmem>>, vector<1x256xf32>
    %522 = vector.broadcast %521 : vector<1x256xf32> to vector<16x256xf32>
    %523 = arith.mulf %520, %522 : vector<16x256xf32>
    %c0_435 = arith.constant 0 : index
    %c0_436 = arith.constant 0 : index
    %524 = vector.load %arg14[%c0_435, %c0_436] : memref<144x256xf32, #tpu.memory_space<vmem>>, vector<16x256xf32>
    tpu.vector_store %arg14[%c0_435, %c0_436], %523 {strides = array<i32>} : memref<144x256xf32, #tpu.memory_space<vmem>>, vector<16x256xf32>,
    %c16_i32_437 = arith.constant 16 : i32
    %525 = tpu.dynamic_rotate %519 by %c16_i32_437 dim 1 : vector<16x256xf32>, i32 -> vector<16x256xf32>
    %c1_438 = arith.constant 1 : index
    %c0_439 = arith.constant 0 : index
    %526 = vector.load %arg6[%c1_438, %c0_439] : memref<9x256xf32, #tpu.memory_space<vmem>>, vector<1x256xf32>
    %527 = vector.broadcast %526 : vector<1x256xf32> to vector<16x256xf32>
    %528 = arith.mulf %525, %527 : vector<16x256xf32>
    %c16_440 = arith.constant 16 : index
    %c0_441 = arith.constant 0 : index
    %529 = vector.load %arg14[%c16_440, %c0_441] : memref<144x256xf32, #tpu.memory_space<vmem>>, vector<16x256xf32>
    tpu.vector_store %arg14[%c16_440, %c0_441], %528 {strides = array<i32>} : memref<144x256xf32, #tpu.memory_space<vmem>>, vector<16x256xf32>,
    %c15_i32_442 = arith.constant 15 : i32
    %530 = tpu.dynamic_rotate %519 by %c15_i32_442 dim 1 : vector<16x256xf32>, i32 -> vector<16x256xf32>
    %c2_443 = arith.constant 2 : index
    %c0_444 = arith.constant 0 : index
    %531 = vector.load %arg6[%c2_443, %c0_444] : memref<9x256xf32, #tpu.memory_space<vmem>>, vector<1x256xf32>
    %532 = vector.broadcast %531 : vector<1x256xf32> to vector<16x256xf32>
    %533 = arith.mulf %530, %532 : vector<16x256xf32>
    %c32_445 = arith.constant 32 : index
    %c0_446 = arith.constant 0 : index
    %534 = vector.load %arg14[%c32_445, %c0_446] : memref<144x256xf32, #tpu.memory_space<vmem>>, vector<16x256xf32>
    tpu.vector_store %arg14[%c32_445, %c0_446], %533 {strides = array<i32>} : memref<144x256xf32, #tpu.memory_space<vmem>>, vector<16x256xf32>,
    %c1_i32_447 = arith.constant 1 : i32
    %535 = tpu.dynamic_rotate %519 by %c1_i32_447 dim 1 : vector<16x256xf32>, i32 -> vector<16x256xf32>
    %c3_448 = arith.constant 3 : index
    %c0_449 = arith.constant 0 : index
    %536 = vector.load %arg6[%c3_448, %c0_449] : memref<9x256xf32, #tpu.memory_space<vmem>>, vector<1x256xf32>
    %537 = vector.broadcast %536 : vector<1x256xf32> to vector<16x256xf32>
    %538 = arith.mulf %535, %537 : vector<16x256xf32>
    %c48_450 = arith.constant 48 : index
    %c0_451 = arith.constant 0 : index
    %539 = vector.load %arg14[%c48_450, %c0_451] : memref<144x256xf32, #tpu.memory_space<vmem>>, vector<16x256xf32>
    tpu.vector_store %arg14[%c48_450, %c0_451], %538 {strides = array<i32>} : memref<144x256xf32, #tpu.memory_space<vmem>>, vector<16x256xf32>,
    %c64_452 = arith.constant 64 : index
    %c0_453 = arith.constant 0 : index
    %540 = vector.load %arg14[%c64_452, %c0_453] : memref<144x256xf32, #tpu.memory_space<vmem>>, vector<16x256xf32>
    tpu.vector_store %arg14[%c64_452, %c0_453], %519 {strides = array<i32>} : memref<144x256xf32, #tpu.memory_space<vmem>>, vector<16x256xf32>,
    %c255_i32_454 = arith.constant 255 : i32
    %541 = tpu.dynamic_rotate %519 by %c255_i32_454 dim 1 : vector<16x256xf32>, i32 -> vector<16x256xf32>
    %c5_455 = arith.constant 5 : index
    %c0_456 = arith.constant 0 : index
    %542 = vector.load %arg6[%c5_455, %c0_456] : memref<9x256xf32, #tpu.memory_space<vmem>>, vector<1x256xf32>
    %543 = vector.broadcast %542 : vector<1x256xf32> to vector<16x256xf32>
    %544 = arith.mulf %541, %543 : vector<16x256xf32>
    %c80_457 = arith.constant 80 : index
    %c0_458 = arith.constant 0 : index
    %545 = vector.load %arg14[%c80_457, %c0_458] : memref<144x256xf32, #tpu.memory_space<vmem>>, vector<16x256xf32>
    tpu.vector_store %arg14[%c80_457, %c0_458], %544 {strides = array<i32>} : memref<144x256xf32, #tpu.memory_space<vmem>>, vector<16x256xf32>,
    %c241_i32_459 = arith.constant 241 : i32
    %546 = tpu.dynamic_rotate %519 by %c241_i32_459 dim 1 : vector<16x256xf32>, i32 -> vector<16x256xf32>
    %c6_460 = arith.constant 6 : index
    %c0_461 = arith.constant 0 : index
    %547 = vector.load %arg6[%c6_460, %c0_461] : memref<9x256xf32, #tpu.memory_space<vmem>>, vector<1x256xf32>
    %548 = vector.broadcast %547 : vector<1x256xf32> to vector<16x256xf32>
    %549 = arith.mulf %546, %548 : vector<16x256xf32>
    %c96_462 = arith.constant 96 : index
    %c0_463 = arith.constant 0 : index
    %550 = vector.load %arg14[%c96_462, %c0_463] : memref<144x256xf32, #tpu.memory_space<vmem>>, vector<16x256xf32>
    tpu.vector_store %arg14[%c96_462, %c0_463], %549 {strides = array<i32>} : memref<144x256xf32, #tpu.memory_space<vmem>>, vector<16x256xf32>,
    %c240_i32_464 = arith.constant 240 : i32
    %551 = tpu.dynamic_rotate %519 by %c240_i32_464 dim 1 : vector<16x256xf32>, i32 -> vector<16x256xf32>
    %c7_465 = arith.constant 7 : index
    %c0_466 = arith.constant 0 : index
    %552 = vector.load %arg6[%c7_465, %c0_466] : memref<9x256xf32, #tpu.memory_space<vmem>>, vector<1x256xf32>
    %553 = vector.broadcast %552 : vector<1x256xf32> to vector<16x256xf32>
    %554 = arith.mulf %551, %553 : vector<16x256xf32>
    %c112_467 = arith.constant 112 : index
    %c0_468 = arith.constant 0 : index
    %555 = vector.load %arg14[%c112_467, %c0_468] : memref<144x256xf32, #tpu.memory_space<vmem>>, vector<16x256xf32>
    tpu.vector_store %arg14[%c112_467, %c0_468], %554 {strides = array<i32>} : memref<144x256xf32, #tpu.memory_space<vmem>>, vector<16x256xf32>,
    %c239_i32_469 = arith.constant 239 : i32
    %556 = tpu.dynamic_rotate %519 by %c239_i32_469 dim 1 : vector<16x256xf32>, i32 -> vector<16x256xf32>
    %c8_470 = arith.constant 8 : index
    %c0_471 = arith.constant 0 : index
    %557 = vector.load %arg6[%c8_470, %c0_471] : memref<9x256xf32, #tpu.memory_space<vmem>>, vector<1x256xf32>
    %558 = vector.broadcast %557 : vector<1x256xf32> to vector<16x256xf32>
    %559 = arith.mulf %556, %558 : vector<16x256xf32>
    %c128_472 = arith.constant 128 : index
    %c0_473 = arith.constant 0 : index
    %560 = vector.load %arg14[%c128_472, %c0_473] : memref<144x256xf32, #tpu.memory_space<vmem>>, vector<16x256xf32>
    tpu.vector_store %arg14[%c128_472, %c0_473], %559 {strides = array<i32>} : memref<144x256xf32, #tpu.memory_space<vmem>>, vector<16x256xf32>,
    %c0_474 = arith.constant 0 : index
    %c0_475 = arith.constant 0 : index
    %561 = vector.load %arg11[%c0_474, %c0_475] : memref<2x144xf32, #tpu.memory_space<vmem>>, vector<2x144xf32>
    %c0_476 = arith.constant 0 : index
    %c0_477 = arith.constant 0 : index
    %562 = vector.load %arg14[%c0_476, %c0_477] : memref<144x256xf32, #tpu.memory_space<vmem>>, vector<144x256xf32>
    %cst_478 = arith.constant dense<0.000000e+00> : vector<2x256xf32>
    %563 = tpu.matmul %561, %562, %cst_478 {dimension_numbers = #tpu.dot_dimension_numbers<[1], [0], [0], [1], [0, 0, 1, 1], [], []>} : vector<2x144xf32>, vector<144x256xf32>, vector<2x256xf32> -> vector<2x256xf32>
    %c0_479 = arith.constant 0 : index
    %c0_480 = arith.constant 0 : index
    %564 = vector.load %arg12[%c0_479, %c0_480] : memref<2x256xf32, #tpu.memory_space<vmem>>, vector<2x256xf32>
    %565 = arith.addf %563, %564 : vector<2x256xf32>
    %566 = arith.addf %565, %394 : vector<2x256xf32>
    %cst_481 = arith.constant 0.000000e+00 : f32
    %567 = vector.broadcast %cst_481 : f32 to vector<2x256xf32>
    %568 = arith.maximumf %566, %567 : vector<2x256xf32>
    %569 = arith.cmpf oeq, %568, %568 : vector<2x256xf32>
    %570 = math.absf %568 : vector<2x256xf32>
    %cst_482 = arith.constant 0x7F800000 : f32
    %571 = vector.broadcast %cst_482 : f32 to vector<2x256xf32>
    %572 = arith.cmpf olt, %570, %571 : vector<2x256xf32>
    %573 = arith.andi %569, %572 : vector<2x256xi1>
    %cst_483 = arith.constant 0.000000e+00 : f32
    %574 = vector.broadcast %cst_483 : f32 to vector<2x256xf32>
    %575 = arith.select %573, %568, %574 : vector<2x256xi1>, vector<2x256xf32>
    %576 = vector.broadcast %0 : f32 to vector<1x256xf32>
    %577 = arith.mulf %576, %402 : vector<1x256xf32>
    %578 = vector.broadcast %577 : vector<1x256xf32> to vector<2x256xf32>
    %579 = arith.mulf %578, %575 : vector<2x256xf32>
    %cst_484 = arith.constant 1.000000e+00 : f32
    %580 = vector.broadcast %cst_484 : f32 to vector<2x256xf32>
    %581 = arith.subf %580, %579 : vector<2x256xf32>
    %582 = arith.mulf %581, %581 : vector<2x256xf32>
    %cst_485 = arith.constant 4.000000e+00 : f32
    %583 = vector.broadcast %cst_485 : f32 to vector<1x256xf32>
    %584 = arith.mulf %583, %577 : vector<1x256xf32>
    %585 = vector.broadcast %584 : vector<1x256xf32> to vector<2x256xf32>
    %586 = arith.mulf %585, %423 : vector<2x256xf32>
    %587 = arith.addf %582, %586 : vector<2x256xf32>
    %588 = math.sqrt %587 : vector<2x256xf32>
    %589 = arith.addf %581, %588 : vector<2x256xf32>
    %cst_486 = arith.constant 2.000000e+00 : f32
    %590 = vector.broadcast %cst_486 : f32 to vector<2x256xf32>
    %591 = arith.mulf %590, %423 : vector<2x256xf32>
    %592 = tpu.reciprocal %589 {approx = true} : vector<2x256xf32> -> vector<2x256xf32>
    %593 = arith.mulf %591, %592 : vector<2x256xf32>
    %594 = arith.cmpf oeq, %593, %593 : vector<2x256xf32>
    %595 = math.absf %593 : vector<2x256xf32>
    %cst_487 = arith.constant 0x7F800000 : f32
    %596 = vector.broadcast %cst_487 : f32 to vector<2x256xf32>
    %597 = arith.cmpf olt, %595, %596 : vector<2x256xf32>
    %598 = arith.andi %594, %597 : vector<2x256xi1>
    %cst_488 = arith.constant 0.000000e+00 : f32
    %599 = vector.broadcast %cst_488 : f32 to vector<2x256xf32>
    %600 = arith.select %598, %593, %599 : vector<2x256xi1>, vector<2x256xf32>
    %c0_489 = arith.constant 0 : index
    %c0_490 = arith.constant 0 : index
    %601 = vector.load %arg13[%c0_489, %c0_490] : memref<2x256xf32, #tpu.memory_space<vmem>>, vector<2x256xf32>
    tpu.vector_store %arg13[%c0_489, %c0_490], %600 {strides = array<i32>} : memref<2x256xf32, #tpu.memory_space<vmem>>, vector<2x256xf32>,
    return
  }
  func.func @transform_0(%arg0: i32) -> i32 {
    %c0_i32 = arith.constant 0 : i32
    %c0_i32_0 = arith.constant 0 : i32
    return %c0_i32 : i32
  }
  func.func @transform_1(%arg0: i32) -> (i32, i32) {
    %c0_i32 = arith.constant 0 : i32
    %c0_i32_0 = arith.constant 0 : i32
    return %arg0, %c0_i32 : i32, i32
  }
  func.func @transform_2(%arg0: i32) -> (i32, i32) {
    %c0_i32 = arith.constant 0 : i32
    %c0_i32_0 = arith.constant 0 : i32
    %c0_i32_1 = arith.constant 0 : i32
    return %c0_i32, %c0_i32_0 : i32, i32
  }
  func.func @transform_3(%arg0: i32) -> (i32, i32) {
    %c0_i32 = arith.constant 0 : i32
    %c0_i32_0 = arith.constant 0 : i32
    %c0_i32_1 = arith.constant 0 : i32
    return %c0_i32, %c0_i32_0 : i32, i32
  }
  func.func @transform_4(%arg0: i32) -> (i32, i32) {
    %c0_i32 = arith.constant 0 : i32
    %c0_i32_0 = arith.constant 0 : i32
    %c0_i32_1 = arith.constant 0 : i32
    return %c0_i32, %c0_i32_0 : i32, i32
  }
  func.func @transform_5(%arg0: i32) -> (i32, i32) {
    %c0_i32 = arith.constant 0 : i32
    %c0_i32_0 = arith.constant 0 : i32
    %c0_i32_1 = arith.constant 0 : i32
    return %c0_i32, %c0_i32_0 : i32, i32
  }
  func.func @transform_6(%arg0: i32) -> (i32, i32) {
    %c0_i32 = arith.constant 0 : i32
    %c0_i32_0 = arith.constant 0 : i32
    %c0_i32_1 = arith.constant 0 : i32
    return %c0_i32, %c0_i32_0 : i32, i32
  }
  func.func @transform_7(%arg0: i32) -> (i32, i32) {
    %c0_i32 = arith.constant 0 : i32
    %c0_i32_0 = arith.constant 0 : i32
    %c0_i32_1 = arith.constant 0 : i32
    return %c0_i32, %c0_i32_0 : i32, i32
  }
  func.func @transform_8(%arg0: i32) -> (i32, i32) {
    %c0_i32 = arith.constant 0 : i32
    %c0_i32_0 = arith.constant 0 : i32
    %c0_i32_1 = arith.constant 0 : i32
    return %c0_i32, %c0_i32_0 : i32, i32
  }
  func.func @transform_9(%arg0: i32) -> (i32, i32) {
    %c0_i32 = arith.constant 0 : i32
    %c0_i32_0 = arith.constant 0 : i32
    %c0_i32_1 = arith.constant 0 : i32
    return %c0_i32, %c0_i32_0 : i32, i32
  }
  func.func @transform_10(%arg0: i32) -> (i32, i32) {
    %c0_i32 = arith.constant 0 : i32
    %c0_i32_0 = arith.constant 0 : i32
    %c0_i32_1 = arith.constant 0 : i32
    return %c0_i32, %c0_i32_0 : i32, i32
  }
  func.func @transform_11(%arg0: i32) -> (i32, i32) {
    %c0_i32 = arith.constant 0 : i32
    %c0_i32_0 = arith.constant 0 : i32
    %c0_i32_1 = arith.constant 0 : i32
    return %c0_i32, %c0_i32_0 : i32, i32
  }
  func.func @transform_12(%arg0: i32) -> (i32, i32) {
    %c0_i32 = arith.constant 0 : i32
    %c0_i32_0 = arith.constant 0 : i32
    return %arg0, %c0_i32 : i32, i32
  }
}

</mosaic_0001>

<bundles_post_ra>
// kernel: tpu_custom_call.1
= control target key start
LH: loop header
LB: loop body
LE: loop exit
PB: predicated region body
PF: predicated region fallthrough
CT: control target
= control target key end

     0   :  { %18 = vsyncpa [#allocation5], 0  ;;  %s7421_s0 = inlined_call_operand.<no memory space> [shape: f32[1], index: 0, kind: input, shape index: {}]   ;;  %s7422_s1 = inlined_call_operand.hbm [shape: f32[2,128], index: 1, kind: input, shape index: {}]   ;;  %s7423_s2 = inlined_call_operand.hbm [shape: f32[128,256], index: 2, kind: input, shape index: {}]   ;;  %s7424_s3 = inlined_call_operand.hbm [shape: f32[256,128], index: 3, kind: input, shape index: {}]   ;;  %s7425_s4 = inlined_call_operand.hbm [shape: f32[1,256], index: 4, kind: input, shape index: {}]   ;;  %s7426_s5 = inlined_call_operand.hbm [shape: f32[9,256], index: 5, kind: input, shape index: {}]   ;;  %s7427_s6 = inlined_call_operand.hbm [shape: f32[16,144], index: 6, kind: input, shape index: {}]   ;;  %s7428_s7 = inlined_call_operand.hbm [shape: f32[16,256], index: 7, kind: input, shape index: {}]   ;;  %s7429_s8 = inlined_call_operand.hbm [shape: f32[16,144], index: 8, kind: input, shape index: {}]   ;;  %s7430_s9 = inlined_call_operand.vmem [shape: f32[16,256], index: 9, kind: input, shape index: {}]   ;;  %s7431_s10 = inlined_call_operand.vmem [shape: f32[2,144], index: 10, kind: input, shape index: {}]   ;;  %s7432_s11 = inlined_call_operand.vmem [shape: f32[2,256], index: 11, kind: input, shape index: {}]   ;;  %s7433_s12 = inlined_call_operand.hbm [shape: f32[2,256], index: 12, kind: output, shape index: {}]  }
   0x1   :  { %19 = vsyncpa [#allocation8], 0 }
   0x2   :  { %20 = vsyncpa [#allocation11], 0 }
   0x3   :  { %21 = vsyncpa [#allocation14], 0 }
   0x4   :  { %22 = vsyncpa [#allocation17], 0 }
   0x5   :  { %23 = vsyncpa [#allocation6], 0  ;;  %s5445_s21 = smov [#allocation7]   ;;  %s5235_s25 = scalar_lea.hbm %s7423_s2, 4096 }
   0x6   :  { %s41_s22 = sshll.u32 %s5445_s21, 4  ;;  %p5236_p0 = scmp.ne.s32.totalorder %s7423_s2, %s5235_s25  ;;  %s42_s22 = int_to_ptr.vmem [resolvable:$true] %s41_s22 }
   0x7   :  { %p5239_p1 = scmp.lt.u32.totalorder %s5235_s25, %s7423_s2 }
   0x9   :  { %p5241_p2 = pnand %p5239_p1, %p5236_p0 }
   0xb   :  { %5244 = shalt.err (!%p5241_p2)
}
   0xc   :  { %s5245_s30 = scalar_lea.vmem %s42_s22, 4096  ;;  %p5250_p4 = scmp.lt.s32.totalorder %s42_s22, %s42_s22 }
   0xd   :  { %p5246_p3 = scmp.ne.s32.totalorder %s42_s22, %s5245_s30  ;;  %p5251_p5 = scmp.lt.s32.totalorder %s5245_s30, %s5245_s30 }
   0xf   :  { %p5252_p6 = por %p5251_p5, %p5250_p4 }
  0x11   :  { %p5253_p7 = pnand %p5252_p6, %p5246_p3 }
  0x13   :  { %5256 = shalt.err (!%p5253_p7)
}
  0x14   :  { %s5446_s13 = smov 256   ;;  %s5447_s14 = smov 16  }
  0x15   :  { %47 = dma.hbm_to_vmem [thread:$0]  %s7423_s2, 4096, %s42_s22, [#allocation8], %s5446_s13, %s5446_s13, %s5447_s14  }
  0x16   :  { %s5448_s17 = smov [#allocation10]   ;;  %s5449_s19 = smov [#allocation13]  }
  0x17   :  { %s66_s18 = sshll.u32 %s5448_s17, 4  ;;  %s87_s20 = sshll.u32 %s5449_s19, 4  ;;  %s67_s18 = int_to_ptr.vmem [resolvable:$true] %s66_s18  ;;  %s88_s20 = int_to_ptr.vmem [resolvable:$true] %s87_s20 }
  0x18   :  { %s5257_s24 = scalar_lea.hbm %s7425_s4, 32 }
  0x19   :  { %p5258_p8 = scmp.ne.s32.totalorder %s7425_s4, %s5257_s24  ;;  %p5261_p9 = scmp.lt.u32.totalorder %s5257_s24, %s7425_s4 }
  0x1b   :  { %p5263_p10 = pnand %p5261_p9, %p5258_p8 }
  0x1d   :  { %5266 = shalt.err (!%p5263_p10)
}
  0x1e   :  { %s5267_s2 = scalar_lea.vmem %s67_s18, 32  ;;  %p5272_p12 = scmp.lt.s32.totalorder %s67_s18, %s67_s18 }
  0x1f   :  { %p5268_p11 = scmp.ne.s32.totalorder %s67_s18, %s5267_s2  ;;  %p5273_p13 = scmp.lt.s32.totalorder %s5267_s2, %s5267_s2 }
  0x21   :  { %p5274_p0 = por %p5273_p13, %p5272_p12 }
  0x23   :  { %p5275_p1 = pnand %p5274_p0, %p5268_p11 }
  0x25   :  { %5278 = shalt.err (!%p5275_p1)
}
  0x26   :  { %69 = dma.hbm_to_vmem [thread:$0]  %s7425_s4, 32, %s67_s18, [#allocation11]  }
  0x27   :  { %s5279_s16 = scalar_lea.hbm %s7427_s6, 512 }
  0x28   :  { %p5280_p2 = scmp.ne.s32.totalorder %s7427_s6, %s5279_s16  ;;  %p5283_p3 = scmp.lt.u32.totalorder %s5279_s16, %s7427_s6 }
  0x2a   :  { %p5285_p4 = pnand %p5283_p3, %p5280_p2 }
  0x2c   :  { %5288 = shalt.err (!%p5285_p4)
}
  0x2d   :  { %s5289_s24 = scalar_lea.vmem %s88_s20, 512  ;;  %p5294_p6 = scmp.lt.s32.totalorder %s88_s20, %s88_s20 }
  0x2e   :  { %p5290_p5 = scmp.ne.s32.totalorder %s88_s20, %s5289_s24  ;;  %p5295_p7 = scmp.lt.s32.totalorder %s5289_s24, %s5289_s24 }
  0x30   :  { %p5296_p8 = por %p5295_p7, %p5294_p6 }
  0x32   :  { %p5297_p9 = pnand %p5296_p8, %p5290_p5 }
  0x34   :  { %5300 = shalt.err (!%p5297_p9)
}
  0x35   :  { %93 = dma.hbm_to_vmem [thread:$0]  %s7427_s6, 512, %s88_s20, [#allocation14], %s5446_s13, %s5446_s13, %s5447_s14  }
  0x36   :  { %s5450_s25 = smov [#allocation4]   ;;  %s5451_s27 = smov [#allocation9]  }
  0x37   :  { %s32_s26 = sshll.u32 %s5450_s25, 4  ;;  %s53_s28 = sshll.u32 %s5451_s27, 4  ;;  %s33_s26 = int_to_ptr.vmem [resolvable:$true] %s32_s26  ;;  %s54_s28 = int_to_ptr.vmem [resolvable:$true] %s53_s28 }
  0x38   :  { %s5301_s29 = scalar_lea.hbm %s7422_s1, 32 }
  0x39   :  { %p5302_p10 = scmp.ne.s32.totalorder %s7422_s1, %s5301_s29  ;;  %p5305_p11 = scmp.lt.u32.totalorder %s5301_s29, %s7422_s1 }
  0x3b   :  { %p5307_p12 = pnand %p5305_p11, %p5302_p10 }
  0x3d   :  { %5310 = shalt.err (!%p5307_p12)
}
  0x3e   :  { %s5311_s6 = scalar_lea.vmem %s33_s26, 32  ;;  %p5316_p0 = scmp.lt.s32.totalorder %s33_s26, %s33_s26 }
  0x3f   :  { %p5312_p13 = scmp.ne.s32.totalorder %s33_s26, %s5311_s6  ;;  %p5317_p1 = scmp.lt.s32.totalorder %s5311_s6, %s5311_s6 }
  0x41   :  { %p5318_p2 = por %p5317_p1, %p5316_p0 }
  0x43   :  { %p5319_p3 = pnand %p5318_p2, %p5312_p13 }
  0x45   :  { %5322 = shalt.err (!%p5319_p3)
}
  0x46   :  { %35 = dma.hbm_to_vmem [thread:$0]  %s7422_s1, 32, %s33_s26, [#allocation5]  }
  0x47   :  { %s5323_s24 = scalar_lea.hbm %s7424_s3, 4096 }
  0x48   :  { %p5324_p4 = scmp.ne.s32.totalorder %s7424_s3, %s5323_s24  ;;  %p5327_p5 = scmp.lt.u32.totalorder %s5323_s24, %s7424_s3 }
  0x4a   :  { %p5329_p6 = pnand %p5327_p5, %p5324_p4 }
  0x4c   :  { %5332 = shalt.err (!%p5329_p6)
}
  0x4d   :  { %s5333_s2 = scalar_lea.vmem %s54_s28, 4096  ;;  %p5338_p8 = scmp.lt.s32.totalorder %s54_s28, %s54_s28 }
  0x4e   :  { %p5334_p7 = scmp.ne.s32.totalorder %s54_s28, %s5333_s2  ;;  %p5339_p9 = scmp.lt.s32.totalorder %s5333_s2, %s5333_s2 }
  0x50   :  { %p5340_p10 = por %p5339_p9, %p5338_p8 }
  0x52   :  { %p5341_p11 = pnand %p5340_p10, %p5334_p7 }
  0x54   :  { %5344 = shalt.err (!%p5341_p11)
}
  0x55   :  { %s5452_s1 = smov 128   ;;  %s5453_s26 = smov 8  }
  0x56   :  { %59 = dma.hbm_to_vmem [thread:$0]  %s7424_s3, 4096, %s54_s28, [#allocation8], %s5452_s1, %s5452_s1, %s5453_s26  }
  0x57   :  { %s5454_s30 = smov [#allocation12]   ;;  %s5455_s16 = smov [#allocation15]  }
  0x58   :  { %s75_s15 = sshll.u32 %s5454_s30, 4  ;;  %s99_s17 = sshll.u32 %s5455_s16, 4  ;;  %s76_s15 = int_to_ptr.vmem [resolvable:$true] %s75_s15  ;;  %s100_s17 = int_to_ptr.vmem [resolvable:$true] %s99_s17 }
  0x59   :  { %s5345_s19 = scalar_lea.hbm %s7426_s5, 512 }
  0x5a   :  { %p5346_p12 = scmp.ne.s32.totalorder %s7426_s5, %s5345_s19  ;;  %p5349_p13 = scmp.lt.u32.totalorder %s5345_s19, %s7426_s5 }
  0x5c   :  { %p5351_p0 = pnand %p5349_p13, %p5346_p12 }
  0x5e   :  { %5354 = shalt.err (!%p5351_p0)
}
  0x5f   :  { %s5355_s3 = scalar_lea.vmem %s76_s15, 512  ;;  %p5360_p2 = scmp.lt.s32.totalorder %s76_s15, %s76_s15 }
  0x60   :  { %p5356_p1 = scmp.ne.s32.totalorder %s76_s15, %s5355_s3  ;;  %p5361_p3 = scmp.lt.s32.totalorder %s5355_s3, %s5355_s3 }
  0x62   :  { %p5362_p4 = por %p5361_p3, %p5360_p2 }
  0x64   :  { %p5363_p5 = pnand %p5362_p4, %p5356_p1 }
  0x66   :  { %5366 = shalt.err (!%p5363_p5)
}
  0x67   :  { %81 = dma.hbm_to_vmem [thread:$0]  %s7426_s5, 512, %s76_s15, [#allocation11], %s5446_s13, %s5446_s13, %s5447_s14  }
  0x68   :  { %s5367_s2 = scalar_lea.hbm %s7428_s7, 512 }
  0x69   :  { %p5368_p6 = scmp.ne.s32.totalorder %s7428_s7, %s5367_s2  ;;  %p5371_p7 = scmp.lt.u32.totalorder %s5367_s2, %s7428_s7 }
  0x6b   :  { %p5373_p8 = pnand %p5371_p7, %p5368_p6 }
  0x6d   :  { %5376 = shalt.err (!%p5373_p8)
}
  0x6e   :  { %s5377_s30 = scalar_lea.vmem %s100_s17, 512  ;;  %p5382_p10 = scmp.lt.s32.totalorder %s100_s17, %s100_s17 }
  0x6f   :  { %p5378_p9 = scmp.ne.s32.totalorder %s100_s17, %s5377_s30  ;;  %p5383_p11 = scmp.lt.s32.totalorder %s5377_s30, %s5377_s30 }
  0x71   :  { %p5384_p12 = por %p5383_p11, %p5382_p10 }
  0x73   :  { %p5385_p13 = pnand %p5384_p12, %p5378_p9 }
  0x75   :  { %5388 = shalt.err (!%p5385_p13)
}
  0x76   :  { %105 = dma.hbm_to_vmem [thread:$0]  %s7428_s7, 512, %s100_s17, [#allocation14], %s5446_s13, %s5446_s13, %s5447_s14  }
  0x77   :  { %s5456_s16 = smov [#allocation16]   ;;  %s5389_s21 = scalar_lea.hbm %s7429_s8, 512 }
  0x78   :  { %s111_s6 = sshll.u32 %s5456_s16, 4  ;;  %p5390_p0 = scmp.ne.s32.totalorder %s7429_s8, %s5389_s21  ;;  %s112_s6 = int_to_ptr.vmem [resolvable:$true] %s111_s6 }
  0x79   :  { %p5393_p1 = scmp.lt.u32.totalorder %s5389_s21, %s7429_s8 }
  0x7b   :  { %p5395_p2 = pnand %p5393_p1, %p5390_p0 }
  0x7d   :  { %5398 = shalt.err (!%p5395_p2)
}
  0x7e   :  { %s5399_s28 = scalar_lea.vmem %s112_s6, 512  ;;  %p5404_p4 = scmp.lt.s32.totalorder %s112_s6, %s112_s6 }
  0x7f   :  { %p5400_p3 = scmp.ne.s32.totalorder %s112_s6, %s5399_s28  ;;  %p5405_p5 = scmp.lt.s32.totalorder %s5399_s28, %s5399_s28 }
  0x81   :  { %p5406_p6 = por %p5405_p5, %p5404_p4 }
  0x83   :  { %p5407_p7 = pnand %p5406_p6, %p5400_p3 }
  0x85   :  { %5410 = shalt.err (!%p5407_p7)
}
  0x86   :  { %117 = dma.hbm_to_vmem [thread:$0]  %s7429_s8, 512, %s112_s6, [#allocation17], %s5446_s13, %s5446_s13, %s5447_s14  }
  0x87   :  { %5433 = dma.done.wait [#allocation5], 32  }
  0x88   :  { %5434 = vsyncadd [#allocation5], 4294967264 }
  0x89   :  { %5435 = dma.done.wait [#allocation8], 8192  }
  0x8a   :  { %5436 = vsyncadd [#allocation8], 4294959104 }
  0x8b   :  { %5437 = dma.done.wait [#allocation11], 544  }
  0x8c   :  { %5438 = vsyncadd [#allocation11], 4294966752 }
  0x8d   :  { %5439 = dma.done.wait [#allocation14], 1024  }
  0x8e   :  { %5440 = vsyncadd [#allocation14], 4294966272 }
  0x8f   :  { %5441 = dma.done.wait [#allocation17], 512  }
  0x90   :  { %5442 = vsyncadd [#allocation17], 4294966784  ;;  %v5457_v0 = vmov 1.0   ;;  %s5458_s18 = smov 1   ;;  %v5459_v1 = vmov 0.0   ;;  %s5460_s8 = smov 127  }
  0x91   :  { %492 = vrot.lane.b32.xlu1 %v5457_v0, %s5458_s18  ;;  %440 = vrot.lane.b32.xlu0 %v5457_v0, %s5447_s14  ;;  %149 = vst [vmem:[#allocation2] sm:$0xff] %v5459_v1  ;;  %150 = vst [vmem:[#allocation2 + $0x8] sm:$0xff] %v5459_v1  ;;  %s5461_s13 = smov 15   ;;  %v203_v2 = vld [vmem:[#allocation9 + $0x80] sm:$0xff]  ;;  %v204_v3 = vld [vmem:[#allocation9 + $0x88] sm:$0xff]  ;;  %s5462_s25 = smov 112  }
  0x92   :  { %151 = vst [vmem:[#allocation2 + $0x10] sm:$0xff] %v5459_v1  ;;  %152 = vst [vmem:[#allocation2 + $0x18] sm:$0xff] %v5459_v1  ;;  %283 = vmatprep.mubr.f32.mxu0 %v5457_v0  ;;  %389 = vmatprep.mubr.f32.mxu1 %v5459_v1  ;;  %v187_v4 = vld [vmem:[#allocation9] sm:$0xff]  ;;  %v4667_v5 = vpack.c.bf16 %v204_v3, %v203_v2  ;;  %v188_v6 = vld [vmem:[#allocation9 + $0x8] sm:$0xff]  ;;  %s5463_s27 = smov 113   ;;  %s5464_s2 = smov 17  }
  0x93   :  { %153 = vst [vmem:[#allocation2 + $0x20] sm:$0xff] %v5459_v1  ;;  %154 = vst [vmem:[#allocation2 + $0x28] sm:$0xff] %v5459_v1  ;;  %v205_v7 = vld [vmem:[#allocation9 + $0x90] sm:$0xff]  ;;  %v206_v8 = vld [vmem:[#allocation9 + $0x98] sm:$0xff]  ;;  %v4669_v9 = vpack.c.bf16 %v188_v6, %v187_v4  ;;  %s5465_s1 = smov 111   ;;  %vm662_vm0 = vcmask 130048  }
  0x94   :  { %518 = vst [vmem:[#allocation2 + $0x10] sm:$0x3] %v5457_v0  ;;  %519 = vst [vmem:[#allocation2 + $0x18] sm:$0x3] %v5457_v0  ;;  %v4671_v10 = vpack.c.bf16 %v206_v8, %v205_v7  ;;  %v189_v11 = vld [vmem:[#allocation9 + $0x10] sm:$0xff]  ;;  %v190_v12 = vld [vmem:[#allocation9 + $0x18] sm:$0xff]  ;;  %4668 = vmatprep.subr.bf16.mxu0 %v4667_v5 }
  0x95   :  { %520 = vrot.lane.b32.xlu1 %v5457_v0, %s5460_s8  ;;  %466 = vrot.lane.b32.xlu0 %v5457_v0, %s5461_s13  ;;  %v207_v13 = vld [vmem:[#allocation9 + $0xa0] sm:$0xff]  ;;  %v208_v14 = vld [vmem:[#allocation9 + $0xa8] sm:$0xff]  ;;  %v4673_v15 = vpack.c.bf16 %v190_v12, %v189_v11  ;;  %v209_v19 = vld [vmem:[#allocation9 + $0xb0] sm:$0xff]  ;;  %v397_v12 = vlaneseq }
  0x96   :  { %4670 = vmatpush3.bf16.msra.mxu0 %v4669_v9  ;;  %v4675_v16 = vpack.c.bf16 %v208_v14, %v207_v13  ;;  %v191_v17 = vld [vmem:[#allocation9 + $0x20] sm:$0xff]  ;;  %v192_v18 = vld [vmem:[#allocation9 + $0x28] sm:$0xff]  ;;  %v210_v20 = vld [vmem:[#allocation9 + $0xb8] sm:$0xff] }
  0x97   :  { %4672 = vmatprep.subr.bf16.mxu0 %v4671_v10  ;;  %v4677_v21 = vpack.c.bf16 %v192_v18, %v191_v17  ;;  %v4679_v22 = vpack.c.bf16 %v210_v20, %v209_v19  ;;  %v193_v23 = vld [vmem:[#allocation9 + $0x30] sm:$0xff]  ;;  %v194_v24 = vld [vmem:[#allocation9 + $0x38] sm:$0xff]  ;;  %v211_v25 = vld [vmem:[#allocation9 + $0xc0] sm:$0xff]  ;;  %v398_v13 = vshrl.u32 %v397_v12, 7 }
  0x98   :  { %v212_v26 = vld [vmem:[#allocation9 + $0xc8] sm:$0xff]  ;;  %v4681_v27 = vpack.c.bf16 %v194_v24, %v193_v23  ;;  %v195_v29 = vld [vmem:[#allocation9 + $0x40] sm:$0xff]  ;;  %v213_v31 = vld [vmem:[#allocation9 + $0xd0] sm:$0xff] }
  0x99   :  { %572 = vrot.lane.b32.xlu1 %v5457_v0, %s5462_s25  ;;  %546 = vrot.lane.b32.xlu0 %v5457_v0, %s5463_s27  ;;  %v4683_v28 = vpack.c.bf16 %v212_v26, %v211_v25  ;;  %v196_v30 = vld [vmem:[#allocation9 + $0x48] sm:$0xff]  ;;  %v214_v32 = vld [vmem:[#allocation9 + $0xd8] sm:$0xff]  ;;  %v197_v35 = vld [vmem:[#allocation9 + $0x50] sm:$0xff]  ;;  %v5673_v14 = vsub.s32 0, %v398_v13 }
  0x9a   :  { %4674 = vmatpush3.bf16.msra.mxu0 %v4673_v15  ;;  %v4685_v33 = vpack.c.bf16 %v196_v30, %v195_v29  ;;  %v4687_v34 = vpack.c.bf16 %v214_v32, %v213_v31  ;;  %v198_v36 = vld [vmem:[#allocation9 + $0x58] sm:$0xff]  ;;  %v215_v37 = vld [vmem:[#allocation9 + $0xe0] sm:$0xff]  ;;  %v216_v38 = vld [vmem:[#allocation9 + $0xe8] sm:$0xff]  ;;  %v5675_v15 = vsub.s32 1, %v398_v13 }
  0x9b   :  { %4676 = vmatprep.subr.bf16.mxu0 %v4675_v16  ;;  %v4689_v39 = vpack.c.bf16 %v198_v36, %v197_v35  ;;  %v4691_v40 = vpack.c.bf16 %v216_v38, %v215_v37  ;;  %v199_v41 = vld [vmem:[#allocation9 + $0x60] sm:$0xff]  ;;  %v200_v42 = vld [vmem:[#allocation9 + $0x68] sm:$0xff]  ;;  %v217_v43 = vld [vmem:[#allocation9 + $0xf0] sm:$0xff] }
  0x9c   :  { %v218_v44 = vld [vmem:[#allocation9 + $0xf8] sm:$0xff]  ;;  %v4693_v45 = vpack.c.bf16 %v200_v42, %v199_v41  ;;  %v201_v47 = vld [vmem:[#allocation9 + $0x70] sm:$0xff]  ;;  %v294_v51 = vld [vmem:[#allocation7 + $0x8] sm:$0xff] }
  0x9d   :  { %419 = vrot.lane.b32.xlu0 %v5457_v0, %s5464_s2  ;;  %598 = vrot.lane.b32.xlu1 %v5457_v0, %s5465_s1  ;;  %v4695_v46 = vpack.c.bf16 %v218_v44, %v217_v43  ;;  %v202_v48 = vld [vmem:[#allocation9 + $0x78] sm:$0xff]  ;;  %v619_v50 = vld [vmem:[#allocation13 + $0x8] sm:$0xff]  ;;  %v293_v53 = vld [vmem:[#allocation7] sm:$0xff] }
  0x9e   :  { %4678 = vmatpush3.bf16.msra.mxu0 %v4677_v21  ;;  %v4697_v49 = vpack.c.bf16 %v202_v48, %v201_v47  ;;  %v296_v52 = vld [vmem:[#allocation7 + $0x18] sm:$0xff]  ;;  %v295_v55 = vld [vmem:[#allocation7 + $0x10] sm:$0xff]  ;;  %v298_v56 = vld [vmem:[#allocation7 + $0x28] sm:$0xff] }
  0x9f   :  { %4680 = vmatprep.subr.bf16.mxu0 %v4679_v22  ;;  %v4699_v54 = vpack.c.bf16 %v296_v52, %v294_v51  ;;  %v300_v57 = vld [vmem:[#allocation7 + $0x38] sm:$0xff]  ;;  %v4701_v58 = vpack.c.bf16 %v295_v55, %v293_v53  ;;  %v297_v60 = vld [vmem:[#allocation7 + $0x20] sm:$0xff]  ;;  %v299_v61 = vld [vmem:[#allocation7 + $0x30] sm:$0xff] }
  0xa0   :  { %v4703_v59 = vpack.c.bf16 %v300_v57, %v298_v56  ;;  %v302_v62 = vld [vmem:[#allocation7 + $0x48] sm:$0xff]  ;;  %v304_v63 = vld [vmem:[#allocation7 + $0x58] sm:$0xff]  ;;  %v301_v3 = vld [vmem:[#allocation7 + $0x40] sm:$0xff] }
  0xa1   :  { %4700 = vmatprep.subr.bf16.mxu1 %v4699_v54  ;;  %v4707_v2 = vpack.c.bf16 %v304_v63, %v302_v62  ;;  %v303_v4 = vld [vmem:[#allocation7 + $0x50] sm:$0xff]  ;;  %v306_v5 = vld [vmem:[#allocation7 + $0x68] sm:$0xff]  ;;  %v308_v6 = vld [vmem:[#allocation7 + $0x78] sm:$0xff] }
  0xa2   :  { %4682 = vmatpush3.bf16.msra.mxu0 %v4681_v27  ;;  %4702 = vmatpush1.bf16.msra.mxu1 %v4701_v58  ;;  %v4709_v7 = vpack.c.bf16 %v303_v4, %v301_v3  ;;  %v4711_v8 = vpack.c.bf16 %v308_v6, %v306_v5  ;;  %v305_v9 = vld [vmem:[#allocation7 + $0x60] sm:$0xff]  ;;  %v307_v10 = vld [vmem:[#allocation7 + $0x70] sm:$0xff] }
  0xa3   :  { %4684 = vmatprep.subr.bf16.mxu0 %v4683_v28  ;;  %4704 = vmatprep.subr.bf16.mxu1 %v4703_v59  ;;  %v4713_v11 = vpack.c.bf16 %v307_v10, %v305_v9  ;;  %v496_v16 = vld [vmem:[#allocation12 + $0x3] ss:$8 sm:$0x3]  ;;  %v444_v17 = vld [vmem:[#allocation12 + $0x1] ss:$8 sm:$0x3] }
  0xa4   :  { %v501_v18 = vrot.slane %v496_v16, %v5673_v14  ;;  %v505_v19 = vrot.slane %v496_v16, %v5675_v15  ;;  %v449_v20 = vrot.slane %v444_v17, %v5673_v14  ;;  %v453_v21 = vrot.slane %v444_v17, %v5675_v15  ;;  %v524_v22 = vld [vmem:[#allocation12 + $0x5] ss:$8 sm:$0x3]  ;;  %v470_v23 = vld [vmem:[#allocation12 + $0x2] ss:$8 sm:$0x3] }
  0xa5   :  { %v529_v26 = vrot.slane %v524_v22, %v5673_v14  ;;  %v533_v27 = vrot.slane %v524_v22, %v5675_v15  ;;  %v475_v28 = vrot.slane %v470_v23, %v5673_v14  ;;  %v479_v29 = vrot.slane %v470_v23, %v5675_v15  ;;  %v550_v35 = vld [vmem:[#allocation12 + $0x6] ss:$8 sm:$0x3]  ;;  %v602_v51 = vld [vmem:[#allocation12 + $0x10] ss:$8 sm:$0x3] }
  0xa6   :  { %4686 = vmatpush3.bf16.msra.mxu0 %v4685_v33  ;;  %v555_v44 = vrot.slane %v550_v35, %v5673_v14  ;;  %v310_v16 = vld [vmem:[#allocation7 + $0x88] sm:$0xff]  ;;  %v312_v17 = vld [vmem:[#allocation7 + $0x98] sm:$0xff] }
  0xa7   :  { %4688 = vmatprep.subr.bf16.mxu0 %v4687_v34  ;;  %v576_v34 = vld [vmem:[#allocation12 + $0x7] ss:$8 sm:$0x3]  ;;  %v316_v22 = vld [vmem:[#allocation7 + $0xb8] sm:$0xff] }
  0xa8   :  { %v581_v42 = vrot.slane %v576_v34, %v5673_v14  ;;  %v585_v43 = vrot.slane %v576_v34, %v5675_v15  ;;  %v324_v34 = vld [vmem:[#allocation7 + $0xf8] sm:$0xff] }
  0xaa   :  { %4690 = vmatpush3.bf16.msra.mxu0 %v4689_v39 }
  0xab   :  { %4692 = vmatprep.subr.bf16.mxu0 %v4691_v40 }
  0xae   :  { %4694 = vmatpush3.bf16.msra.mxu0 %v4693_v45  ;;  %v559_v45 = vrot.slane %v550_v35, %v5675_v15 }
  0xaf   :  { %4696 = vmatprep.subr.bf16.mxu0 %v4695_v46 }
  0xb2   :  { %4698 = vmatpush3.bf16.msra.mxu0 %v4697_v49 }
  0xb5   :  { %284 = vmatmul.mubr.f32.vlgmr.msra.gmra.mrb[0].mxu0 %v5457_v0  ;;  %v4705_v0 = vpack.c.bf16 %v299_v61, %v297_v60  ;;  %v607_v60 = vrot.slane %v602_v51, %v5673_v14  ;;  %v611_v61 = vrot.slane %v602_v51, %v5675_v15  ;;  %v618_v51 = vld [vmem:[#allocation13] sm:$0xff] }
  0xb6   :  { %4534 = vmatprep.mubr.msk.f32.mxu0 %vm662_vm0, %v619_v50  ;;  %v424_v50 = vld [vmem:[#allocation12] ss:$8 sm:$0x3] }
  0xb7   :  { %4706 = vmatpush1.bf16.msra.mxu1 %v4705_v0  ;;  %v429_v58 = vrot.slane %v424_v50, %v5673_v14  ;;  %v433_v59 = vrot.slane %v424_v50, %v5675_v15  ;;  %v5466_v50 = vmov 0.0|0.0  }
  0xb8   :  { %4708 = vmatprep.subr.bf16.mxu1 %v4707_v2 }
  0xbb   :  { %4710 = vmatpush1.bf16.msra.mxu1 %v4709_v7 }
  0xbc   :  { %4712 = vmatprep.subr.bf16.mxu1 %v4711_v8 }
  0xbf   :  { %4714 = vmatpush1.bf16.msra.mxu1 %v4713_v11 }
 0x103   :  { %v493_v24 = vpop.permute.xlu1 %492  ;;  %v441_v25 = vpop.permute.xlu0 %440 }
 0x104   :  { %v508_v30 = vmul.f32 %v501_v18, %v493_v24  ;;  %v509_v31 = vmul.f32 %v505_v19, %v493_v24  ;;  %v456_v32 = vmul.f32 %v449_v20, %v441_v25  ;;  %v457_v33 = vmul.f32 %v453_v21, %v441_v25  ;;  %v309_v18 = vld [vmem:[#allocation7 + $0x80] sm:$0xff]  ;;  %v311_v20 = vld [vmem:[#allocation7 + $0x90] sm:$0xff]  ;;  %v314_v21 = vld [vmem:[#allocation7 + $0xa8] sm:$0xff] }
 0x105   :  { %v4715_v19 = vpack.c.bf16 %v312_v17, %v310_v16  ;;  %v4717_v23 = vpack.c.bf16 %v311_v20, %v309_v18  ;;  %v4719_v24 = vpack.c.bf16 %v316_v22, %v314_v21  ;;  %v313_v25 = vld [vmem:[#allocation7 + $0xa0] sm:$0xff]  ;;  %v1011_v18 = vld [vmem:[#allocation16 + $0x8] sm:$0xff] }
 0x106   :  { %v512_v36 = vrot.slane %v508_v30, 2  ;;  %v513_v37 = vrot.slane %v509_v31, 2  ;;  %v460_v38 = vrot.slane %v456_v32, 6  ;;  %v461_v39 = vrot.slane %v457_v33, 6  ;;  %v317_v31 = vld [vmem:[#allocation7 + $0xc0] sm:$0xff]  ;;  %v319_v32 = vld [vmem:[#allocation7 + $0xd0] sm:$0xff] }
 0x107   :  { %v521_v40 = vpop.permute.xlu1 %520  ;;  %v467_v41 = vpop.permute.xlu0 %466  ;;  %4716 = vmatprep.subr.bf16.mxu1 %v4715_v19  ;;  %v322_v33 = vld [vmem:[#allocation7 + $0xe8] sm:$0xff] }
 0x108   :  { %516 = vst [vmem:[#allocation2] sm:$0xc0] %v512_v36  ;;  %517 = vst [vmem:[#allocation2 + $0x8] sm:$0xc0] %v513_v37  ;;  %v536_v46 = vmul.f32 %v529_v26, %v521_v40  ;;  %v537_v47 = vmul.f32 %v533_v27, %v521_v40  ;;  %v482_v48 = vmul.f32 %v475_v28, %v467_v41  ;;  %v315_v26 = vld [vmem:[#allocation7 + $0xb0] sm:$0xff]  ;;  %v318_v27 = vld [vmem:[#allocation7 + $0xc8] sm:$0xff]  ;;  %4718 = vmatpush1.bf16.msra.mxu1 %v4717_v23 }
 0x109   :  { %464 = vst [vmem:[#allocation2] sm:$0xc] %v460_v38  ;;  %465 = vst [vmem:[#allocation2 + $0x8] sm:$0xc] %v461_v39  ;;  %v483_v49 = vmul.f32 %v479_v29, %v467_v41  ;;  %v320_v28 = vld [vmem:[#allocation7 + $0xd8] sm:$0xff]  ;;  %v4721_v29 = vpack.c.bf16 %v315_v26, %v313_v25  ;;  %4720 = vmatprep.subr.bf16.mxu1 %v4719_v24  ;;  %v4725_v40 = vpack.c.bf16 %v319_v32, %v317_v31 }
 0x10a   :  { %v540_v52 = vrot.slane %v536_v46, 6  ;;  %v541_v53 = vrot.slane %v537_v47, 6  ;;  %v486_v54 = vrot.slane %v482_v48, 4  ;;  %v4723_v30 = vpack.c.bf16 %v320_v28, %v318_v27  ;;  %v321_v46 = vld [vmem:[#allocation7 + $0xe0] sm:$0xff]  ;;  %v323_v47 = vld [vmem:[#allocation7 + $0xf0] sm:$0xff] }
 0x10b   :  { %v487_v55 = vrot.slane %v483_v49, 4  ;;  %v573_v56 = vpop.permute.xlu1 %572  ;;  %v547_v57 = vpop.permute.xlu0 %546  ;;  %v4729_v49 = vpack.c.bf16 %v323_v47, %v321_v46 }
 0x10c   :  { %544 = vst [vmem:[#allocation2 + $0x10] sm:$0xc] %v540_v52  ;;  %545 = vst [vmem:[#allocation2 + $0x18] sm:$0xc] %v541_v53  ;;  %v588_v62 = vmul.f32 %v581_v42, %v573_v56  ;;  %v589_v63 = vmul.f32 %v585_v43, %v573_v56  ;;  %v562_v0 = vmul.f32 %v555_v44, %v547_v57  ;;  %4722 = vmatpush1.bf16.msra.mxu1 %v4721_v29  ;;  %v621_v52 = vld [vmem:[#allocation13 + $0x18] sm:$0xff]  ;;  %v620_v53 = vld [vmem:[#allocation13 + $0x10] sm:$0xff] }
 0x10d   :  { %490 = vst [vmem:[#allocation2] sm:$0x30] %v486_v54  ;;  %491 = vst [vmem:[#allocation2 + $0x8] sm:$0x30] %v487_v55  ;;  %v563_v2 = vmul.f32 %v559_v45, %v547_v57  ;;  %4724 = vmatprep.subr.bf16.mxu1 %v4723_v30  ;;  %v4727_v45 = vpack.c.bf16 %v324_v34, %v322_v33  ;;  %v186_v57 = vld [vmem:[#allocation4] sm:$0x3] }
 0x10e   :  { %v592_v3 = vrot.slane %v588_v62, 2  ;;  %v593_v4 = vrot.slane %v589_v63, 2  ;;  %v566_v5 = vrot.slane %v562_v0, 4  ;;  %v659_v63 = vld [vmem:[#allocation15 + $0x8] sm:$0xff]  ;;  %v5792_v34 = vand.u32 127, %v397_v12 }
 0x10f   :  { %v567_v6 = vrot.slane %v563_v2, 4  ;;  %v420_v7 = vpop.permute.xlu0 %419  ;;  %v599_v8 = vpop.permute.xlu1 %598  ;;  %v660_v2 = vld [vmem:[#allocation15 + $0x10] sm:$0xff] }
 0x110   :  { %596 = vst [vmem:[#allocation2 + $0x10] sm:$0xc0] %v592_v3  ;;  %597 = vst [vmem:[#allocation2 + $0x18] sm:$0xc0] %v593_v4  ;;  %v436_v9 = vmul.f32 %v429_v58, %v420_v7  ;;  %v437_v10 = vmul.f32 %v433_v59, %v420_v7  ;;  %v614_v11 = vmul.f32 %v607_v60, %v599_v8  ;;  %4726 = vmatpush1.bf16.msra.mxu1 %v4725_v40  ;;  %v658_v60 = vld [vmem:[#allocation15] sm:$0xff]  ;;  %v661_v4 = vld [vmem:[#allocation15 + $0x18] sm:$0xff] }
 0x111   :  { %570 = vst [vmem:[#allocation2 + $0x10] sm:$0x30] %v566_v5  ;;  %571 = vst [vmem:[#allocation2 + $0x18] sm:$0x30] %v567_v6  ;;  %v615_v13 = vmul.f32 %v611_v61, %v599_v8  ;;  %4728 = vmatprep.subr.bf16.mxu1 %v4727_v45  ;;  %vm7435_vm2 = vcmp.lt.s32.totalorder %v5792_v34, 17  ;;  %vm442_vm3 = vcmp.lt.s32.totalorder %v5792_v34, 16 }
 0x112   :  { %438 = vst [vmem:[#allocation2] sm:$0x3] %v436_v9  ;;  %439 = vst [vmem:[#allocation2 + $0x8] sm:$0x3] %v437_v10  ;;  %vm468_vm4 = vcmp.lt.s32.totalorder %v5792_v34, 15  ;;  %vm494_vm5 = vcmp.lt.s32.totalorder %v5792_v34, 1 }
 0x113   :  { %616 = vst [vmem:[#allocation2 + $0x20] sm:$0x3] %v614_v11  ;;  %617 = vst [vmem:[#allocation2 + $0x28] sm:$0x3] %v615_v13  ;;  %vm7438_vm6 = vcmp.lt.s32.totalorder %v5792_v34, 127  ;;  %vm7437_vm7 = vcmp.lt.s32.totalorder %v5792_v34, 113 }
 0x114   :  { %4730 = vmatpush1.bf16.msra.mxu1 %v4729_v49  ;;  %v794_v40 = vld [vmem:[#allocation12 + $0x1] ss:$8 sm:$0x3]  ;;  %vm7436_vm8 = vcmp.lt.s32.totalorder %v5792_v34, 112  ;;  %vm7434_vm9 = vcmp.lt.s32.totalorder %v5792_v34, 111 }
 0x115   :  { %v799_v46 = vrot.slane %v794_v40, %v5673_v14  ;;  %v803_v47 = vrot.slane %v794_v40, %v5675_v15 }
 0x118   :  { %v625_v35 = vld [vmem:[#allocation2 + $0x18] sm:$0xff]  ;;  %v624_v36 = vld [vmem:[#allocation2 + $0x10] sm:$0xff] }
 0x119   :  { %v623_v37 = vld [vmem:[#allocation2 + $0x8] sm:$0xff]  ;;  %v622_v38 = vld [vmem:[#allocation2] sm:$0xff] }
 0x11a   :  { %v627_v39 = vld [vmem:[#allocation2 + $0x28] sm:$0xff]  ;;  %v4731_v41 = vpack.c.bf16 %v625_v35, %v623_v37  ;;  %v4733_v42 = vpack.c.bf16 %v624_v36, %v622_v38  ;;  %v626_v44 = vld [vmem:[#allocation2 + $0x20] sm:$0xff] }
 0x11b   :  { %v4735_v43 = vpack.c.bf16 %v5459_v1, %v627_v39  ;;  %v4737_v48 = vpack.c.bf16 %v5459_v1, %v626_v44  ;;  %v762_v35 = vld [vmem:[#allocation12] ss:$8 sm:$0x3] }
 0x11c   :  { %4732 = vmatprep.subr.bf16.mxu0 %v4731_v41  ;;  %v767_v38 = vrot.slane %v762_v35, %v5673_v14  ;;  %v771_v39 = vrot.slane %v762_v35, %v5675_v15 }
 0x11d   :  { %4734 = vmatpush1.bf16.msra.mxu0 %v4733_v42 }
 0x11e   :  { %4736 = vmatprep.subr.bf16.mxu0 %v4735_v43 }
 0x121   :  { %4738 = vmatpush1.bf16.msra.mxu0 %v4737_v48 }
 0x122   :  { %4740 = vmatprep.subr.bf16.mxu0 %v5466_v50 }
 0x125   :  { %4742 = vmatpush1.bf16.msra.mxu0 %v5466_v50 }
 0x126   :  { %4744 = vmatprep.subr.bf16.mxu0 %v5466_v50 }
 0x129   :  { %4746 = vmatpush1.bf16.msra.mxu0 %v5466_v50 }
 0x12a   :  { %4748 = vmatprep.subr.bf16.mxu0 %v5466_v50 }
 0x12d   :  { %4750 = vmatpush1.bf16.msra.mxu0 %v5466_v50 }
 0x12e   :  { %4752 = vmatprep.subr.bf16.mxu0 %v5466_v50 }
 0x131   :  { %4754 = vmatpush1.bf16.msra.mxu0 %v5466_v50 }
 0x132   :  { %4756 = vmatprep.subr.bf16.mxu0 %v5466_v50 }
 0x135   :  { %4758 = vmatpush1.bf16.msra.mxu0 %v5466_v50 }
 0x136   :  { %4760 = vmatprep.subr.bf16.mxu0 %v5466_v50 }
 0x139   :  { %4762 = vmatpush1.bf16.msra.mxu0 %v5466_v50 }
 0x13a   :  { %4764 = vmatprep.subr.bf16.mxu0 %v5466_v50 }
 0x13d   :  { %4766 = vmatpush1.bf16.msra.mxu0 %v5466_v50 }
 0x140   :  { %734 = vmatmul.mubr.f32.vlgmr.msra.gmra.mrb[2].mxu0 %v618_v51 }
 0x141   :  { %4535 = vmatprep.mubr.msk.f32.mxu0 %vm662_vm0, %v621_v52  ;;  %v826_v52 = vld [vmem:[#allocation12 + $0x2] ss:$8 sm:$0x3] }
 0x144   :  { %740 = vmatmul.mubr.f32.gmra.mrb[4].mxu0 %v620_v53 }
 0x188   :  { %v4594_v54 = vpop.f32.mrb[0].mxu0 }
 0x189   :  { %v4595_v55 = vpop.f32.mrb[1].mxu0 }
 0x18a   :  { %v4596_v56 = vadd.f32 %v4595_v55, %v4594_v54 }
 0x18c   :  { %5205 = vrcp.f32 %v4596_v56  ;;  %vm289_vm1 = vcmp.gt.f32.partialorder %v4596_v56, 0.0 }
 0x196   :  { %v5206_v58 = vpop.eup %5205 }
 0x197   :  { %v291_v59 = vmul.f32 %v5206_v58, %v186_v57 }
 0x199   :  { %4533 = vmatmul.mubr.msk.f32.vlgmr.msra.gmra.mrb[0].mxu1 %vm289_vm1, %v291_v59 }
 0x19a   :  { %4536 = vmatprep.mubr.msk.f32.mxu1 %vm662_vm0, %v1011_v18 }
 0x213   :  { %v735_v61 = vpop.f32.mrb[2].mxu0 }
 0x214   :  { %v736_v62 = vadd.f32 %v735_v61, %v658_v60  ;;  %v737_v0 = vpop.f32.mrb[3].mxu0  ;;  %v831_v61 = vrot.slane %v826_v52, %v5673_v14 }
 0x215   :  { %v738_v5 = vadd.f32 %v737_v0, %v659_v63 }
 0x216   :  { %v5696_v3 = vmax.f32 %v736_v62, 0.0  ;;  %v835_v62 = vrot.slane %v826_v52, %v5675_v15 }
 0x217   :  { %v741_v6 = vpop.f32.mrb[4].mxu0  ;;  %v5702_v11 = vmax.f32 %v738_v5, 0.0  ;;  %v858_v5 = vld [vmem:[#allocation12 + $0x3] ss:$8 sm:$0x3] }
 0x218   :  { %v742_v7 = vadd.f32 %v741_v6, %v660_v2  ;;  %v743_v8 = vpop.f32.mrb[5].mxu0  ;;  %750 = vrot.lane.b32.xlu0 %v5696_v3, %s5464_s2  ;;  %v867_v35 = vrot.slane %v858_v5, %v5675_v15 }
 0x219   :  { %v744_v9 = vadd.f32 %v743_v8, %v661_v4 }
 0x21a   :  { %v5700_v10 = vmax.f32 %v742_v7, 0.0 }
 0x21b   :  { %v5704_v13 = vmax.f32 %v744_v9, 0.0 }
 0x21c   :  { %752 = vrot.lane.b32.xlu1 %v5700_v10, %s5464_s2  ;;  %782 = vrot.lane.b32.xlu0 %v5696_v3, %s5447_s14  ;;  %v4785_v16 = vpack.c.bf16 %v5700_v10, %v5696_v3 }
 0x21d   :  { %v4783_v17 = vpack.c.bf16 %v5704_v13, %v5702_v11 }
 0x220   :  { %784 = vrot.lane.b32.xlu1 %v5700_v10, %s5447_s14  ;;  %814 = vrot.lane.b32.xlu0 %v5696_v3, %s5461_s13 }
 0x224   :  { %816 = vrot.lane.b32.xlu1 %v5700_v10, %s5461_s13  ;;  %846 = vrot.lane.b32.xlu0 %v5696_v3, %s5458_s18 }
 0x228   :  { %848 = vrot.lane.b32.xlu1 %v5700_v10, %s5458_s18  ;;  %882 = vrot.lane.b32.xlu0 %v5696_v3, %s5460_s8 }
 0x22c   :  { %884 = vrot.lane.b32.xlu1 %v5700_v10, %s5460_s8  ;;  %914 = vrot.lane.b32.xlu0 %v5696_v3, %s5463_s27 }
 0x230   :  { %916 = vrot.lane.b32.xlu1 %v5700_v10, %s5463_s27  ;;  %946 = vrot.lane.b32.xlu0 %v5696_v3, %s5462_s25 }
 0x234   :  { %948 = vrot.lane.b32.xlu1 %v5700_v10, %s5462_s25  ;;  %754 = vrot.lane.b32.xlu0 %v5702_v11, %s5464_s2 }
 0x238   :  { %756 = vrot.lane.b32.xlu1 %v5704_v13, %s5464_s2  ;;  %786 = vrot.lane.b32.xlu0 %v5702_v11, %s5447_s14 }
 0x23c   :  { %788 = vrot.lane.b32.xlu1 %v5704_v13, %s5447_s14  ;;  %818 = vrot.lane.b32.xlu0 %v5702_v11, %s5461_s13 }
 0x240   :  { %820 = vrot.lane.b32.xlu1 %v5704_v13, %s5461_s13  ;;  %850 = vrot.lane.b32.xlu0 %v5702_v11, %s5458_s18 }
 0x244   :  { %852 = vrot.lane.b32.xlu1 %v5704_v13, %s5458_s18  ;;  %978 = vrot.lane.b32.xlu0 %v5696_v3, %s5465_s1 }
 0x248   :  { %980 = vrot.lane.b32.xlu1 %v5700_v10, %s5465_s1  ;;  %886 = vrot.lane.b32.xlu0 %v5702_v11, %s5460_s8 }
 0x24c   :  { %888 = vrot.lane.b32.xlu1 %v5704_v13, %s5460_s8  ;;  %918 = vrot.lane.b32.xlu0 %v5702_v11, %s5463_s27 }
 0x250   :  { %920 = vrot.lane.b32.xlu1 %v5704_v13, %s5463_s27  ;;  %950 = vrot.lane.b32.xlu0 %v5702_v11, %s5462_s25 }
 0x254   :  { %952 = vrot.lane.b32.xlu1 %v5704_v13, %s5462_s25  ;;  %982 = vrot.lane.b32.xlu0 %v5702_v11, %s5465_s1 }
 0x258   :  { %984 = vrot.lane.b32.xlu1 %v5704_v13, %s5465_s1 }
 0x26c   :  { %v5773_v19 = vpop.f32.mrb[0].mxu1 }
 0x26d   :  { %v5775_v20 = vpop.f32.mrb[1].mxu1 }
 0x28a   :  { %v751_v21 = vpop.permute.xlu0 %750 }
 0x28e   :  { %v753_v22 = vpop.permute.xlu1 %752  ;;  %v783_v23 = vpop.permute.xlu0 %782 }
 0x292   :  { %v785_v24 = vpop.permute.xlu1 %784  ;;  %v815_v25 = vpop.permute.xlu0 %814 }
 0x296   :  { %v817_v26 = vpop.permute.xlu1 %816  ;;  %v5777_v27 = vpop.permute.xlu0 %846 }
 0x29a   :  { %v5779_v28 = vpop.permute.xlu1 %848  ;;  %v5781_v29 = vpop.permute.xlu0 %882 }
 0x29e   :  { %v5783_v30 = vpop.permute.xlu1 %884  ;;  %v5785_v31 = vpop.permute.xlu0 %914 }
 0x2a2   :  { %v5787_v32 = vpop.permute.xlu1 %916  ;;  %v5789_v33 = vpop.permute.xlu0 %946 }
 0x2a6   :  { %v5794_v36 = vpop.permute.xlu1 %948  ;;  %v755_v37 = vpop.permute.xlu0 %754 }
 0x2a7   :  { %v758_v41 = vsel %vm7435_vm2, %v751_v21, %v755_v37  ;;  %v760_v42 = vsel %vm7435_vm2, %v755_v37, %v751_v21 }
 0x2a8   :  { %v774_v48 = vmul.f32 %v767_v38, %v760_v42  ;;  %v775_v49 = vmul.f32 %v771_v39, %v758_v41 }
 0x2aa   :  { %v757_v43 = vpop.permute.xlu1 %756  ;;  %v787_v12 = vpop.permute.xlu0 %786 }
 0x2ab   :  { %v759_v44 = vsel %vm7435_vm2, %v753_v22, %v757_v43  ;;  %v761_v45 = vsel %vm7435_vm2, %v757_v43, %v753_v22  ;;  %v790_v53 = vsel %vm442_vm3, %v783_v23, %v787_v12  ;;  %v792_v54 = vsel %vm442_vm3, %v787_v12, %v783_v23 }
 0x2ac   :  { %v776_v50 = vmul.f32 %v767_v38, %v761_v45  ;;  %v777_v51 = vmul.f32 %v771_v39, %v759_v44  ;;  %v806_v63 = vmul.f32 %v799_v46, %v792_v54  ;;  %v807_v0 = vmul.f32 %v803_v47, %v790_v53 }
 0x2ae   :  { %v789_v55 = vpop.permute.xlu1 %788  ;;  %v819_v56 = vpop.permute.xlu0 %818  ;;  %v4767_v57 = vpack.c.bf16 %v777_v51, %v775_v49  ;;  %v4769_v58 = vpack.c.bf16 %v776_v50, %v774_v48 }
 0x2af   :  { %v791_v59 = vsel %vm442_vm3, %v785_v24, %v789_v55  ;;  %v793_v60 = vsel %vm442_vm3, %v789_v55, %v785_v24  ;;  %v822_v6 = vsel %vm468_vm4, %v815_v25, %v819_v56  ;;  %v824_v7 = vsel %vm468_vm4, %v819_v56, %v815_v25  ;;  %v926_v56 = vld [vmem:[#allocation12 + $0x6] ss:$8 sm:$0x3] }
 0x2b0   :  { %v808_v2 = vmul.f32 %v799_v46, %v793_v60  ;;  %v809_v4 = vmul.f32 %v803_v47, %v791_v59  ;;  %4768 = vmatprep.subr.bf16.mxu1 %v4767_v57  ;;  %v863_v24 = vrot.slane %v858_v5, %v5673_v14  ;;  %v838_v37 = vmul.f32 %v831_v61, %v824_v7  ;;  %v958_v5 = vld [vmem:[#allocation12 + $0x7] ss:$8 sm:$0x3] }
 0x2b1   :  { %4770 = vmatpush1.bf16.msra.mxu1 %v4769_v58  ;;  %v839_v38 = vmul.f32 %v835_v62, %v822_v6 }
 0x2b2   :  { %v821_v8 = vpop.permute.xlu1 %820  ;;  %v851_v9 = vpop.permute.xlu0 %850  ;;  %v4771_v18 = vpack.c.bf16 %v809_v4, %v807_v0  ;;  %v4773_v21 = vpack.c.bf16 %v808_v2, %v806_v63 }
 0x2b3   :  { %v823_v22 = vsel %vm468_vm4, %v817_v26, %v821_v8  ;;  %v825_v23 = vsel %vm468_vm4, %v821_v8, %v817_v26  ;;  %v854_v40 = vsel %vm494_vm5, %v5777_v27, %v851_v9  ;;  %v856_v41 = vsel %vm494_vm5, %v851_v9, %v5777_v27  ;;  %v894_v27 = vld [vmem:[#allocation12 + $0x5] ss:$8 sm:$0x3] }
 0x2b4   :  { %v840_v25 = vmul.f32 %v831_v61, %v825_v23  ;;  %v841_v39 = vmul.f32 %v835_v62, %v823_v22  ;;  %4772 = vmatprep.subr.bf16.mxu1 %v4771_v18  ;;  %v870_v46 = vmul.f32 %v863_v24, %v856_v41  ;;  %v871_v47 = vmul.f32 %v867_v35, %v854_v40  ;;  %v990_v22 = vld [vmem:[#allocation12 + $0x10] ss:$8 sm:$0x3] }
 0x2b5   :  { %4774 = vmatpush1.bf16.msra.mxu1 %v4773_v21  ;;  %v899_v54 = vrot.slane %v894_v27, %v5673_v14  ;;  %v903_v55 = vrot.slane %v894_v27, %v5675_v15  ;;  %v931_v62 = vrot.slane %v926_v56, %v5673_v14  ;;  %v967_v18 = vrot.slane %v958_v5, %v5675_v15 }
 0x2b6   :  { %v853_v42 = vpop.permute.xlu1 %852  ;;  %v5838_v26 = vpop.permute.xlu0 %978  ;;  %v4775_v43 = vpack.c.bf16 %v841_v39, %v839_v38  ;;  %v4777_v12 = vpack.c.bf16 %v840_v25, %v838_v37  ;;  %v995_v40 = vrot.slane %v990_v22, %v5673_v14  ;;  %v999_v41 = vrot.slane %v990_v22, %v5675_v15 }
 0x2b7   :  { %v855_v44 = vsel %vm494_vm5, %v5779_v28, %v853_v42  ;;  %v857_v45 = vsel %vm494_vm5, %v853_v42, %v5779_v28 }
 0x2b8   :  { %v872_v48 = vmul.f32 %v863_v24, %v857_v45  ;;  %v873_v49 = vmul.f32 %v867_v35, %v855_v44  ;;  %4776 = vmatprep.subr.bf16.mxu1 %v4775_v43 }
 0x2b9   :  { %4778 = vmatpush1.bf16.msra.mxu1 %v4777_v12 }
 0x2ba   :  { %v5846_v50 = vpop.permute.xlu1 %980  ;;  %v887_v51 = vpop.permute.xlu0 %886  ;;  %v4779_v52 = vpack.c.bf16 %v873_v49, %v871_v47  ;;  %v4781_v53 = vpack.c.bf16 %v872_v48, %v870_v46 }
 0x2bb   :  { %v890_v28 = vsel %vm7438_vm6, %v5781_v29, %v887_v51  ;;  %v892_v57 = vsel %vm7438_vm6, %v887_v51, %v5781_v29  ;;  %v935_v29 = vrot.slane %v926_v56, %v5675_v15  ;;  %v1013_v56 = vld [vmem:[#allocation16 + $0x18] sm:$0xff] }
 0x2bc   :  { %4780 = vmatprep.subr.bf16.mxu1 %v4779_v52  ;;  %v906_v63 = vmul.f32 %v899_v54, %v890_v28  ;;  %v907_v0 = vmul.f32 %v903_v55, %v892_v57  ;;  %v1012_v28 = vld [vmem:[#allocation16 + $0x10] sm:$0xff]  ;;  %v1051_v57 = vld [vmem:[%s7430_s9 + $0x8] sm:$0xff] }
 0x2bd   :  { %4782 = vmatpush1.bf16.msra.mxu1 %v4781_v53 }
 0x2be   :  { %v889_v58 = vpop.permute.xlu1 %888  ;;  %v919_v59 = vpop.permute.xlu0 %918  ;;  %4784 = vmatprep.subr.bf16.mxu1 %v4783_v17 }
 0x2bf   :  { %v891_v60 = vsel %vm7438_vm6, %v5783_v30, %v889_v58  ;;  %v893_v61 = vsel %vm7438_vm6, %v889_v58, %v5783_v30  ;;  %v922_v11 = vsel %vm7437_vm7, %v5785_v31, %v919_v59  ;;  %v924_v13 = vsel %vm7437_vm7, %v919_v59, %v5785_v31 }
 0x2c0   :  { %v908_v2 = vmul.f32 %v899_v54, %v891_v60  ;;  %v909_v4 = vmul.f32 %v903_v55, %v893_v61  ;;  %v963_v31 = vrot.slane %v958_v5, %v5673_v14  ;;  %v938_v3 = vmul.f32 %v931_v62, %v922_v11  ;;  %v1010_v55 = vld [vmem:[#allocation16] sm:$0xff] }
 0x2c1   :  { %4786 = vmatpush1.bf16.msra.mxu1 %v4785_v16  ;;  %v939_v10 = vmul.f32 %v935_v29, %v924_v13 }
 0x2c2   :  { %v921_v17 = vpop.permute.xlu1 %920  ;;  %v951_v30 = vpop.permute.xlu0 %950  ;;  %v4787_v6 = vpack.c.bf16 %v909_v4, %v907_v0  ;;  %v4789_v7 = vpack.c.bf16 %v908_v2, %v906_v63  ;;  %v1053_v63 = vld [vmem:[%s7430_s9 + $0x18] sm:$0xff] }
 0x2c3   :  { %v923_v8 = vsel %vm7437_vm7, %v5787_v32, %v921_v17  ;;  %v925_v9 = vsel %vm7437_vm7, %v921_v17, %v5787_v32  ;;  %v954_v23 = vsel %vm7436_vm8, %v5789_v33, %v951_v30  ;;  %v956_v24 = vsel %vm7436_vm8, %v951_v30, %v5789_v33 }
 0x2c4   :  { %v940_v16 = vmul.f32 %v931_v62, %v923_v8  ;;  %v941_v21 = vmul.f32 %v935_v29, %v925_v9  ;;  %4788 = vmatprep.subr.bf16.mxu1 %v4787_v6  ;;  %v970_v33 = vmul.f32 %v963_v31, %v954_v23  ;;  %v971_v42 = vmul.f32 %v967_v18, %v956_v24  ;;  %v1052_v62 = vld [vmem:[%s7430_s9 + $0x10] sm:$0xff] }
 0x2c5   :  { %4790 = vmatpush1.bf16.msra.mxu1 %v4789_v7  ;;  %v6004_v7 = vld.sshfl [vmem:[%s7431_s10] sm:$0x33 pattern:$0x76325410] }
 0x2c6   :  { %v953_v32 = vpop.permute.xlu1 %952  ;;  %v983_v35 = vpop.permute.xlu0 %982  ;;  %v4791_v37 = vpack.c.bf16 %v941_v21, %v939_v10  ;;  %v4793_v38 = vpack.c.bf16 %v940_v16, %v938_v3  ;;  %v1447_v8 = vcombine.high %v6004_v7, %v6004_v7 }
 0x2c7   :  { %v955_v25 = vsel %vm7436_vm8, %v5794_v36, %v953_v32  ;;  %v957_v39 = vsel %vm7436_vm8, %v953_v32, %v5794_v36  ;;  %v986_v44 = vsel %vm7434_vm9, %v5838_v26, %v983_v35  ;;  %v988_v45 = vsel %vm7434_vm9, %v983_v35, %v5838_v26  ;;  %v1153_v35 = vld [vmem:[#allocation12] ss:$8 sm:$0x3] }
 0x2c8   :  { %v972_v43 = vmul.f32 %v963_v31, %v955_v25  ;;  %v973_v12 = vmul.f32 %v967_v18, %v957_v39  ;;  %4792 = vmatprep.subr.bf16.mxu1 %v4791_v37  ;;  %v1002_v27 = vmul.f32 %v995_v40, %v986_v44  ;;  %v1003_v51 = vmul.f32 %v999_v41, %v988_v45 }
 0x2c9   :  { %4794 = vmatpush1.bf16.msra.mxu1 %v4793_v38  ;;  %4540 = vmatprep.mubr.msk.f32.mxu0 %vm662_vm0, %v1447_v8  ;;  %v1158_v25 = vrot.slane %v1153_v35, %v5673_v14  ;;  %v1162_v39 = vrot.slane %v1153_v35, %v5675_v15 }
 0x2ca   :  { %v985_v46 = vpop.permute.xlu1 %984  ;;  %v4795_v36 = vpack.c.bf16 %v973_v12, %v971_v42  ;;  %v4797_v47 = vpack.c.bf16 %v972_v43, %v970_v33 }
 0x2cb   :  { %v987_v48 = vsel %vm7434_vm9, %v5846_v50, %v985_v46  ;;  %v989_v49 = vsel %vm7434_vm9, %v985_v46, %v5846_v50  ;;  %v1050_v50 = vld [vmem:[%s7430_s9] sm:$0xff] }
 0x2cc   :  { %v1004_v52 = vmul.f32 %v995_v40, %v987_v48  ;;  %v1005_v53 = vmul.f32 %v999_v41, %v989_v49  ;;  %4796 = vmatprep.subr.bf16.mxu1 %v4795_v36  ;;  %v1185_v40 = vld [vmem:[#allocation12 + $0x1] ss:$8 sm:$0x3] }
 0x2cd   :  { %4798 = vmatpush1.bf16.msra.mxu1 %v4797_v47  ;;  %v1190_v45 = vrot.slane %v1185_v40, %v5673_v14  ;;  %v1194_v46 = vrot.slane %v1185_v40, %v5675_v15 }
 0x2ce   :  { %v4799_v54 = vpack.c.bf16 %v1005_v53, %v1003_v51  ;;  %v4801_v26 = vpack.c.bf16 %v1004_v52, %v1002_v27 }
 0x2d0   :  { %4800 = vmatprep.subr.bf16.mxu1 %v4799_v54 }
 0x2d1   :  { %4802 = vmatpush1.bf16.msra.mxu1 %v4801_v26 }
 0x2d4   :  { %1125 = vmatmul.mubr.f32.vlgmr.msra.gmra.mrb[2].mxu1 %v1010_v55  ;;  %v1217_v55 = vld [vmem:[#allocation12 + $0x2] ss:$8 sm:$0x3] }
 0x2d5   :  { %4537 = vmatprep.mubr.msk.f32.mxu1 %vm662_vm0, %v1013_v56 }
 0x2d8   :  { %1131 = vmatmul.mubr.f32.gmra.mrb[4].mxu1 %v1012_v28 }
 0x3a7   :  { %v1126_v58 = vpop.f32.mrb[2].mxu1 }
 0x3a8   :  { %v1127_v59 = vadd.f32 %v1126_v58, %v1050_v50  ;;  %v1128_v60 = vpop.f32.mrb[3].mxu1 }
 0x3a9   :  { %v1129_v61 = vadd.f32 %v1128_v60, %v1051_v57 }
 0x3aa   :  { %v5924_v29 = vmax.f32 %v1127_v59, 0.0 }
 0x3ab   :  { %v5929_v0 = vmax.f32 %v1129_v61, 0.0  ;;  %v1132_v2 = vpop.f32.mrb[4].mxu1 }
 0x3ac   :  { %1269 = vst [vmem:[#allocation2 + $0x80] sm:$0xff] %v5924_v29  ;;  %v1133_v4 = vadd.f32 %v1132_v2, %v1052_v62  ;;  %v1134_v5 = vpop.f32.mrb[5].mxu1  ;;  %1141 = vrot.lane.b32.xlu0 %v5924_v29, %s5464_s2  ;;  %v1222_v62 = vrot.slane %v1217_v55, %v5673_v14  ;;  %v1249_v2 = vld [vmem:[#allocation12 + $0x3] ss:$8 sm:$0x3] }
 0x3ad   :  { %1270 = vst [vmem:[#allocation2 + $0x88] sm:$0xff] %v5929_v0  ;;  %v1135_v11 = vadd.f32 %v1134_v5, %v1053_v63  ;;  %v1226_v63 = vrot.slane %v1217_v55, %v5675_v15  ;;  %v1254_v35 = vrot.slane %v1249_v2, %v5673_v14  ;;  %v1317_v55 = vld [vmem:[#allocation12 + $0x6] ss:$8 sm:$0x3] }
 0x3ae   :  { %v5935_v13 = vmax.f32 %v1133_v4, 0.0 }
 0x3af   :  { %v5937_v17 = vmax.f32 %v1135_v11, 0.0 }
 0x3b0   :  { %1271 = vst [vmem:[#allocation2 + $0x90] sm:$0xff] %v5935_v13  ;;  %1143 = vrot.lane.b32.xlu1 %v5935_v13, %s5464_s2  ;;  %1173 = vrot.lane.b32.xlu0 %v5924_v29, %s5447_s14  ;;  %v4821_v30 = vpack.c.bf16 %v5935_v13, %v5924_v29 }
 0x3b1   :  { %1272 = vst [vmem:[#allocation2 + $0x98] sm:$0xff] %v5937_v17  ;;  %v4819_v6 = vpack.c.bf16 %v5937_v17, %v5929_v0 }
 0x3b4   :  { %1175 = vrot.lane.b32.xlu1 %v5935_v13, %s5447_s14  ;;  %1205 = vrot.lane.b32.xlu0 %v5924_v29, %s5461_s13 }
 0x3b8   :  { %1207 = vrot.lane.b32.xlu1 %v5935_v13, %s5461_s13  ;;  %1237 = vrot.lane.b32.xlu0 %v5924_v29, %s5458_s18 }
 0x3bc   :  { %1239 = vrot.lane.b32.xlu1 %v5935_v13, %s5458_s18  ;;  %1273 = vrot.lane.b32.xlu0 %v5924_v29, %s5460_s8 }
 0x3c0   :  { %1275 = vrot.lane.b32.xlu1 %v5935_v13, %s5460_s8  ;;  %1305 = vrot.lane.b32.xlu0 %v5924_v29, %s5463_s27 }
 0x3c4   :  { %1307 = vrot.lane.b32.xlu1 %v5935_v13, %s5463_s27  ;;  %1337 = vrot.lane.b32.xlu0 %v5924_v29, %s5462_s25 }
 0x3c8   :  { %1339 = vrot.lane.b32.xlu1 %v5935_v13, %s5462_s25  ;;  %1145 = vrot.lane.b32.xlu0 %v5929_v0, %s5464_s2 }
 0x3cc   :  { %1147 = vrot.lane.b32.xlu1 %v5937_v17, %s5464_s2  ;;  %1177 = vrot.lane.b32.xlu0 %v5929_v0, %s5447_s14 }
 0x3d0   :  { %1179 = vrot.lane.b32.xlu1 %v5937_v17, %s5447_s14  ;;  %1209 = vrot.lane.b32.xlu0 %v5929_v0, %s5461_s13 }
 0x3d4   :  { %1211 = vrot.lane.b32.xlu1 %v5937_v17, %s5461_s13  ;;  %1241 = vrot.lane.b32.xlu0 %v5929_v0, %s5458_s18 }
 0x3d8   :  { %1243 = vrot.lane.b32.xlu1 %v5937_v17, %s5458_s18  ;;  %1369 = vrot.lane.b32.xlu0 %v5924_v29, %s5465_s1 }
 0x3dc   :  { %1371 = vrot.lane.b32.xlu1 %v5935_v13, %s5465_s1  ;;  %1277 = vrot.lane.b32.xlu0 %v5929_v0, %s5460_s8 }
 0x3e0   :  { %1279 = vrot.lane.b32.xlu1 %v5937_v17, %s5460_s8  ;;  %1309 = vrot.lane.b32.xlu0 %v5929_v0, %s5463_s27 }
 0x3e4   :  { %1311 = vrot.lane.b32.xlu1 %v5937_v17, %s5463_s27  ;;  %1341 = vrot.lane.b32.xlu0 %v5929_v0, %s5462_s25 }
 0x3e8   :  { %1343 = vrot.lane.b32.xlu1 %v5937_v17, %s5462_s25  ;;  %1373 = vrot.lane.b32.xlu0 %v5929_v0, %s5465_s1 }
 0x3ec   :  { %1375 = vrot.lane.b32.xlu1 %v5937_v17, %s5465_s1 }
 0x41e   :  { %v1142_v9 = vpop.permute.xlu0 %1141 }
 0x422   :  { %v1144_v31 = vpop.permute.xlu1 %1143  ;;  %v1174_v18 = vpop.permute.xlu0 %1173 }
 0x426   :  { %v1176_v3 = vpop.permute.xlu1 %1175  ;;  %v1206_v10 = vpop.permute.xlu0 %1205 }
 0x42a   :  { %v1208_v16 = vpop.permute.xlu1 %1207  ;;  %v6015_v21 = vpop.permute.xlu0 %1237 }
 0x42e   :  { %v6017_v22 = vpop.permute.xlu1 %1239  ;;  %v6019_v23 = vpop.permute.xlu0 %1273 }
 0x432   :  { %v6021_v24 = vpop.permute.xlu1 %1275  ;;  %v6023_v32 = vpop.permute.xlu0 %1305 }
 0x436   :  { %v6025_v37 = vpop.permute.xlu1 %1307  ;;  %v6027_v38 = vpop.permute.xlu0 %1337 }
 0x43a   :  { %v6031_v41 = vpop.permute.xlu1 %1339  ;;  %v1146_v33 = vpop.permute.xlu0 %1145 }
 0x43b   :  { %v1149_v42 = vsel %vm7435_vm2, %v1142_v9, %v1146_v33  ;;  %v1151_v43 = vsel %vm7435_vm2, %v1146_v33, %v1142_v9 }
 0x43c   :  { %v1165_v12 = vmul.f32 %v1158_v25, %v1151_v43  ;;  %v1166_v44 = vmul.f32 %v1162_v39, %v1149_v42 }
 0x43e   :  { %1169 = vst [vmem:[#allocation2] sm:$0xff] %v1165_v12  ;;  %1170 = vst [vmem:[#allocation2 + $0x8] sm:$0xff] %v1166_v44  ;;  %v1148_v36 = vpop.permute.xlu1 %1147  ;;  %v1178_v47 = vpop.permute.xlu0 %1177 }
 0x43f   :  { %v1150_v48 = vsel %vm7435_vm2, %v1144_v31, %v1148_v36  ;;  %v1152_v49 = vsel %vm7435_vm2, %v1148_v36, %v1144_v31  ;;  %v1181_v27 = vsel %vm442_vm3, %v1174_v18, %v1178_v47  ;;  %v1183_v51 = vsel %vm442_vm3, %v1178_v47, %v1174_v18 }
 0x440   :  { %v1167_v52 = vmul.f32 %v1158_v25, %v1152_v49  ;;  %v1168_v53 = vmul.f32 %v1162_v39, %v1150_v48  ;;  %v1197_v54 = vmul.f32 %v1190_v45, %v1183_v51  ;;  %v1198_v26 = vmul.f32 %v1194_v46, %v1181_v27  ;;  %v1285_v27 = vld [vmem:[#allocation12 + $0x5] ss:$8 sm:$0x3] }
 0x441   :  { %v1258_v25 = vrot.slane %v1249_v2, %v5675_v15 }
 0x442   :  { %1171 = vst [vmem:[#allocation2 + $0x10] sm:$0xff] %v1167_v52  ;;  %1172 = vst [vmem:[#allocation2 + $0x18] sm:$0xff] %v1168_v53  ;;  %v1180_v56 = vpop.permute.xlu1 %1179  ;;  %v1210_v28 = vpop.permute.xlu0 %1209  ;;  %v4803_v50 = vpack.c.bf16 %v1168_v53, %v1166_v44  ;;  %v4805_v57 = vpack.c.bf16 %v1167_v52, %v1165_v12 }
 0x443   :  { %1201 = vst [vmem:[#allocation2 + $0x20] sm:$0xff] %v1197_v54  ;;  %1202 = vst [vmem:[#allocation2 + $0x28] sm:$0xff] %v1198_v26  ;;  %v1182_v58 = vsel %vm442_vm3, %v1176_v3, %v1180_v56  ;;  %v1184_v59 = vsel %vm442_vm3, %v1180_v56, %v1176_v3  ;;  %v1213_v4 = vsel %vm468_vm4, %v1206_v10, %v1210_v28 }
 0x444   :  { %v6051_v60 = vmul.f32 %v1190_v45, %v1184_v59  ;;  %v6053_v61 = vmul.f32 %v1194_v46, %v1182_v58  ;;  %4804 = vmatprep.subr.bf16.mxu0 %v4803_v50  ;;  %v1215_v5 = vsel %vm468_vm4, %v1210_v28, %v1206_v10  ;;  %v1230_v40 = vmul.f32 %v1226_v63, %v1213_v4 }
 0x445   :  { %4806 = vmatpush1.bf16.msra.mxu0 %v4805_v57  ;;  %v1229_v39 = vmul.f32 %v1222_v62, %v1215_v5 }
 0x446   :  { %v1212_v11 = vpop.permute.xlu1 %1211  ;;  %v1242_v8 = vpop.permute.xlu0 %1241  ;;  %v4807_v9 = vpack.c.bf16 %v6053_v61, %v1198_v26  ;;  %v4809_v31 = vpack.c.bf16 %v6051_v60, %v1197_v54  ;;  %v1290_v26 = vrot.slane %v1285_v27, %v5673_v14 }
 0x447   :  { %v1214_v18 = vsel %vm468_vm4, %v1208_v16, %v1212_v11  ;;  %v1216_v3 = vsel %vm468_vm4, %v1212_v11, %v1208_v16  ;;  %v1245_v42 = vsel %vm494_vm5, %v6015_v21, %v1242_v8  ;;  %v1247_v43 = vsel %vm494_vm5, %v1242_v8, %v6015_v21  ;;  %v1349_v11 = vld [vmem:[#allocation12 + $0x7] ss:$8 sm:$0x3] }
 0x448   :  { %v1231_v10 = vmul.f32 %v1222_v62, %v1216_v3  ;;  %v1232_v33 = vmul.f32 %v1226_v63, %v1214_v18  ;;  %4808 = vmatprep.subr.bf16.mxu0 %v4807_v9  ;;  %v1261_v47 = vmul.f32 %v1254_v35, %v1247_v43  ;;  %v1262_v48 = vmul.f32 %v1258_v25, %v1245_v42 }
 0x449   :  { %4810 = vmatpush1.bf16.msra.mxu0 %v4809_v31  ;;  %v1322_v62 = vrot.slane %v1317_v55, %v5673_v14  ;;  %v1358_v3 = vrot.slane %v1349_v11, %v5675_v15 }
 0x44a   :  { %v1244_v12 = vpop.permute.xlu1 %1243  ;;  %v6075_v16 = vpop.permute.xlu0 %1369  ;;  %v6077_v44 = vpack.c.bf16 %v1232_v33, %v1230_v40  ;;  %v6079_v45 = vpack.c.bf16 %v1231_v10, %v1229_v39 }
 0x44b   :  { %v1246_v46 = vsel %vm494_vm5, %v6017_v22, %v1244_v12  ;;  %v1248_v36 = vsel %vm494_vm5, %v1244_v12, %v6017_v22  ;;  %v1294_v22 = vrot.slane %v1285_v27, %v5675_v15 }
 0x44c   :  { %v1263_v49 = vmul.f32 %v1254_v35, %v1248_v36  ;;  %v1264_v21 = vmul.f32 %v1258_v25, %v1246_v46  ;;  %4812 = vmatprep.subr.bf16.mxu0 %v6077_v44  ;;  %v1381_v25 = vld [vmem:[#allocation12 + $0x10] ss:$8 sm:$0x3] }
 0x44d   :  { %4814 = vmatpush1.bf16.msra.mxu0 %v6079_v45  ;;  %v1386_v46 = vrot.slane %v1381_v25, %v5673_v14 }
 0x44e   :  { %v6089_v51 = vpop.permute.xlu1 %1371  ;;  %v1278_v52 = vpop.permute.xlu0 %1277  ;;  %v6091_v53 = vpack.c.bf16 %v1264_v21, %v1262_v48  ;;  %v6093_v54 = vpack.c.bf16 %v1263_v49, %v1261_v47 }
 0x44f   :  { %v1281_v56 = vsel %vm7438_vm6, %v6019_v23, %v1278_v52  ;;  %v1283_v28 = vsel %vm7438_vm6, %v1278_v52, %v6019_v23  ;;  %v1326_v23 = vrot.slane %v1317_v55, %v5675_v15 }
 0x450   :  { %4816 = vmatprep.subr.bf16.mxu0 %v6091_v53  ;;  %v1297_v63 = vmul.f32 %v1290_v26, %v1281_v56  ;;  %v1298_v2 = vmul.f32 %v1294_v22, %v1283_v28 }
 0x451   :  { %4818 = vmatpush1.bf16.msra.mxu0 %v6093_v54 }
 0x452   :  { %v1280_v50 = vpop.permute.xlu1 %1279  ;;  %v1310_v57 = vpop.permute.xlu0 %1309  ;;  %4820 = vmatprep.subr.bf16.mxu0 %v4819_v6 }
 0x453   :  { %v1282_v58 = vsel %vm7438_vm6, %v6021_v24, %v1280_v50  ;;  %v1284_v59 = vsel %vm7438_vm6, %v1280_v50, %v6021_v24  ;;  %v1313_v0 = vsel %vm7437_vm7, %v6023_v32, %v1310_v57  ;;  %v1315_v17 = vsel %vm7437_vm7, %v1310_v57, %v6023_v32 }
 0x454   :  { %v1299_v4 = vmul.f32 %v1290_v26, %v1282_v58  ;;  %v1300_v5 = vmul.f32 %v1294_v22, %v1284_v59  ;;  %v1354_v32 = vrot.slane %v1349_v11, %v5673_v14  ;;  %v1329_v29 = vmul.f32 %v1322_v62, %v1313_v0  ;;  %v1632_v59 = vld [vmem:[#allocation9 + $0x80] sm:$0xff]  ;;  %v1618_v0 = vld [vmem:[#allocation9 + $0x10] sm:$0xff] }
 0x455   :  { %4822 = vmatpush1.bf16.msra.mxu0 %v4821_v30  ;;  %v1330_v13 = vmul.f32 %v1326_v23, %v1315_v17  ;;  %v1619_v17 = vld [vmem:[#allocation9 + $0x18] sm:$0xff] }
 0x456   :  { %v1312_v6 = vpop.permute.xlu1 %1311  ;;  %v1342_v24 = vpop.permute.xlu0 %1341  ;;  %v6125_v8 = vpack.c.bf16 %v1300_v5, %v1298_v2  ;;  %v6127_v9 = vpack.c.bf16 %v1299_v4, %v1297_v63  ;;  %v1617_v63 = vld [vmem:[#allocation9 + $0x8] sm:$0xff]  ;;  %v1634_v4 = vld [vmem:[#allocation9 + $0x90] sm:$0xff]  ;;  %v1635_v5 = vld [vmem:[#allocation9 + $0x98] sm:$0xff] }
 0x457   :  { %v1314_v31 = vsel %vm7437_vm7, %v6025_v37, %v1312_v6  ;;  %v1316_v18 = vsel %vm7437_vm7, %v1312_v6, %v6025_v37  ;;  %v1345_v39 = vsel %vm7436_vm8, %v6027_v38, %v1342_v24  ;;  %v1347_v40 = vsel %vm7436_vm8, %v1342_v24, %v6027_v38  ;;  %v1636_v24 = vld [vmem:[#allocation9 + $0xa0] sm:$0xff] }
 0x458   :  { %v1331_v30 = vmul.f32 %v1322_v62, %v1314_v31  ;;  %v1332_v35 = vmul.f32 %v1326_v23, %v1316_v18  ;;  %4824 = vmatprep.subr.bf16.mxu0 %v6125_v8  ;;  %v1390_v38 = vrot.slane %v1381_v25, %v5675_v15  ;;  %v1361_v36 = vmul.f32 %v1354_v32, %v1345_v39  ;;  %v1616_v23 = vld [vmem:[#allocation9] sm:$0xff]  ;;  %v1637_v31 = vld [vmem:[#allocation9 + $0xa8] sm:$0xff]  ;;  %v1623_v25 = vld [vmem:[#allocation9 + $0x38] sm:$0xff] }
 0x459   :  { %4826 = vmatpush1.bf16.msra.mxu0 %v6127_v9  ;;  %v1362_v47 = vmul.f32 %v1358_v3, %v1347_v40  ;;  %v4841_v2 = vpack.c.bf16 %v1617_v63, %v1616_v23  ;;  %v4843_v11 = vpack.c.bf16 %v1635_v5, %v1634_v4  ;;  %v4845_v6 = vpack.c.bf16 %v1619_v17, %v1618_v0  ;;  %v1640_v40 = vld [vmem:[#allocation9 + $0xc0] sm:$0xff] }
 0x45a   :  { %v1344_v37 = vpop.permute.xlu1 %1343  ;;  %v1374_v10 = vpop.permute.xlu0 %1373  ;;  %v6145_v33 = vpack.c.bf16 %v1332_v35, %v1330_v13  ;;  %v6147_v42 = vpack.c.bf16 %v1331_v30, %v1329_v29  ;;  %v4847_v18 = vpack.c.bf16 %v1637_v31, %v1636_v24  ;;  %v1638_v29 = vld [vmem:[#allocation9 + $0xb0] sm:$0xff]  ;;  %v1639_v13 = vld [vmem:[#allocation9 + $0xb8] sm:$0xff]  ;;  %v185_v63 = vld [vmem:[#allocation10] sm:$0x3]  ;;  %v6194_v31 = vstv %s7421_s0 }
 0x45b   :  { %v1346_v43 = vsel %vm7436_vm8, %v6031_v41, %v1344_v37  ;;  %v1348_v12 = vsel %vm7436_vm8, %v1344_v37, %v6031_v41  ;;  %v1377_v21 = vsel %vm7434_vm9, %v6075_v16, %v1374_v10  ;;  %v1379_v27 = vsel %vm7434_vm9, %v1374_v10, %v6075_v16  ;;  %v1622_v35 = vld [vmem:[#allocation9 + $0x30] sm:$0xff]  ;;  %v1641_v37 = vld [vmem:[#allocation9 + $0xc8] sm:$0xff]  ;;  %v4539_v5 = vld.sshfl [vmem:[%s7432_s11] sm:$0x33 pattern:$0x76325410] }
 0x45c   :  { %v1363_v48 = vmul.f32 %v1354_v32, %v1346_v43  ;;  %v1364_v49 = vmul.f32 %v1358_v3, %v1348_v12  ;;  %4828 = vmatprep.subr.bf16.mxu0 %v6145_v33  ;;  %v1393_v56 = vmul.f32 %v1386_v46, %v1377_v21  ;;  %v1394_v28 = vmul.f32 %v1390_v38, %v1379_v27  ;;  %v1621_v32 = vld [vmem:[#allocation9 + $0x28] sm:$0xff]  ;;  %v1624_v43 = vld [vmem:[#allocation9 + $0x40] sm:$0xff] }
 0x45d   :  { %4830 = vmatpush1.bf16.msra.mxu0 %v6147_v42  ;;  %v4851_v30 = vpack.c.bf16 %v1639_v13, %v1638_v29  ;;  %v4853_v39 = vpack.c.bf16 %v1623_v25, %v1622_v35  ;;  %v4855_v10 = vpack.c.bf16 %v1641_v37, %v1640_v40  ;;  %v1625_v12 = vld [vmem:[#allocation9 + $0x48] sm:$0xff]  ;;  %v1644_v27 = vld [vmem:[#allocation9 + $0xe0] sm:$0xff]  ;;  %v404_v4 = vrot.slane %v185_v63, %v5675_v15  ;;  %v1725_v25 = vld [vmem:[#allocation7 + $0x18] sm:$0xff] }
 0x45e   :  { %v1376_v41 = vpop.permute.xlu1 %1375  ;;  %v6165_v52 = vpack.c.bf16 %v1364_v49, %v1362_v47  ;;  %v6167_v26 = vpack.c.bf16 %v1363_v48, %v1361_v36  ;;  %v1643_v36 = vld [vmem:[#allocation9 + $0xd8] sm:$0xff]  ;;  %v1626_v48 = vld [vmem:[#allocation9 + $0x50] sm:$0xff]  ;;  %v1457_v17 = vcombine.high %v4539_v5, %v4539_v5  ;;  %v1548_v13 = vmul.f32 %v6194_v31, %v185_v63 }
 0x45f   :  { %v1378_v22 = vsel %vm7434_vm9, %v6089_v51, %v1376_v41  ;;  %v1380_v55 = vsel %vm7434_vm9, %v1376_v41, %v6089_v51  ;;  %v1633_v51 = vld [vmem:[#allocation9 + $0x88] sm:$0xff]  ;;  %v1627_v49 = vld [vmem:[#allocation9 + $0x58] sm:$0xff]  ;;  %v408_v0 = vmul.f32 %v404_v4, %v5775_v20 }
 0x460   :  { %v1395_v50 = vmul.f32 %v1386_v46, %v1378_v22  ;;  %v1396_v57 = vmul.f32 %v1390_v38, %v1380_v55  ;;  %4832 = vmatprep.subr.bf16.mxu0 %v6165_v52  ;;  %v4839_v62 = vpack.c.bf16 %v1633_v51, %v1632_v59  ;;  %v4857_v46 = vpack.c.bf16 %v1625_v12, %v1624_v43  ;;  %v1642_v38 = vld [vmem:[#allocation9 + $0xd0] sm:$0xff]  ;;  %v1645_v41 = vld [vmem:[#allocation9 + $0xe8] sm:$0xff]  ;;  %v1628_v55 = vld [vmem:[#allocation9 + $0x60] sm:$0xff] }
 0x461   :  { %4834 = vmatpush1.bf16.msra.mxu0 %v6167_v26  ;;  %v4859_v47 = vpack.c.bf16 %v1643_v36, %v1642_v38  ;;  %v4861_v21 = vpack.c.bf16 %v1627_v49, %v1626_v48  ;;  %v4863_v22 = vpack.c.bf16 %v1645_v41, %v1644_v27  ;;  %v1630_v51 = vld [vmem:[#allocation9 + $0x70] sm:$0xff]  ;;  %vm410_vm12 = vcmp.eq.f32.partialorder %v408_v0, %v408_v0 }
 0x462   :  { %v6177_v16 = vpack.c.bf16 %v1396_v57, %v1394_v28  ;;  %v6179_v58 = vpack.c.bf16 %v1395_v50, %v1393_v56  ;;  %4840 = vmatprep.subr.bf16.mxu1 %v4839_v62  ;;  %v1629_v56 = vld [vmem:[#allocation9 + $0x68] sm:$0xff]  ;;  %v1646_v50 = vld [vmem:[#allocation9 + $0xf0] sm:$0xff]  ;;  %v1647_v57 = vld [vmem:[#allocation9 + $0xf8] sm:$0xff]  ;;  %v1553_v40 = vrot.slane %v1548_v13, %v5673_v14 }
 0x463   :  { %4842 = vmatpush3.bf16.msra.mxu1 %v4841_v2  ;;  %v4865_v28 = vpack.c.bf16 %v1629_v56, %v1628_v55  ;;  %v4867_v59 = vpack.c.bf16 %v1647_v57, %v1646_v50  ;;  %v1631_v62 = vld [vmem:[#allocation9 + $0x78] sm:$0xff]  ;;  %v400_v2 = vrot.slane %v185_v63, %v5673_v14 }
 0x464   :  { %4836 = vmatprep.subr.bf16.mxu0 %v6177_v16  ;;  %4844 = vmatprep.subr.bf16.mxu1 %v4843_v11  ;;  %v4869_v23 = vpack.c.bf16 %v1631_v62, %v1630_v51 }
 0x465   :  { %4838 = vmatpush1.bf16.msra.mxu0 %v6179_v58  ;;  %v407_v11 = vmul.f32 %v400_v2, %v5773_v19 }
 0x467   :  { %4846 = vmatpush3.bf16.msra.mxu1 %v4845_v6  ;;  %v411_v24 = vand.u32 2147483647, %v407_v11  ;;  %vm409_vm10 = vcmp.eq.f32.partialorder %v407_v11, %v407_v11 }
 0x468   :  { %1527 = vmatmul.mubr.f32.vlgmr.msra.gmra.mrb[6].mxu0 %v6004_v7  ;;  %v1620_v7 = vld [vmem:[#allocation9 + $0x20] sm:$0xff]  ;;  %4848 = vmatprep.subr.bf16.mxu1 %v4847_v18 }
 0x469   :  { %v4849_v3 = vpack.c.bf16 %v1621_v32, %v1620_v7  ;;  %v412_v32 = vand.u32 2147483647, %v408_v0  ;;  %vm413_vm11 = vcmp.lt.f32.partialorder %v411_v24, inf }
 0x46a   :  { %vm6197_vm14 = vmand %vm409_vm10, %vm413_vm11 }
 0x46b   :  { %4850 = vmatpush3.bf16.msra.mxu1 %v4849_v3  ;;  %vm414_vm13 = vcmp.lt.f32.partialorder %v412_v32, inf  ;;  %v417_v36 = vsel %vm6197_vm14, %v407_v11, 0.0 }
 0x46c   :  { %4852 = vmatprep.subr.bf16.mxu1 %v4851_v30  ;;  %vm416_vm15 = vmand %vm410_vm12, %vm414_vm13 }
 0x46d   :  { %v418_v49 = vsel %vm416_vm15, %v408_v0, 0.0  ;;  %vm7445_vm15 = vcmp.lt.s32.totalorder %v5792_v34, 127 }
 0x46f   :  { %4854 = vmatpush3.bf16.msra.mxu1 %v4853_v39  ;;  %v1566_v39 = vmul.f32 4.0, %v1548_v13 }
 0x470   :  { %4856 = vmatprep.subr.bf16.mxu1 %v4855_v10  ;;  %v1557_v10 = vrot.slane %v1548_v13, %v5675_v15 }
 0x471   :  { %v1571_v12 = vrot.slane %v1566_v39, %v5673_v14 }
 0x473   :  { %4858 = vmatpush3.bf16.msra.mxu1 %v4857_v46  ;;  %v1578_v41 = vmul.f32 %v1571_v12, %v417_v36 }
 0x474   :  { %4860 = vmatprep.subr.bf16.mxu1 %v4859_v47  ;;  %v1575_v47 = vrot.slane %v1566_v39, %v5675_v15  ;;  %v1722_v39 = vld [vmem:[#allocation7] sm:$0xff] }
 0x476   :  { %v1579_v55 = vmul.f32 %v1575_v47, %v418_v49  ;;  %v1731_v47 = vld [vmem:[#allocation7 + $0x48] sm:$0xff] }
 0x477   :  { %4862 = vmatpush3.bf16.msra.mxu1 %v4861_v21 }
 0x478   :  { %4864 = vmatprep.subr.bf16.mxu1 %v4863_v22 }
 0x47b   :  { %4866 = vmatpush3.bf16.msra.mxu1 %v4865_v28 }
 0x47c   :  { %4868 = vmatprep.subr.bf16.mxu1 %v4867_v59 }
 0x47f   :  { %4870 = vmatpush3.bf16.msra.mxu1 %v4869_v23 }
 0x53b   :  { %v1528_v6 = vpop.f32.mrb[6].mxu0 }
 0x53c   :  { %v1529_v18 = vadd.f32 %v4539_v5, %v1528_v6  ;;  %v1530_v7 = vpop.f32.mrb[7].mxu0  ;;  %v1598_v6 = vmul.f32 2.0, %v417_v36  ;;  %v1728_v36 = vld [vmem:[#allocation7 + $0x30] sm:$0xff] }
 0x53d   :  { %v1531_v3 = vadd.f32 %v1530_v7, %v1457_v17 }
 0x53e   :  { %v1533_v29 = vadd.f32 1.0, %v1529_v18  ;;  %v1599_v18 = vmul.f32 2.0, %v418_v49 }
 0x53f   :  { %v1534_v30 = vadd.f32 1.0, %v1531_v3 }
 0x540   :  { %v1535_v19 = vmax.f32 %v1533_v29, 0.0 }
 0x541   :  { %v1536_v20 = vmax.f32 %v1534_v30, 0.0  ;;  %v2456_v30 = vld [vmem:[#allocation16 + $0x8] sm:$0xff] }
 0x542   :  { %v1539_v35 = vand.u32 2147483647, %v1535_v19  ;;  %vm1537_vm1 = vcmp.eq.f32.partialorder %v1535_v19, %v1535_v19 }
 0x543   :  { %v1540_v37 = vand.u32 2147483647, %v1536_v20  ;;  %vm1538_vm8 = vcmp.eq.f32.partialorder %v1536_v20, %v1536_v20 }
 0x544   :  { %vm1541_vm9 = vcmp.lt.f32.partialorder %v1539_v35, inf  ;;  %v1723_v35 = vld [vmem:[#allocation7 + $0x8] sm:$0xff] }
 0x545   :  { %vm1543_vm2 = vmand %vm1537_vm1, %vm1541_vm9  ;;  %vm1542_vm7 = vcmp.lt.f32.partialorder %v1540_v37, inf  ;;  %v1724_v37 = vld [vmem:[#allocation7 + $0x10] sm:$0xff] }
 0x546   :  { %v1545_v43 = vsel %vm1543_vm2, %v1535_v19, 0.0  ;;  %vm1544_vm6 = vmand %vm1538_vm8, %vm1542_vm7  ;;  %v4873_v12 = vpack.c.bf16 %v1724_v37, %v1722_v39  ;;  %v1750_v37 = vld [vmem:[#allocation7 + $0xe0] sm:$0xff] }
 0x547   :  { %v1560_v46 = vmul.f32 %v1553_v40, %v1545_v43  ;;  %v1546_v38 = vsel %vm1544_vm6, %v1536_v20, 0.0  ;;  %v2065_v20 = vld [vmem:[#allocation13 + $0x8] sm:$0xff]  ;;  %v4871_v40 = vpack.c.bf16 %v1725_v25, %v1723_v35  ;;  %v1729_v43 = vld [vmem:[#allocation7 + $0x38] sm:$0xff]  ;;  %vm7446_vm1 = vmmov %vm7445_vm15 }
 0x548   :  { %v1561_v48 = vmul.f32 %v1557_v10, %v1546_v38  ;;  %4544 = vmatprep.mubr.msk.f32.mxu0 %vm662_vm0, %v2065_v20  ;;  %v1727_v10 = vld [vmem:[#allocation7 + $0x28] sm:$0xff]  ;;  %v1726_v38 = vld [vmem:[#allocation7 + $0x20] sm:$0xff]  ;;  %v1748_v20 = vld [vmem:[#allocation7 + $0xd0] sm:$0xff] }
 0x549   :  { %v1562_v21 = vsub.f32 1.0, %v1560_v46  ;;  %v4875_v46 = vpack.c.bf16 %v1729_v43, %v1727_v10  ;;  %4872 = vmatprep.subr.bf16.mxu1 %v4871_v40  ;;  %v4877_v49 = vpack.c.bf16 %v1728_v36, %v1726_v38  ;;  %v1751_v35 = vld [vmem:[#allocation7 + $0xe8] sm:$0xff]  ;;  %v1753_v25 = vld [vmem:[#allocation7 + $0xf8] sm:$0xff]  ;;  %v1752_v10 = vld [vmem:[#allocation7 + $0xf0] sm:$0xff] }
 0x54a   :  { %v1563_v27 = vsub.f32 1.0, %v1561_v48  ;;  %v1733_v48 = vld [vmem:[#allocation7 + $0x58] sm:$0xff]  ;;  %v4899_v40 = vpack.c.bf16 %v1753_v25, %v1751_v35  ;;  %v4901_v43 = vpack.c.bf16 %v1752_v10, %v1750_v37  ;;  %v1992_v25 = vld [vmem:[#allocation12 + $0x6] ss:$8 sm:$0x3] }
 0x54b   :  { %v1564_v22 = vmul.f32 %v1562_v21, %v1562_v21 }
 0x54c   :  { %v1565_v56 = vmul.f32 %v1563_v27, %v1563_v27 }
 0x54d   :  { %v1580_v28 = vadd.f32 %v1578_v41, %v1564_v22  ;;  %v1732_v41 = vld [vmem:[#allocation7 + $0x50] sm:$0xff]  ;;  %v1735_v22 = vld [vmem:[#allocation7 + $0x68] sm:$0xff] }
 0x54e   :  { %v1581_v50 = vadd.f32 %v1579_v55, %v1565_v56  ;;  %v1737_v55 = vld [vmem:[#allocation7 + $0x78] sm:$0xff] }
 0x54f   :  { %5207 = vrsqrt.f32 %v1580_v28  ;;  %vm1584_vm2 = vcmp.eq.f32.partialorder %v1580_v28, inf  ;;  %v1587_v62 = vand.u32 2147483648, %v1580_v28  ;;  %vm1586_vm6 = vcmp.eq.f32.partialorder %v1580_v28, 0.0 }
 0x550   :  { %5209 = vrsqrt.f32 %v1581_v50  ;;  %vm1591_vm7 = vcmp.eq.f32.partialorder %v1581_v50, inf  ;;  %v1594_v2 = vand.u32 2147483648, %v1581_v50  ;;  %vm1593_vm8 = vcmp.eq.f32.partialorder %v1581_v50, 0.0 }
 0x559   :  { %v5208_v57 = vpop.eup %5207 }
 0x55a   :  { %v5210_v59 = vpop.eup %5209  ;;  %v1583_v51 = vmul.f32 %v5208_v57, %v1580_v28  ;;  %v1736_v57 = vld [vmem:[#allocation7 + $0x70] sm:$0xff] }
 0x55b   :  { %v1590_v23 = vmul.f32 %v5210_v59, %v1581_v50 }
 0x55c   :  { %v1585_v63 = vsel %vm1584_vm2, %v1580_v28, %v1583_v51  ;;  %v4883_v28 = vpack.c.bf16 %v1737_v55, %v1735_v22  ;;  %v1739_v51 = vld [vmem:[#allocation7 + $0x88] sm:$0xff]  ;;  %vm7447_vm2 = vcmp.lt.s32.totalorder %v5792_v34, 113 }
 0x55d   :  { %v1588_v4 = vsel %vm1586_vm6, %v1587_v62, %v1585_v63  ;;  %v1592_v5 = vsel %vm1591_vm7, %v1581_v50, %v1590_v23  ;;  %v1734_v50 = vld [vmem:[#allocation7 + $0x60] sm:$0xff]  ;;  %v1741_v62 = vld [vmem:[#allocation7 + $0x98] sm:$0xff]  ;;  %vm7448_vm6 = vmmov %vm7447_vm2  ;;  %vm7449_vm7 = vcmp.lt.s32.totalorder %v5792_v34, 112 }
 0x55e   :  { %v1596_v11 = vadd.f32 %v1588_v4, %v1562_v21  ;;  %v1595_v0 = vsel %vm1593_vm8, %v1594_v2, %v1592_v5  ;;  %v4879_v21 = vpack.c.bf16 %v1733_v48, %v1731_v47  ;;  %v4885_v59 = vpack.c.bf16 %v1736_v57, %v1734_v50  ;;  %v1738_v63 = vld [vmem:[#allocation7 + $0x80] sm:$0xff]  ;;  %v1740_v2 = vld [vmem:[#allocation7 + $0x90] sm:$0xff]  ;;  %v1743_v5 = vld [vmem:[#allocation7 + $0xa8] sm:$0xff] }
 0x55f   :  { %v1597_v17 = vadd.f32 %v1595_v0, %v1563_v27  ;;  %v1730_v27 = vld [vmem:[#allocation7 + $0x40] sm:$0xff]  ;;  %v4887_v23 = vpack.c.bf16 %v1741_v62, %v1739_v51  ;;  %v4889_v4 = vpack.c.bf16 %v1740_v2, %v1738_v63  ;;  %vm7450_vm8 = vmmov %vm7449_vm7 }
 0x560   :  { %5211 = vrcp.f32 %v1596_v11  ;;  %v4881_v56 = vpack.c.bf16 %v1732_v41, %v1730_v27  ;;  %v1745_v11 = vld [vmem:[#allocation7 + $0xb8] sm:$0xff]  ;;  %v1906_v47 = vld [vmem:[#allocation12 + $0x2] ss:$8 sm:$0x3] }
 0x561   :  { %5213 = vrcp.f32 %v1597_v17  ;;  %v4891_v0 = vpack.c.bf16 %v1745_v11, %v1743_v5  ;;  %v1742_v17 = vld [vmem:[#allocation7 + $0xa0] sm:$0xff]  ;;  %v1911_v22 = vrot.slane %v1906_v47, %v5673_v14  ;;  %v1915_v55 = vrot.slane %v1906_v47, %v5675_v15 }
 0x562   :  { %v1964_v11 = vld [vmem:[#allocation12 + $0x5] ss:$8 sm:$0x3] }
 0x56a   :  { %v5212_v24 = vpop.eup %5211 }
 0x56b   :  { %v5214_v7 = vpop.eup %5213  ;;  %v6207_v32 = vmul.f32 %v5212_v24, %v1598_v6  ;;  %v1744_v6 = vld [vmem:[#allocation7 + $0xb0] sm:$0xff] }
 0x56c   :  { %v6209_v3 = vmul.f32 %v5214_v7, %v1599_v18  ;;  %v4893_v24 = vpack.c.bf16 %v1744_v6, %v1742_v17  ;;  %v1747_v18 = vld [vmem:[#allocation7 + $0xc8] sm:$0xff]  ;;  %v1749_v7 = vld [vmem:[#allocation7 + $0xd8] sm:$0xff] }
 0x56d   :  { %1956 = vst [vmem:[#allocation2 + $0x10] sm:$0x3] %v6207_v32  ;;  %1872 = vrot.lane.b32.xlu0 %v6207_v32, %s5447_s14  ;;  %v1606_v29 = vand.u32 2147483647, %v6207_v32  ;;  %vm1604_vm13 = vcmp.eq.f32.partialorder %v6207_v32, %v6207_v32 }
 0x56e   :  { %1957 = vst [vmem:[#allocation2 + $0x18] sm:$0x3] %v6209_v3  ;;  %1874 = vrot.lane.b32.xlu1 %v6209_v3, %s5447_s14  ;;  %v1607_v13 = vand.u32 2147483647, %v6209_v3  ;;  %vm1605_vm10 = vcmp.eq.f32.partialorder %v6209_v3, %v6209_v3 }
 0x56f   :  { %vm1608_vm9 = vcmp.lt.f32.partialorder %v1606_v29, inf  ;;  %v1746_v29 = vld [vmem:[#allocation7 + $0xc0] sm:$0xff] }
 0x570   :  { %vm1609_vm11 = vcmp.lt.f32.partialorder %v1607_v13, inf  ;;  %vm6234_vm14 = vmand %vm1604_vm13, %vm1608_vm9  ;;  %v4895_v13 = vpack.c.bf16 %v1749_v7, %v1747_v18  ;;  %v4897_v39 = vpack.c.bf16 %v1748_v20, %v1746_v29  ;;  %v1973_v20 = vrot.slane %v1964_v11, %v5675_v15 }
 0x571   :  { %1900 = vrot.lane.b32.xlu0 %v6207_v32, %s5461_s13  ;;  %vm6223_vm12 = vmand %vm1605_vm10, %vm1609_vm11  ;;  %vm7451_vm9 = vcmp.lt.s32.totalorder %v5792_v34, 17  ;;  %vm7453_vm11 = vcmp.lt.s32.totalorder %v5792_v34, 111 }
 0x572   :  { %1902 = vrot.lane.b32.xlu1 %v6209_v3, %s5461_s13  ;;  %4541 = vmatprep.mubr.msk.f32.mxu1 %vm6223_vm12, %v6209_v3  ;;  %vm7452_vm10 = vmmov %vm7451_vm9 }
 0x573   :  { %4542 = vmatmul.mubr.msk.f32.vlgmr.msra.gmra.mrb[6].mxu1 %vm6234_vm14, %v6207_v32  ;;  %vm7454_vm13 = vmmov %vm7453_vm11 }
 0x574   :  { %1818 = vmatprep.mubr.f32.mxu1 %v5459_v1  ;;  %4874 = vmatpush1.bf16.msra.mxu1 %v4873_v12  ;;  %v1878_v12 = vld [vmem:[#allocation12 + $0x1] ss:$8 sm:$0x3] }
 0x575   :  { %1928 = vrot.lane.b32.xlu0 %v6207_v32, %s5458_s18  ;;  %4876 = vmatprep.subr.bf16.mxu1 %v4875_v46  ;;  %v1883_v46 = vrot.slane %v1878_v12, %v5673_v14  ;;  %v1887_v38 = vrot.slane %v1878_v12, %v5675_v15 }
 0x576   :  { %1930 = vrot.lane.b32.xlu1 %v6209_v3, %s5458_s18 }
 0x578   :  { %4878 = vmatpush1.bf16.msra.mxu1 %v4877_v49 }
 0x579   :  { %1958 = vrot.lane.b32.xlu0 %v6207_v32, %s5460_s8  ;;  %4880 = vmatprep.subr.bf16.mxu1 %v4879_v21 }
 0x57a   :  { %1960 = vrot.lane.b32.xlu1 %v6209_v3, %s5460_s8 }
 0x57c   :  { %4882 = vmatpush1.bf16.msra.mxu1 %v4881_v56 }
 0x57d   :  { %1986 = vrot.lane.b32.xlu0 %v6207_v32, %s5463_s27  ;;  %4884 = vmatprep.subr.bf16.mxu1 %v4883_v28  ;;  %v1934_v28 = vld [vmem:[#allocation12 + $0x3] ss:$8 sm:$0x3] }
 0x57e   :  { %1988 = vrot.lane.b32.xlu1 %v6209_v3, %s5463_s27  ;;  %v1939_v2 = vrot.slane %v1934_v28, %v5673_v14 }
 0x580   :  { %4886 = vmatpush1.bf16.msra.mxu1 %v4885_v59 }
 0x581   :  { %2014 = vrot.lane.b32.xlu0 %v6207_v32, %s5462_s25  ;;  %4888 = vmatprep.subr.bf16.mxu1 %v4887_v23 }
 0x582   :  { %2016 = vrot.lane.b32.xlu1 %v6209_v3, %s5462_s25 }
 0x584   :  { %4890 = vmatpush1.bf16.msra.mxu1 %v4889_v4  ;;  %v1943_v4 = vrot.slane %v1934_v28, %v5675_v15 }
 0x585   :  { %1850 = vrot.lane.b32.xlu0 %v6207_v32, %s5464_s2  ;;  %4892 = vmatprep.subr.bf16.mxu1 %v4891_v0 }
 0x586   :  { %1852 = vrot.lane.b32.xlu1 %v6209_v3, %s5464_s2 }
 0x588   :  { %4894 = vmatpush1.bf16.msra.mxu1 %v4893_v24 }
 0x589   :  { %2042 = vrot.lane.b32.xlu0 %v6207_v32, %s5465_s1  ;;  %4896 = vmatprep.subr.bf16.mxu1 %v4895_v13  ;;  %v1969_v13 = vrot.slane %v1964_v11, %v5673_v14 }
 0x58a   :  { %2044 = vrot.lane.b32.xlu1 %v6209_v3, %s5465_s1 }
 0x58c   :  { %4898 = vmatpush1.bf16.msra.mxu1 %v4897_v39 }
 0x58d   :  { %4900 = vmatprep.subr.bf16.mxu1 %v4899_v40 }
 0x590   :  { %4902 = vmatpush1.bf16.msra.mxu1 %v4901_v43 }
 0x5df   :  { %v1873_v36 = vpop.permute.xlu0 %1872 }
 0x5e0   :  { %v1875_v48 = vpop.permute.xlu1 %1874 }
 0x5e1   :  { %v1876_v49 = vsel %vm442_vm3, %v1873_v36, %v1875_v48  ;;  %v1877_v21 = vsel %vm442_vm3, %v1875_v48, %v1873_v36  ;;  %v2001_v36 = vrot.slane %v1992_v25, %v5675_v15  ;;  %v2020_v48 = vld [vmem:[#allocation12 + $0x7] ss:$8 sm:$0x3] }
 0x5e2   :  { %v1890_v27 = vmul.f32 %v1883_v46, %v1877_v21  ;;  %v1891_v41 = vmul.f32 %v1887_v38, %v1876_v49  ;;  %v1997_v38 = vrot.slane %v1992_v25, %v5673_v14  ;;  %v2025_v28 = vrot.slane %v2020_v48, %v5673_v14 }
 0x5e3   :  { %v1901_v56 = vpop.permute.xlu0 %1900 }
 0x5e4   :  { %v1894_v50 = vrot.slane %v1890_v27, 6  ;;  %v1895_v57 = vrot.slane %v1891_v41, 6  ;;  %v1903_v59 = vpop.permute.xlu1 %1902 }
 0x5e5   :  { %v1904_v51 = vsel %vm468_vm4, %v1901_v56, %v1903_v59  ;;  %v1905_v62 = vsel %vm468_vm4, %v1903_v59, %v1901_v56  ;;  %v1856_v59 = vld [vmem:[#allocation12] ss:$8 sm:$0x3] }
 0x5e6   :  { %1898 = vst [vmem:[#allocation2] sm:$0xc] %v1894_v50  ;;  %1899 = vst [vmem:[#allocation2 + $0x8] sm:$0xc] %v1895_v57  ;;  %v1918_v23 = vmul.f32 %v1911_v22, %v1905_v62  ;;  %v1919_v63 = vmul.f32 %v1915_v55, %v1904_v51  ;;  %v2029_v50 = vrot.slane %v2020_v48, %v5675_v15 }
 0x5e7   :  { %v1929_v5 = vpop.permute.xlu0 %1928  ;;  %v1861_v11 = vrot.slane %v1856_v59, %v5673_v14 }
 0x5e8   :  { %v1922_v0 = vrot.slane %v1918_v23, 4  ;;  %v1923_v17 = vrot.slane %v1919_v63, 4  ;;  %v1931_v6 = vpop.permute.xlu1 %1930 }
 0x5e9   :  { %v1932_v24 = vsel %vm494_vm5, %v1929_v5, %v1931_v6  ;;  %v1933_v18 = vsel %vm494_vm5, %v1931_v6, %v1929_v5  ;;  %v2048_v6 = vld [vmem:[#allocation12 + $0x10] ss:$8 sm:$0x3] }
 0x5ea   :  { %1926 = vst [vmem:[#allocation2] sm:$0x30] %v1922_v0  ;;  %1927 = vst [vmem:[#allocation2 + $0x8] sm:$0x30] %v1923_v17  ;;  %v1946_v7 = vmul.f32 %v1939_v2, %v1933_v18  ;;  %v1947_v29 = vmul.f32 %v1943_v4, %v1932_v24  ;;  %v1865_v0 = vrot.slane %v1856_v59, %v5675_v15  ;;  %v2084_v59 = vld [vmem:[#allocation2 + $0x80] sm:$0xff] }
 0x5eb   :  { %v1959_v35 = vpop.permute.xlu0 %1958  ;;  %v2053_v25 = vrot.slane %v2048_v6, %v5673_v14 }
 0x5ec   :  { %v1950_v39 = vrot.slane %v1946_v7, 2  ;;  %v1951_v40 = vrot.slane %v1947_v29, 2  ;;  %v1961_v37 = vpop.permute.xlu1 %1960 }
 0x5ed   :  { %v1962_v10 = vsel %vm7445_vm15, %v1959_v35, %v1961_v37  ;;  %v1963_v43 = vsel %vm7446_vm1, %v1961_v37, %v1959_v35  ;;  %vm7457_vm1 = vmmov %vm7451_vm9 }
 0x5ee   :  { %1954 = vst [vmem:[#allocation2] sm:$0xc0] %v1950_v39  ;;  %1955 = vst [vmem:[#allocation2 + $0x8] sm:$0xc0] %v1951_v40  ;;  %v1976_v12 = vmul.f32 %v1969_v13, %v1962_v10  ;;  %v1977_v46 = vmul.f32 %v1973_v20, %v1963_v43  ;;  %v2057_v39 = vrot.slane %v2048_v6, %v5675_v15 }
 0x5ef   :  { %v1987_v47 = vpop.permute.xlu0 %1986 }
 0x5f0   :  { %v1980_v49 = vrot.slane %v1976_v12, 6  ;;  %v1981_v21 = vrot.slane %v1977_v46, 6  ;;  %v1989_v27 = vpop.permute.xlu1 %1988 }
 0x5f1   :  { %v1990_v41 = vsel %vm7447_vm2, %v1987_v47, %v1989_v27  ;;  %v1991_v22 = vsel %vm7448_vm6, %v1989_v27, %v1987_v47  ;;  %vm7458_vm2 = vmmov %vm7457_vm1  ;;  %vm7459_vm6 = vcmp.lt.s32.totalorder %v5792_v34, 127 }
 0x5f2   :  { %1984 = vst [vmem:[#allocation2 + $0x10] sm:$0xc] %v1980_v49  ;;  %1985 = vst [vmem:[#allocation2 + $0x18] sm:$0xc] %v1981_v21  ;;  %v2004_v55 = vmul.f32 %v1997_v38, %v1990_v41  ;;  %v2005_v56 = vmul.f32 %v2001_v36, %v1991_v22 }
 0x5f3   :  { %v2015_v57 = vpop.permute.xlu0 %2014 }
 0x5f4   :  { %v2008_v51 = vrot.slane %v2004_v55, 4  ;;  %v2009_v62 = vrot.slane %v2005_v56, 4  ;;  %v2017_v23 = vpop.permute.xlu1 %2016  ;;  %v2087_v56 = vld [vmem:[#allocation2 + $0x98] sm:$0xff] }
 0x5f5   :  { %v2018_v63 = vsel %vm7449_vm7, %v2015_v57, %v2017_v23  ;;  %v2019_v2 = vsel %vm7450_vm8, %v2017_v23, %v2015_v57  ;;  %v2086_v57 = vld [vmem:[#allocation2 + $0x90] sm:$0xff]  ;;  %vm7460_vm7 = vmmov %vm7459_vm6 }
 0x5f6   :  { %2012 = vst [vmem:[#allocation2 + $0x10] sm:$0x30] %v2008_v51  ;;  %2013 = vst [vmem:[#allocation2 + $0x18] sm:$0x30] %v2009_v62  ;;  %v2032_v4 = vmul.f32 %v2025_v28, %v2018_v63  ;;  %v2033_v5 = vmul.f32 %v2029_v50, %v2019_v2  ;;  %v2085_v28 = vld [vmem:[#allocation2 + $0x88] sm:$0xff]  ;;  %v4921_v51 = vpack.c.bf16 %v2086_v57, %v2084_v59  ;;  %v2106_v62 = vld [vmem:[#allocation15 + $0x10] sm:$0xff] }
 0x5f7   :  { %v1851_v17 = vpop.permute.xlu0 %1850  ;;  %v4919_v50 = vpack.c.bf16 %v2087_v56, %v2085_v28  ;;  %v2107_v63 = vld [vmem:[#allocation15 + $0x18] sm:$0xff]  ;;  %v2239_v28 = vld [vmem:[#allocation12 + $0x1] ss:$8 sm:$0x3]  ;;  %vm7461_vm8 = vmmov %vm7459_vm6 }
 0x5f8   :  { %v2036_v24 = vrot.slane %v2032_v4, 2  ;;  %v2037_v18 = vrot.slane %v2033_v5, 2  ;;  %v1853_v7 = vpop.permute.xlu1 %1852 }
 0x5f9   :  { %v1854_v29 = vsel %vm7451_vm9, %v1851_v17, %v1853_v7  ;;  %v1855_v13 = vsel %vm7452_vm10, %v1853_v7, %v1851_v17  ;;  %vm7463_vm10 = vcmp.lt.s32.totalorder %v5792_v34, 113 }
 0x5fa   :  { %2040 = vst [vmem:[#allocation2 + $0x10] sm:$0xc0] %v2036_v24  ;;  %2041 = vst [vmem:[#allocation2 + $0x18] sm:$0xc0] %v2037_v18  ;;  %v1868_v20 = vmul.f32 %v1861_v11, %v1855_v13  ;;  %v1869_v35 = vmul.f32 %v1865_v0, %v1854_v29  ;;  %v1612_v29 = vsel %vm6234_vm14, %v6207_v32, 0.0 }
 0x5fb   :  { %v2043_v40 = vpop.permute.xlu0 %2042  ;;  %vm7456_vm14 = vmmov %vm7451_vm9 }
 0x5fc   :  { %1870 = vst [vmem:[#allocation2] sm:$0x3] %v1868_v20  ;;  %1871 = vst [vmem:[#allocation2 + $0x8] sm:$0x3] %v1869_v35  ;;  %v2045_v37 = vpop.permute.xlu1 %2044  ;;  %v1613_v35 = vsel %vm6223_vm12, %v6209_v3, 0.0 }
 0x5fd   :  { %v2046_v10 = vsel %vm7453_vm11, %v2043_v40, %v2045_v37  ;;  %v2047_v43 = vsel %vm7454_vm13, %v2045_v37, %v2043_v40  ;;  %vm7455_vm12 = vmmov %vm7451_vm9 }
 0x5fe   :  { %v2060_v12 = vmul.f32 %v2053_v25, %v2046_v10  ;;  %v2061_v46 = vmul.f32 %v2057_v39, %v2047_v43  ;;  %vm7462_vm9 = vmmov %vm7459_vm6 }
 0x5ff   :  { %vm7464_vm11 = vmmov %vm7463_vm10 }
 0x600   :  { %2062 = vst [vmem:[#allocation2 + $0x20] sm:$0x3] %v2060_v12  ;;  %2063 = vst [vmem:[#allocation2 + $0x28] sm:$0x3] %v2061_v46 }
 0x601   :  { %v2071_v38 = vld [vmem:[#allocation2 + $0x18] sm:$0xff]  ;;  %v2070_v48 = vld [vmem:[#allocation2 + $0x10] sm:$0xff]  ;;  %vm7465_vm13 = vmmov %vm7463_vm10 }
 0x603   :  { %v2069_v36 = vld [vmem:[#allocation2 + $0x8] sm:$0xff]  ;;  %v2068_v47 = vld [vmem:[#allocation2] sm:$0xff] }
 0x604   :  { %v4903_v49 = vpack.c.bf16 %v2071_v38, %v2069_v36  ;;  %v4905_v21 = vpack.c.bf16 %v2070_v48, %v2068_v47 }
 0x606   :  { %4904 = vmatprep.subr.bf16.mxu0 %v4903_v49 }
 0x607   :  { %4906 = vmatpush1.bf16.msra.mxu0 %v4905_v21  ;;  %v2073_v27 = vld [vmem:[#allocation2 + $0x28] sm:$0xff]  ;;  %v2072_v41 = vld [vmem:[#allocation2 + $0x20] sm:$0xff] }
 0x608   :  { %v4907_v22 = vpack.c.bf16 %v6053_v61, %v2073_v27  ;;  %v4909_v55 = vpack.c.bf16 %v6051_v60, %v2072_v41  ;;  %v2064_v60 = vld [vmem:[#allocation13] sm:$0xff]  ;;  %v2067_v61 = vld [vmem:[#allocation13 + $0x18] sm:$0xff] }
 0x609   :  { %v2207_v27 = vld [vmem:[#allocation12] ss:$8 sm:$0x3] }
 0x60a   :  { %4908 = vmatprep.subr.bf16.mxu0 %v4907_v22  ;;  %v2216_v56 = vrot.slane %v2207_v27, %v5675_v15 }
 0x60b   :  { %4910 = vmatpush1.bf16.msra.mxu0 %v4909_v55  ;;  %v2212_v55 = vrot.slane %v2207_v27, %v5673_v14 }
 0x60c   :  { %4912 = vmatprep.subr.bf16.mxu0 %v6077_v44  ;;  %v2066_v44 = vld [vmem:[#allocation13 + $0x10] sm:$0xff] }
 0x60f   :  { %4914 = vmatpush1.bf16.msra.mxu0 %v6079_v45 }
 0x610   :  { %4916 = vmatprep.subr.bf16.mxu0 %v6091_v53 }
 0x613   :  { %4918 = vmatpush1.bf16.msra.mxu0 %v6093_v54 }
 0x614   :  { %4920 = vmatprep.subr.bf16.mxu0 %v4919_v50 }
 0x617   :  { %4922 = vmatpush1.bf16.msra.mxu0 %v4921_v51 }
 0x618   :  { %4924 = vmatprep.subr.bf16.mxu0 %v6125_v8  ;;  %v1615_v8 = vld [vmem:[#allocation4] sm:$0x3] }
 0x61b   :  { %4926 = vmatpush1.bf16.msra.mxu0 %v6127_v9 }
 0x61c   :  { %4928 = vmatprep.subr.bf16.mxu0 %v6145_v33 }
 0x61f   :  { %4930 = vmatpush1.bf16.msra.mxu0 %v6147_v42  ;;  %v2104_v42 = vld [vmem:[#allocation15] sm:$0xff] }
 0x620   :  { %4932 = vmatprep.subr.bf16.mxu0 %v6165_v52 }
 0x623   :  { %4934 = vmatpush1.bf16.msra.mxu0 %v6167_v26 }
 0x624   :  { %4936 = vmatprep.subr.bf16.mxu0 %v6177_v16  ;;  %v2105_v16 = vld [vmem:[#allocation15 + $0x8] sm:$0xff] }
 0x627   :  { %4938 = vmatpush1.bf16.msra.mxu0 %v6179_v58 }
 0x62a   :  { %2179 = vmatmul.mubr.f32.vlgmr.msra.gmra.mrb[8].mxu0 %v2064_v60 }
 0x62b   :  { %4545 = vmatprep.mubr.msk.f32.mxu0 %vm662_vm0, %v2067_v61 }
 0x62e   :  { %2185 = vmatmul.mubr.f32.gmra.mrb[10].mxu0 %v2066_v44  ;;  %v2244_v44 = vrot.slane %v2239_v28, %v5673_v14 }
 0x646   :  { %v4629_v45 = vpop.f32.mrb[6].mxu1 }
 0x647   :  { %v4630_v53 = vpop.f32.mrb[7].mxu1 }
 0x648   :  { %v4631_v54 = vadd.f32 %v4630_v53, %v4629_v45  ;;  %v2248_v45 = vrot.slane %v2239_v28, %v5675_v15 }
 0x64a   :  { %5215 = vrcp.f32 %v4631_v54  ;;  %vm1718_vm15 = vcmp.gt.f32.partialorder %v4631_v54, 0.0 }
 0x654   :  { %v5216_v9 = vpop.eup %5215 }
 0x655   :  { %v1720_v33 = vmul.f32 %v5216_v9, %v1615_v8 }
 0x657   :  { %4543 = vmatmul.mubr.msk.f32.vlgmr.msra.gmra.mrb[8].mxu1 %vm1718_vm15, %v1720_v33  ;;  %v2271_v33 = vld [vmem:[#allocation12 + $0x2] ss:$8 sm:$0x3]  ;;  %vm7466_vm15 = vmmov %vm7463_vm10 }
 0x658   :  { %4546 = vmatprep.mubr.msk.f32.mxu1 %vm662_vm0, %v2456_v30 }
 0x6fd   :  { %v2180_v52 = vpop.f32.mrb[8].mxu0 }
 0x6fe   :  { %v2181_v26 = vadd.f32 %v2180_v52, %v2104_v42  ;;  %v2182_v58 = vpop.f32.mrb[9].mxu0 }
 0x6ff   :  { %v2183_v2 = vadd.f32 %v2182_v58, %v2105_v16 }
 0x700   :  { %v6330_v23 = vmax.f32 %v2181_v26, 0.0 }
 0x701   :  { %v2186_v4 = vpop.f32.mrb[10].mxu0  ;;  %v6336_v6 = vmax.f32 %v2183_v2, 0.0 }
 0x702   :  { %v2187_v5 = vadd.f32 %v2186_v4, %v2106_v62  ;;  %v2188_v11 = vpop.f32.mrb[11].mxu0  ;;  %2195 = vrot.lane.b32.xlu0 %v6330_v23, %s5464_s2  ;;  %v2276_v4 = vrot.slane %v2271_v33, %v5673_v14 }
 0x703   :  { %v2189_v0 = vadd.f32 %v2188_v11, %v2107_v63 }
 0x704   :  { %v6334_v17 = vmax.f32 %v2187_v5, 0.0  ;;  %v2280_v5 = vrot.slane %v2271_v33, %v5675_v15 }
 0x705   :  { %v6338_v24 = vmax.f32 %v2189_v0, 0.0 }
 0x706   :  { %2197 = vrot.lane.b32.xlu1 %v6334_v17, %s5464_s2  ;;  %2227 = vrot.lane.b32.xlu0 %v6330_v23, %s5447_s14  ;;  %v4957_v18 = vpack.c.bf16 %v6334_v17, %v6330_v23 }
 0x707   :  { %v4955_v7 = vpack.c.bf16 %v6338_v24, %v6336_v6 }
 0x70a   :  { %2229 = vrot.lane.b32.xlu1 %v6334_v17, %s5447_s14  ;;  %2259 = vrot.lane.b32.xlu0 %v6330_v23, %s5461_s13 }
 0x70e   :  { %2261 = vrot.lane.b32.xlu1 %v6334_v17, %s5461_s13  ;;  %2291 = vrot.lane.b32.xlu0 %v6330_v23, %s5458_s18 }
 0x712   :  { %2293 = vrot.lane.b32.xlu1 %v6334_v17, %s5458_s18  ;;  %2327 = vrot.lane.b32.xlu0 %v6330_v23, %s5460_s8 }
 0x716   :  { %2329 = vrot.lane.b32.xlu1 %v6334_v17, %s5460_s8  ;;  %2359 = vrot.lane.b32.xlu0 %v6330_v23, %s5463_s27 }
 0x71a   :  { %2361 = vrot.lane.b32.xlu1 %v6334_v17, %s5463_s27  ;;  %2391 = vrot.lane.b32.xlu0 %v6330_v23, %s5462_s25 }
 0x71e   :  { %2393 = vrot.lane.b32.xlu1 %v6334_v17, %s5462_s25  ;;  %2199 = vrot.lane.b32.xlu0 %v6336_v6, %s5464_s2 }
 0x722   :  { %2201 = vrot.lane.b32.xlu1 %v6338_v24, %s5464_s2  ;;  %2231 = vrot.lane.b32.xlu0 %v6336_v6, %s5447_s14 }
 0x726   :  { %2233 = vrot.lane.b32.xlu1 %v6338_v24, %s5447_s14  ;;  %2263 = vrot.lane.b32.xlu0 %v6336_v6, %s5461_s13 }
 0x72a   :  { %2265 = vrot.lane.b32.xlu1 %v6338_v24, %s5461_s13  ;;  %2295 = vrot.lane.b32.xlu0 %v6336_v6, %s5458_s18  ;;  %v1820_v13 = vpop.f32.mrb[8].mxu1 }
 0x72b   :  { %v6387_v20 = vmul.f32 %v1820_v13, %v1612_v29  ;;  %v1822_v25 = vpop.f32.mrb[9].mxu1 }
 0x72c   :  { %v6392_v39 = vmul.f32 %v1822_v25, %v1613_v35  ;;  %v2303_v35 = vld [vmem:[#allocation12 + $0x3] ss:$8 sm:$0x3] }
 0x72e   :  { %2297 = vrot.lane.b32.xlu1 %v6338_v24, %s5458_s18  ;;  %2423 = vrot.lane.b32.xlu0 %v6330_v23, %s5465_s1 }
 0x732   :  { %2425 = vrot.lane.b32.xlu1 %v6334_v17, %s5465_s1  ;;  %2331 = vrot.lane.b32.xlu0 %v6336_v6, %s5460_s8 }
 0x736   :  { %2333 = vrot.lane.b32.xlu1 %v6338_v24, %s5460_s8  ;;  %2363 = vrot.lane.b32.xlu0 %v6336_v6, %s5463_s27 }
 0x73a   :  { %2365 = vrot.lane.b32.xlu1 %v6338_v24, %s5463_s27  ;;  %2395 = vrot.lane.b32.xlu0 %v6336_v6, %s5462_s25 }
 0x73e   :  { %2397 = vrot.lane.b32.xlu1 %v6338_v24, %s5462_s25  ;;  %2427 = vrot.lane.b32.xlu0 %v6336_v6, %s5465_s1 }
 0x742   :  { %2429 = vrot.lane.b32.xlu1 %v6338_v24, %s5465_s1 }
 0x774   :  { %v2196_v19 = vpop.permute.xlu0 %2195 }
 0x778   :  { %v2198_v40 = vpop.permute.xlu1 %2197  ;;  %v2228_v37 = vpop.permute.xlu0 %2227 }
 0x77c   :  { %v2230_v10 = vpop.permute.xlu1 %2229  ;;  %v2260_v43 = vpop.permute.xlu0 %2259 }
 0x780   :  { %v2262_v12 = vpop.permute.xlu1 %2261  ;;  %v2292_v46 = vpop.permute.xlu0 %2291 }
 0x784   :  { %v6417_v38 = vpop.permute.xlu1 %2293  ;;  %v6419_v36 = vpop.permute.xlu0 %2327 }
 0x788   :  { %v6421_v47 = vpop.permute.xlu1 %2329  ;;  %v6423_v48 = vpop.permute.xlu0 %2359 }
 0x78c   :  { %v6425_v49 = vpop.permute.xlu1 %2361  ;;  %v6427_v21 = vpop.permute.xlu0 %2391 }
 0x790   :  { %v6429_v41 = vpop.permute.xlu1 %2393  ;;  %v2200_v22 = vpop.permute.xlu0 %2199 }
 0x791   :  { %v2203_v50 = vsel %vm7455_vm12, %v2196_v19, %v2200_v22  ;;  %v2205_v57 = vsel %vm7456_vm14, %v2200_v22, %v2196_v19  ;;  %vm7467_vm12 = vcmp.lt.s32.totalorder %v5792_v34, 112 }
 0x792   :  { %v2219_v53 = vmul.f32 %v2212_v55, %v2205_v57  ;;  %v2220_v54 = vmul.f32 %v2216_v56, %v2203_v50  ;;  %vm7468_vm14 = vmmov %vm7467_vm12 }
 0x794   :  { %v2202_v59 = vpop.permute.xlu1 %2201  ;;  %v2232_v51 = vpop.permute.xlu0 %2231 }
 0x795   :  { %v2204_v60 = vsel %vm7457_vm1, %v2198_v40, %v2202_v59  ;;  %v2206_v61 = vsel %vm7458_vm2, %v2202_v59, %v2198_v40  ;;  %v2235_v42 = vsel %vm442_vm3, %v2228_v37, %v2232_v51  ;;  %v2237_v52 = vsel %vm442_vm3, %v2232_v51, %v2228_v37  ;;  %vm7469_vm1 = vmmov %vm7467_vm12 }
 0x796   :  { %v2221_v8 = vmul.f32 %v2212_v55, %v2206_v61  ;;  %v2222_v9 = vmul.f32 %v2216_v56, %v2204_v60  ;;  %v2251_v11 = vmul.f32 %v2244_v44, %v2237_v52  ;;  %v2252_v0 = vmul.f32 %v2248_v45, %v2235_v42  ;;  %vm7470_vm2 = vmmov %vm7469_vm1 }
 0x797   :  { %v2308_v55 = vrot.slane %v2303_v35, %v5673_v14  ;;  %v2312_v56 = vrot.slane %v2303_v35, %v5675_v15 }
 0x798   :  { %v2234_v26 = vpop.permute.xlu1 %2233  ;;  %v2264_v16 = vpop.permute.xlu0 %2263  ;;  %v4939_v58 = vpack.c.bf16 %v2222_v9, %v2220_v54  ;;  %v4941_v62 = vpack.c.bf16 %v2221_v8, %v2219_v53 }
 0x799   :  { %v2236_v63 = vsel %vm442_vm3, %v2230_v10, %v2234_v26  ;;  %v2238_v2 = vsel %vm442_vm3, %v2234_v26, %v2230_v10  ;;  %v2267_v25 = vsel %vm468_vm4, %v2260_v43, %v2264_v16  ;;  %v2269_v30 = vsel %vm468_vm4, %v2264_v16, %v2260_v43 }
 0x79a   :  { %v2253_v29 = vmul.f32 %v2244_v44, %v2238_v2  ;;  %v2254_v13 = vmul.f32 %v2248_v45, %v2236_v63  ;;  %4940 = vmatprep.subr.bf16.mxu1 %v4939_v58  ;;  %v2283_v28 = vmul.f32 %v2276_v4, %v2269_v30  ;;  %v2284_v50 = vmul.f32 %v2280_v5, %v2267_v25  ;;  %v2371_v63 = vld [vmem:[#allocation12 + $0x6] ss:$8 sm:$0x3] }
 0x79b   :  { %4942 = vmatpush1.bf16.msra.mxu1 %v4941_v62 }
 0x79c   :  { %v2266_v19 = vpop.permute.xlu1 %2265  ;;  %v2296_v40 = vpop.permute.xlu0 %2295  ;;  %v4943_v37 = vpack.c.bf16 %v2254_v13, %v2252_v0  ;;  %v4945_v10 = vpack.c.bf16 %v2253_v29, %v2251_v11  ;;  %v2376_v29 = vrot.slane %v2371_v63, %v5673_v14  ;;  %v2380_v13 = vrot.slane %v2371_v63, %v5675_v15 }
 0x79d   :  { %v2268_v27 = vsel %vm468_vm4, %v2262_v12, %v2266_v19  ;;  %v2270_v22 = vsel %vm468_vm4, %v2266_v19, %v2262_v12  ;;  %v2299_v43 = vsel %vm494_vm5, %v2292_v46, %v2296_v40  ;;  %v2301_v51 = vsel %vm494_vm5, %v2296_v40, %v2292_v46  ;;  %v2339_v46 = vld [vmem:[#allocation12 + $0x5] ss:$8 sm:$0x3]  ;;  %v2403_v19 = vld [vmem:[#allocation12 + $0x7] ss:$8 sm:$0x3] }
 0x79e   :  { %v2285_v57 = vmul.f32 %v2276_v4, %v2270_v22  ;;  %v2286_v59 = vmul.f32 %v2280_v5, %v2268_v27  ;;  %4944 = vmatprep.subr.bf16.mxu1 %v4943_v37  ;;  %v2315_v54 = vmul.f32 %v2308_v55, %v2301_v51  ;;  %v2316_v8 = vmul.f32 %v2312_v56, %v2299_v43 }
 0x79f   :  { %4946 = vmatpush1.bf16.msra.mxu1 %v4945_v10  ;;  %v2344_v58 = vrot.slane %v2339_v46, %v5673_v14  ;;  %v2348_v62 = vrot.slane %v2339_v46, %v5675_v15  ;;  %v2408_v22 = vrot.slane %v2403_v19, %v5673_v14 }
 0x7a0   :  { %v2298_v60 = vpop.permute.xlu1 %2297  ;;  %v6467_v61 = vpop.permute.xlu0 %2423  ;;  %v4947_v12 = vpack.c.bf16 %v2286_v59, %v2284_v50  ;;  %v4949_v44 = vpack.c.bf16 %v2285_v57, %v2283_v28 }
 0x7a1   :  { %v2300_v45 = vsel %vm494_vm5, %v6417_v38, %v2298_v60  ;;  %v2302_v53 = vsel %vm494_vm5, %v2298_v60, %v6417_v38 }
 0x7a2   :  { %v2317_v9 = vmul.f32 %v2308_v55, %v2302_v53  ;;  %v2318_v33 = vmul.f32 %v2312_v56, %v2300_v45  ;;  %4948 = vmatprep.subr.bf16.mxu1 %v4947_v12 }
 0x7a3   :  { %4950 = vmatpush1.bf16.msra.mxu1 %v4949_v44 }
 0x7a4   :  { %v6475_v42 = vpop.permute.xlu1 %2425  ;;  %v2332_v52 = vpop.permute.xlu0 %2331  ;;  %v4951_v26 = vpack.c.bf16 %v2318_v33, %v2316_v8  ;;  %v4953_v16 = vpack.c.bf16 %v2317_v9, %v2315_v54 }
 0x7a5   :  { %v2335_v38 = vsel %vm7459_vm6, %v6419_v36, %v2332_v52  ;;  %v2337_v2 = vsel %vm7460_vm7, %v2332_v52, %v6419_v36  ;;  %vm7471_vm6 = vcmp.lt.s32.totalorder %v5792_v34, 111 }
 0x7a6   :  { %4952 = vmatprep.subr.bf16.mxu1 %v4951_v26  ;;  %v2351_v36 = vmul.f32 %v2344_v58, %v2335_v38  ;;  %v2352_v35 = vmul.f32 %v2348_v62, %v2337_v2  ;;  %vm7472_vm7 = vmmov %vm7471_vm6  ;;  %v2455_v2 = vld [vmem:[#allocation16] sm:$0xff] }
 0x7a7   :  { %4954 = vmatpush1.bf16.msra.mxu1 %v4953_v16 }
 0x7a8   :  { %v2334_v4 = vpop.permute.xlu1 %2333  ;;  %v2364_v5 = vpop.permute.xlu0 %2363  ;;  %4956 = vmatprep.subr.bf16.mxu1 %v4955_v7 }
 0x7a9   :  { %v2336_v11 = vsel %vm7461_vm8, %v6421_v47, %v2334_v4  ;;  %v2338_v0 = vsel %vm7462_vm9, %v2334_v4, %v6421_v47  ;;  %v2367_v6 = vsel %vm7463_vm10, %v6423_v48, %v2364_v5  ;;  %v2369_v24 = vsel %vm7464_vm11, %v2364_v5, %v6423_v48  ;;  %vm7473_vm8 = vmmov %vm7471_vm6  ;;  %v2458_v4 = vld [vmem:[#allocation16 + $0x18] sm:$0xff]  ;;  %v2457_v5 = vld [vmem:[#allocation16 + $0x10] sm:$0xff] }
 0x7aa   :  { %v2353_v25 = vmul.f32 %v2344_v58, %v2336_v11  ;;  %v2354_v30 = vmul.f32 %v2348_v62, %v2338_v0  ;;  %v2412_v48 = vrot.slane %v2403_v19, %v5675_v15  ;;  %v2383_v55 = vmul.f32 %v2376_v29, %v2367_v6  ;;  %vm7474_vm9 = vmmov %vm7471_vm6  ;;  %v2496_v11 = vld [vmem:[%s7430_s9 + $0x8] sm:$0xff] }
 0x7ab   :  { %4958 = vmatpush1.bf16.msra.mxu1 %v4957_v18  ;;  %v2384_v56 = vmul.f32 %v2380_v13, %v2369_v24  ;;  %v2435_v18 = vld [vmem:[#allocation12 + $0x10] ss:$8 sm:$0x3]  ;;  %vm7475_vm10 = vcmp.lt.s32.totalorder %v5792_v34, 17 }
 0x7ac   :  { %v2366_v7 = vpop.permute.xlu1 %2365  ;;  %v2396_v47 = vpop.permute.xlu0 %2395  ;;  %v4959_v40 = vpack.c.bf16 %v2354_v30, %v2352_v35  ;;  %v4961_v37 = vpack.c.bf16 %v2353_v25, %v2351_v36  ;;  %v2440_v12 = vrot.slane %v2435_v18, %v5673_v14  ;;  %v2444_v44 = vrot.slane %v2435_v18, %v5675_v15  ;;  %v2497_v35 = vld [vmem:[%s7430_s9 + $0x10] sm:$0xff]  ;;  %v2498_v30 = vld [vmem:[%s7430_s9 + $0x18] sm:$0xff]  ;;  %vm7476_vm11 = vmmov %vm7475_vm10 }
 0x7ad   :  { %v2368_v10 = vsel %vm7465_vm13, %v6425_v49, %v2366_v7  ;;  %v2370_v27 = vsel %vm7466_vm15, %v2366_v7, %v6425_v49  ;;  %v2399_v28 = vsel %vm7467_vm12, %v6427_v21, %v2396_v47  ;;  %v2401_v50 = vsel %vm7468_vm14, %v2396_v47, %v6427_v21  ;;  %vm7477_vm13 = vmmov %vm7475_vm10 }
 0x7ae   :  { %v2385_v23 = vmul.f32 %v2376_v29, %v2368_v10  ;;  %v2386_v17 = vmul.f32 %v2380_v13, %v2370_v27  ;;  %4960 = vmatprep.subr.bf16.mxu1 %v4959_v40  ;;  %v2415_v45 = vmul.f32 %v2408_v22, %v2399_v28  ;;  %v2416_v53 = vmul.f32 %v2412_v48, %v2401_v50  ;;  %vm7478_vm15 = vmmov %vm7475_vm10 }
 0x7af   :  { %4962 = vmatpush1.bf16.msra.mxu1 %v4961_v37  ;;  %vm7479_vm12 = vcmp.lt.s32.totalorder %v5792_v34, 127 }
 0x7b0   :  { %v2398_v49 = vpop.permute.xlu1 %2397  ;;  %v2428_v57 = vpop.permute.xlu0 %2427  ;;  %v4963_v59 = vpack.c.bf16 %v2386_v17, %v2384_v56  ;;  %v4965_v43 = vpack.c.bf16 %v2385_v23, %v2383_v55  ;;  %vm7480_vm14 = vmmov %vm7479_vm12 }
 0x7b1   :  { %v2400_v51 = vsel %vm7469_vm1, %v6429_v41, %v2398_v49  ;;  %v2402_v60 = vsel %vm7470_vm2, %v2398_v49, %v6429_v41  ;;  %v2431_v8 = vsel %vm7471_vm6, %v6467_v61, %v2428_v57  ;;  %v2433_v9 = vsel %vm7472_vm7, %v2428_v57, %v6467_v61  ;;  %vm7481_vm1 = vmmov %vm7479_vm12 }
 0x7b2   :  { %v2417_v21 = vmul.f32 %v2408_v22, %v2400_v51  ;;  %v2418_v54 = vmul.f32 %v2412_v48, %v2402_v60  ;;  %4964 = vmatprep.subr.bf16.mxu1 %v4963_v59  ;;  %v2447_v16 = vmul.f32 %v2440_v12, %v2431_v8  ;;  %v2448_v58 = vmul.f32 %v2444_v44, %v2433_v9  ;;  %v6629_v22 = vld.sshfl [vmem:[%s7431_s10] sm:$0x33 pattern:$0x76325410]  ;;  %vm7482_vm2 = vmmov %vm7481_vm1 }
 0x7b3   :  { %4966 = vmatpush1.bf16.msra.mxu1 %v4965_v43  ;;  %v2892_v48 = vcombine.high %v6629_v22, %v6629_v22  ;;  %v2598_v51 = vld [vmem:[#allocation12] ss:$8 sm:$0x3]  ;;  %vm7483_vm6 = vcmp.lt.s32.totalorder %v5792_v34, 113 }
 0x7b4   :  { %v2430_v33 = vpop.permute.xlu1 %2429  ;;  %v4967_v41 = vpack.c.bf16 %v2418_v54, %v2416_v53  ;;  %v4969_v46 = vpack.c.bf16 %v2417_v21, %v2415_v45  ;;  %v2607_v45 = vrot.slane %v2598_v51, %v5675_v15  ;;  %v2630_v53 = vld [vmem:[#allocation12 + $0x1] ss:$8 sm:$0x3]  ;;  %vm7484_vm7 = vmmov %vm7483_vm6 }
 0x7b5   :  { %v2432_v52 = vsel %vm7473_vm8, %v6475_v42, %v2430_v33  ;;  %v2434_v26 = vsel %vm7474_vm9, %v2430_v33, %v6475_v42  ;;  %v2495_v42 = vld [vmem:[%s7430_s9] sm:$0xff]  ;;  %4550 = vmatprep.mubr.msk.f32.mxu0 %vm662_vm0, %v2892_v48  ;;  %vm7485_vm8 = vmmov %vm7483_vm6 }
 0x7b6   :  { %v2449_v62 = vmul.f32 %v2440_v12, %v2432_v52  ;;  %v2450_v63 = vmul.f32 %v2444_v44, %v2434_v26  ;;  %4968 = vmatprep.subr.bf16.mxu1 %v4967_v41  ;;  %v2603_v44 = vrot.slane %v2598_v51, %v5673_v14  ;;  %v2639_v52 = vrot.slane %v2630_v53, %v5675_v15  ;;  %vm7486_vm9 = vmmov %vm7483_vm6 }
 0x7b7   :  { %4970 = vmatpush1.bf16.msra.mxu1 %v4969_v46  ;;  %v2635_v46 = vrot.slane %v2630_v53, %v5673_v14 }
 0x7b8   :  { %v4971_v38 = vpack.c.bf16 %v2450_v63, %v2448_v58  ;;  %v4973_v61 = vpack.c.bf16 %v2449_v62, %v2447_v16 }
 0x7ba   :  { %4972 = vmatprep.subr.bf16.mxu1 %v4971_v38 }
 0x7bb   :  { %4974 = vmatpush1.bf16.msra.mxu1 %v4973_v61 }
 0x7be   :  { %2570 = vmatmul.mubr.f32.vlgmr.msra.gmra.mrb[10].mxu1 %v2455_v2 }
 0x7bf   :  { %4547 = vmatprep.mubr.msk.f32.mxu1 %vm662_vm0, %v2458_v4 }
 0x7c2   :  { %2576 = vmatmul.mubr.f32.gmra.mrb[12].mxu1 %v2457_v5 }
 0x891   :  { %v2571_v0 = vpop.f32.mrb[10].mxu1 }
 0x892   :  { %v2572_v29 = vadd.f32 %v2571_v0, %v2495_v42  ;;  %v2573_v13 = vpop.f32.mrb[11].mxu1  ;;  %v2662_v42 = vld [vmem:[#allocation12 + $0x2] ss:$8 sm:$0x3] }
 0x893   :  { %v2574_v36 = vadd.f32 %v2573_v13, %v2496_v11 }
 0x894   :  { %v6549_v25 = vmax.f32 %v2572_v29, 0.0 }
 0x895   :  { %v6554_v19 = vmax.f32 %v2574_v36, 0.0  ;;  %v2577_v6 = vpop.f32.mrb[12].mxu1 }
 0x896   :  { %2714 = vst [vmem:[#allocation2 + $0x80] sm:$0xff] %v6549_v25  ;;  %v2578_v24 = vadd.f32 %v2577_v6, %v2497_v35  ;;  %v2579_v7 = vpop.f32.mrb[13].mxu1  ;;  %2586 = vrot.lane.b32.xlu0 %v6549_v25, %s5464_s2 }
 0x897   :  { %2715 = vst [vmem:[#allocation2 + $0x88] sm:$0xff] %v6554_v19  ;;  %v2580_v47 = vadd.f32 %v2579_v7, %v2498_v30  ;;  %v2671_v7 = vrot.slane %v2662_v42, %v5675_v15 }
 0x898   :  { %v6560_v40 = vmax.f32 %v2578_v24, 0.0  ;;  %v2667_v24 = vrot.slane %v2662_v42, %v5673_v14 }
 0x899   :  { %v6562_v37 = vmax.f32 %v2580_v47, 0.0  ;;  %v2694_v47 = vld [vmem:[#allocation12 + $0x3] ss:$8 sm:$0x3] }
 0x89a   :  { %2716 = vst [vmem:[#allocation2 + $0x90] sm:$0xff] %v6560_v40  ;;  %2588 = vrot.lane.b32.xlu1 %v6560_v40, %s5464_s2  ;;  %2618 = vrot.lane.b32.xlu0 %v6549_v25, %s5447_s14  ;;  %v4993_v10 = vpack.c.bf16 %v6560_v40, %v6549_v25  ;;  %v2699_v53 = vrot.slane %v2694_v47, %v5673_v14 }
 0x89b   :  { %2717 = vst [vmem:[#allocation2 + $0x98] sm:$0xff] %v6562_v37  ;;  %v4991_v27 = vpack.c.bf16 %v6562_v37, %v6554_v19 }
 0x89e   :  { %2620 = vrot.lane.b32.xlu1 %v6560_v40, %s5447_s14  ;;  %2650 = vrot.lane.b32.xlu0 %v6549_v25, %s5461_s13 }
 0x8a2   :  { %2652 = vrot.lane.b32.xlu1 %v6560_v40, %s5461_s13  ;;  %2682 = vrot.lane.b32.xlu0 %v6549_v25, %s5458_s18 }
 0x8a6   :  { %2684 = vrot.lane.b32.xlu1 %v6560_v40, %s5458_s18  ;;  %2718 = vrot.lane.b32.xlu0 %v6549_v25, %s5460_s8 }
 0x8aa   :  { %2720 = vrot.lane.b32.xlu1 %v6560_v40, %s5460_s8  ;;  %2750 = vrot.lane.b32.xlu0 %v6549_v25, %s5463_s27 }
 0x8ae   :  { %2752 = vrot.lane.b32.xlu1 %v6560_v40, %s5463_s27  ;;  %2782 = vrot.lane.b32.xlu0 %v6549_v25, %s5462_s25 }
 0x8b2   :  { %2784 = vrot.lane.b32.xlu1 %v6560_v40, %s5462_s25  ;;  %2590 = vrot.lane.b32.xlu0 %v6554_v19, %s5464_s2 }
 0x8b6   :  { %2592 = vrot.lane.b32.xlu1 %v6562_v37, %s5464_s2  ;;  %2622 = vrot.lane.b32.xlu0 %v6554_v19, %s5447_s14 }
 0x8ba   :  { %2624 = vrot.lane.b32.xlu1 %v6562_v37, %s5447_s14  ;;  %2654 = vrot.lane.b32.xlu0 %v6554_v19, %s5461_s13 }
 0x8be   :  { %2656 = vrot.lane.b32.xlu1 %v6562_v37, %s5461_s13  ;;  %2686 = vrot.lane.b32.xlu0 %v6554_v19, %s5458_s18 }
 0x8c2   :  { %2688 = vrot.lane.b32.xlu1 %v6562_v37, %s5458_s18  ;;  %2814 = vrot.lane.b32.xlu0 %v6549_v25, %s5465_s1 }
 0x8c6   :  { %2816 = vrot.lane.b32.xlu1 %v6560_v40, %s5465_s1  ;;  %2722 = vrot.lane.b32.xlu0 %v6554_v19, %s5460_s8 }
 0x8ca   :  { %2724 = vrot.lane.b32.xlu1 %v6562_v37, %s5460_s8  ;;  %2754 = vrot.lane.b32.xlu0 %v6554_v19, %s5463_s27 }
 0x8ce   :  { %2756 = vrot.lane.b32.xlu1 %v6562_v37, %s5463_s27  ;;  %2786 = vrot.lane.b32.xlu0 %v6554_v19, %s5462_s25 }
 0x8d2   :  { %2788 = vrot.lane.b32.xlu1 %v6562_v37, %s5462_s25  ;;  %2818 = vrot.lane.b32.xlu0 %v6554_v19, %s5465_s1 }
 0x8d6   :  { %2820 = vrot.lane.b32.xlu1 %v6562_v37, %s5465_s1 }
 0x908   :  { %v2587_v55 = vpop.permute.xlu0 %2586 }
 0x90c   :  { %v2589_v56 = vpop.permute.xlu1 %2588  ;;  %v2619_v23 = vpop.permute.xlu0 %2618 }
 0x910   :  { %v2621_v17 = vpop.permute.xlu1 %2620  ;;  %v2651_v18 = vpop.permute.xlu0 %2650 }
 0x914   :  { %v2653_v28 = vpop.permute.xlu1 %2652  ;;  %v6640_v50 = vpop.permute.xlu0 %2682 }
 0x918   :  { %v6642_v49 = vpop.permute.xlu1 %2684  ;;  %v6644_v57 = vpop.permute.xlu0 %2718 }
 0x91c   :  { %v6646_v59 = vpop.permute.xlu1 %2720  ;;  %v6648_v43 = vpop.permute.xlu0 %2750 }
 0x920   :  { %v6650_v60 = vpop.permute.xlu1 %2752  ;;  %v6652_v12 = vpop.permute.xlu0 %2782 }
 0x924   :  { %v6656_v21 = vpop.permute.xlu1 %2784  ;;  %v2591_v54 = vpop.permute.xlu0 %2590 }
 0x925   :  { %v2594_v8 = vsel %vm7475_vm10, %v2587_v55, %v2591_v54  ;;  %v2596_v9 = vsel %vm7476_vm11, %v2591_v54, %v2587_v55  ;;  %v2703_v54 = vrot.slane %v2694_v47, %v5675_v15  ;;  %vm7487_vm10 = vcmp.lt.s32.totalorder %v5792_v34, 112 }
 0x926   :  { %v2610_v33 = vmul.f32 %v2603_v44, %v2596_v9  ;;  %v2611_v41 = vmul.f32 %v2607_v45, %v2594_v8  ;;  %vm7488_vm11 = vmmov %vm7487_vm10 }
 0x928   :  { %2614 = vst [vmem:[#allocation2] sm:$0xff] %v2610_v33  ;;  %2615 = vst [vmem:[#allocation2 + $0x8] sm:$0xff] %v2611_v41  ;;  %v2593_v26 = vpop.permute.xlu1 %2592  ;;  %v2623_v16 = vpop.permute.xlu0 %2622 }
 0x929   :  { %v2595_v58 = vsel %vm7477_vm13, %v2589_v56, %v2593_v26  ;;  %v2597_v62 = vsel %vm7478_vm15, %v2593_v26, %v2589_v56  ;;  %v2626_v63 = vsel %vm442_vm3, %v2619_v23, %v2623_v16  ;;  %v2628_v38 = vsel %vm442_vm3, %v2623_v16, %v2619_v23  ;;  %vm7489_vm13 = vmmov %vm7487_vm10 }
 0x92a   :  { %v2612_v61 = vmul.f32 %v2603_v44, %v2597_v62  ;;  %v2613_v2 = vmul.f32 %v2607_v45, %v2595_v58  ;;  %v2642_v4 = vmul.f32 %v2635_v46, %v2628_v38  ;;  %v2643_v5 = vmul.f32 %v2639_v52, %v2626_v63  ;;  %vm7490_vm15 = vmmov %vm7487_vm10 }
 0x92c   :  { %2616 = vst [vmem:[#allocation2 + $0x10] sm:$0xff] %v2612_v61  ;;  %2617 = vst [vmem:[#allocation2 + $0x18] sm:$0xff] %v2613_v2  ;;  %v2625_v11 = vpop.permute.xlu1 %2624  ;;  %v2655_v0 = vpop.permute.xlu0 %2654  ;;  %v4975_v29 = vpack.c.bf16 %v2613_v2, %v2611_v41  ;;  %v4977_v13 = vpack.c.bf16 %v2612_v61, %v2610_v33  ;;  %v2730_v2 = vld [vmem:[#allocation12 + $0x5] ss:$8 sm:$0x3] }
 0x92d   :  { %2646 = vst [vmem:[#allocation2 + $0x20] sm:$0xff] %v2642_v4  ;;  %2647 = vst [vmem:[#allocation2 + $0x28] sm:$0xff] %v2643_v5  ;;  %v2627_v36 = vsel %vm442_vm3, %v2621_v17, %v2625_v11  ;;  %v2629_v35 = vsel %vm442_vm3, %v2625_v11, %v2621_v17  ;;  %v2658_v48 = vsel %vm468_vm4, %v2651_v18, %v2655_v0 }
 0x92e   :  { %v6676_v30 = vmul.f32 %v2635_v46, %v2629_v35  ;;  %v6678_v6 = vmul.f32 %v2639_v52, %v2627_v36  ;;  %4976 = vmatprep.subr.bf16.mxu0 %v4975_v29  ;;  %v2660_v55 = vsel %vm468_vm4, %v2655_v0, %v2651_v18  ;;  %v2675_v9 = vmul.f32 %v2671_v7, %v2658_v48  ;;  %v2762_v29 = vld [vmem:[#allocation12 + $0x6] ss:$8 sm:$0x3] }
 0x92f   :  { %4978 = vmatpush1.bf16.msra.mxu0 %v4977_v13  ;;  %v2674_v8 = vmul.f32 %v2667_v24, %v2660_v55  ;;  %v2735_v0 = vrot.slane %v2730_v2, %v5673_v14  ;;  %v2767_v48 = vrot.slane %v2762_v29, %v5673_v14 }
 0x930   :  { %v2657_v56 = vpop.permute.xlu1 %2656  ;;  %v2687_v23 = vpop.permute.xlu0 %2686  ;;  %v4979_v17 = vpack.c.bf16 %v6678_v6, %v2643_v5  ;;  %v4981_v51 = vpack.c.bf16 %v6676_v30, %v2642_v4 }
 0x931   :  { %v2659_v44 = vsel %vm468_vm4, %v2653_v28, %v2657_v56  ;;  %v2661_v45 = vsel %vm468_vm4, %v2657_v56, %v2653_v28  ;;  %v2690_v41 = vsel %vm494_vm5, %v6640_v50, %v2687_v23  ;;  %v2692_v46 = vsel %vm494_vm5, %v2687_v23, %v6640_v50 }
 0x932   :  { %v2676_v18 = vmul.f32 %v2667_v24, %v2661_v45  ;;  %v2677_v33 = vmul.f32 %v2671_v7, %v2659_v44  ;;  %4980 = vmatprep.subr.bf16.mxu0 %v4979_v17  ;;  %v2706_v63 = vmul.f32 %v2699_v53, %v2692_v46  ;;  %v2707_v38 = vmul.f32 %v2703_v54, %v2690_v41 }
 0x933   :  { %4982 = vmatpush1.bf16.msra.mxu0 %v4981_v51  ;;  %v2794_v51 = vld [vmem:[#allocation12 + $0x7] ss:$8 sm:$0x3] }
 0x934   :  { %v2689_v52 = vpop.permute.xlu1 %2688  ;;  %v6700_v28 = vpop.permute.xlu0 %2814  ;;  %v6702_v26 = vpack.c.bf16 %v2677_v33, %v2675_v9  ;;  %v6704_v16 = vpack.c.bf16 %v2676_v18, %v2674_v8  ;;  %v2803_v8 = vrot.slane %v2794_v51, %v5675_v15  ;;  %v2826_v18 = vld [vmem:[#allocation12 + $0x10] ss:$8 sm:$0x3] }
 0x935   :  { %v2691_v58 = vsel %vm494_vm5, %v6642_v49, %v2689_v52  ;;  %v2693_v62 = vsel %vm494_vm5, %v2689_v52, %v6642_v49  ;;  %v2739_v49 = vrot.slane %v2730_v2, %v5675_v15 }
 0x936   :  { %v2708_v61 = vmul.f32 %v2699_v53, %v2693_v62  ;;  %v2709_v50 = vmul.f32 %v2703_v54, %v2691_v58  ;;  %4984 = vmatprep.subr.bf16.mxu0 %v6702_v26 }
 0x937   :  { %4986 = vmatpush1.bf16.msra.mxu0 %v6704_v16 }
 0x938   :  { %v6714_v4 = vpop.permute.xlu1 %2816  ;;  %v2723_v5 = vpop.permute.xlu0 %2722  ;;  %v6716_v42 = vpack.c.bf16 %v2709_v50, %v2707_v38  ;;  %v6718_v11 = vpack.c.bf16 %v2708_v61, %v2706_v63  ;;  %v2831_v38 = vrot.slane %v2826_v18, %v5673_v14 }
 0x939   :  { %v2726_v13 = vsel %vm7479_vm12, %v6644_v57, %v2723_v5  ;;  %v2728_v36 = vsel %vm7480_vm14, %v2723_v5, %v6644_v57  ;;  %v2771_v57 = vrot.slane %v2762_v29, %v5675_v15  ;;  %vm7491_vm12 = vcmp.lt.s32.totalorder %v5792_v34, 111 }
 0x93a   :  { %4988 = vmatprep.subr.bf16.mxu0 %v6716_v42  ;;  %v2742_v55 = vmul.f32 %v2735_v0, %v2726_v13  ;;  %v2743_v56 = vmul.f32 %v2739_v49, %v2728_v36  ;;  %vm7492_vm14 = vmmov %vm7491_vm12 }
 0x93b   :  { %4990 = vmatpush1.bf16.msra.mxu0 %v6718_v11 }
 0x93c   :  { %v2725_v35 = vpop.permute.xlu1 %2724  ;;  %v2755_v24 = vpop.permute.xlu0 %2754  ;;  %4992 = vmatprep.subr.bf16.mxu0 %v4991_v27 }
 0x93d   :  { %v2727_v7 = vsel %vm7481_vm1, %v6646_v59, %v2725_v35  ;;  %v2729_v47 = vsel %vm7482_vm2, %v2725_v35, %v6646_v59  ;;  %v2758_v19 = vsel %vm7483_vm6, %v6648_v43, %v2755_v24  ;;  %v2760_v37 = vsel %vm7484_vm7, %v2755_v24, %v6648_v43  ;;  %vm7493_vm1 = vmmov %vm7491_vm12 }
 0x93e   :  { %v2744_v23 = vmul.f32 %v2735_v0, %v2727_v7  ;;  %v2745_v17 = vmul.f32 %v2739_v49, %v2729_v47  ;;  %v2799_v43 = vrot.slane %v2794_v51, %v5673_v14  ;;  %v2774_v25 = vmul.f32 %v2767_v48, %v2758_v19  ;;  %vm7494_vm2 = vmmov %vm7493_vm1  ;;  %v3078_v19 = vld [vmem:[#allocation9 + $0x90] sm:$0xff] }
 0x93f   :  { %4994 = vmatpush1.bf16.msra.mxu0 %v4993_v10  ;;  %v2775_v40 = vmul.f32 %v2771_v57, %v2760_v37  ;;  %v3079_v37 = vld [vmem:[#allocation9 + $0x98] sm:$0xff] }
 0x940   :  { %v2757_v27 = vpop.permute.xlu1 %2756  ;;  %v2787_v59 = vpop.permute.xlu0 %2786  ;;  %v6750_v44 = vpack.c.bf16 %v2745_v17, %v2743_v56  ;;  %v6752_v45 = vpack.c.bf16 %v2744_v23, %v2742_v55  ;;  %v3077_v55 = vld [vmem:[#allocation9 + $0x88] sm:$0xff]  ;;  %v3060_v23 = vld [vmem:[#allocation9] sm:$0xff] }
 0x941   :  { %v2759_v53 = vsel %vm7485_vm8, %v6650_v60, %v2757_v27  ;;  %v2761_v54 = vsel %vm7486_vm9, %v2757_v27, %v6650_v60  ;;  %v2790_v33 = vsel %vm7487_vm10, %v6652_v12, %v2787_v59  ;;  %v2792_v41 = vsel %vm7488_vm11, %v2787_v59, %v6652_v12  ;;  %v3061_v17 = vld [vmem:[#allocation9 + $0x8] sm:$0xff]  ;;  %v3062_v59 = vld [vmem:[#allocation9 + $0x10] sm:$0xff] }
 0x942   :  { %v2776_v10 = vmul.f32 %v2767_v48, %v2759_v53  ;;  %v2777_v9 = vmul.f32 %v2771_v57, %v2761_v54  ;;  %4996 = vmatprep.subr.bf16.mxu0 %v6750_v44  ;;  %v2835_v12 = vrot.slane %v2826_v18, %v5675_v15  ;;  %v2806_v61 = vmul.f32 %v2799_v43, %v2790_v33  ;;  %v3063_v53 = vld [vmem:[#allocation9 + $0x18] sm:$0xff]  ;;  %v3066_v33 = vld [vmem:[#allocation9 + $0x30] sm:$0xff] }
 0x943   :  { %4998 = vmatpush1.bf16.msra.mxu0 %v6752_v45  ;;  %v2807_v50 = vmul.f32 %v2803_v8, %v2792_v41  ;;  %v5013_v51 = vpack.c.bf16 %v3061_v17, %v3060_v23  ;;  %v5015_v27 = vpack.c.bf16 %v3079_v37, %v3078_v19  ;;  %v5017_v54 = vpack.c.bf16 %v3063_v53, %v3062_v59  ;;  %v3067_v41 = vld [vmem:[#allocation9 + $0x38] sm:$0xff]  ;;  %v3074_v23 = vld [vmem:[#allocation9 + $0x70] sm:$0xff]  ;;  %v1614_v19 = vld [vmem:[#allocation10] sm:$0x3] }
 0x944   :  { %v2789_v60 = vpop.permute.xlu1 %2788  ;;  %v2819_v46 = vpop.permute.xlu0 %2818  ;;  %v6770_v52 = vpack.c.bf16 %v2777_v9, %v2775_v40  ;;  %v6772_v58 = vpack.c.bf16 %v2776_v10, %v2774_v25  ;;  %v3065_v25 = vld [vmem:[#allocation9 + $0x28] sm:$0xff]  ;;  %v3082_v10 = vld [vmem:[#allocation9 + $0xb0] sm:$0xff]  ;;  %v3083_v9 = vld [vmem:[#allocation9 + $0xb8] sm:$0xff]  ;;  %v1831_v37 = vrot.slane %v1614_v19, %v5673_v14 }
 0x945   :  { %v2791_v62 = vsel %vm7489_vm13, %v6656_v21, %v2789_v60  ;;  %v2793_v63 = vsel %vm7490_vm15, %v2789_v60, %v6656_v21  ;;  %v2822_v0 = vsel %vm7491_vm12, %v6700_v28, %v2819_v46  ;;  %v2824_v49 = vsel %vm7492_vm14, %v2819_v46, %v6700_v28  ;;  %v3084_v46 = vld [vmem:[#allocation9 + $0xc0] sm:$0xff]  ;;  %v3075_v17 = vld [vmem:[#allocation9 + $0x78] sm:$0xff] }
 0x946   :  { %v2808_v2 = vmul.f32 %v2799_v43, %v2791_v62  ;;  %v2809_v5 = vmul.f32 %v2803_v8, %v2793_v63  ;;  %5000 = vmatprep.subr.bf16.mxu0 %v6770_v52  ;;  %v2838_v24 = vmul.f32 %v2831_v38, %v2822_v0  ;;  %v2839_v7 = vmul.f32 %v2835_v12, %v2824_v49  ;;  %v3080_v43 = vld [vmem:[#allocation9 + $0xa0] sm:$0xff]  ;;  %v3085_v62 = vld [vmem:[#allocation9 + $0xc8] sm:$0xff]  ;;  %v3070_v0 = vld [vmem:[#allocation9 + $0x50] sm:$0xff] }
 0x947   :  { %5002 = vmatpush1.bf16.msra.mxu0 %v6772_v58  ;;  %v5023_v18 = vpack.c.bf16 %v3083_v9, %v3082_v10  ;;  %v5025_v60 = vpack.c.bf16 %v3067_v41, %v3066_v33  ;;  %v5027_v63 = vpack.c.bf16 %v3085_v62, %v3084_v46  ;;  %v3071_v49 = vld [vmem:[#allocation9 + $0x58] sm:$0xff]  ;;  %v1838_v53 = vmul.f32 %v1831_v37, %v6387_v20 }
 0x948   :  { %v2821_v21 = vpop.permute.xlu1 %2820  ;;  %v6790_v29 = vpack.c.bf16 %v2809_v5, %v2807_v50  ;;  %v6792_v13 = vpack.c.bf16 %v2808_v2, %v2806_v61  ;;  %v3086_v50 = vld [vmem:[#allocation9 + $0xd0] sm:$0xff]  ;;  %v3087_v2 = vld [vmem:[#allocation9 + $0xd8] sm:$0xff] }
 0x949   :  { %v2823_v36 = vsel %vm7493_vm1, %v6714_v4, %v2821_v21  ;;  %v2825_v35 = vsel %vm7494_vm2, %v2821_v21, %v6714_v4  ;;  %v3076_v4 = vld [vmem:[#allocation9 + $0x80] sm:$0xff]  ;;  %v5031_v5 = vpack.c.bf16 %v3087_v2, %v3086_v50  ;;  %v5033_v21 = vpack.c.bf16 %v3071_v49, %v3070_v0 }
 0x94a   :  { %v2840_v47 = vmul.f32 %v2831_v38, %v2823_v36  ;;  %v2841_v48 = vmul.f32 %v2835_v12, %v2825_v35  ;;  %5004 = vmatprep.subr.bf16.mxu0 %v6790_v29  ;;  %v5011_v56 = vpack.c.bf16 %v3077_v55, %v3076_v4  ;;  %v3068_v38 = vld [vmem:[#allocation9 + $0x40] sm:$0xff]  ;;  %v3069_v12 = vld [vmem:[#allocation9 + $0x48] sm:$0xff]  ;;  %v3090_v4 = vld [vmem:[#allocation9 + $0xf0] sm:$0xff]  ;;  %vm1840_vm8 = vcmp.eq.f32.partialorder %v1838_v53, %v1838_v53 }
 0x94b   :  { %5006 = vmatpush1.bf16.msra.mxu0 %v6792_v13  ;;  %v5029_v61 = vpack.c.bf16 %v3069_v12, %v3068_v38  ;;  %v3088_v36 = vld [vmem:[#allocation9 + $0xe0] sm:$0xff]  ;;  %v3089_v35 = vld [vmem:[#allocation9 + $0xe8] sm:$0xff]  ;;  %v3091_v55 = vld [vmem:[#allocation9 + $0xf8] sm:$0xff] }
 0x94c   :  { %v6802_v28 = vpack.c.bf16 %v2841_v48, %v2839_v7  ;;  %v6804_v57 = vpack.c.bf16 %v2840_v47, %v2838_v24  ;;  %5012 = vmatprep.subr.bf16.mxu1 %v5011_v56  ;;  %v5035_v24 = vpack.c.bf16 %v3089_v35, %v3088_v36  ;;  %v3072_v7 = vld [vmem:[#allocation9 + $0x60] sm:$0xff]  ;;  %v3073_v47 = vld [vmem:[#allocation9 + $0x68] sm:$0xff]  ;;  %v5039_v56 = vpack.c.bf16 %v3091_v55, %v3090_v4 }
 0x94d   :  { %5014 = vmatpush3.bf16.msra.mxu1 %v5013_v51  ;;  %v5037_v48 = vpack.c.bf16 %v3073_v47, %v3072_v7  ;;  %v5041_v51 = vpack.c.bf16 %v3075_v17, %v3074_v23  ;;  %v4549_v59 = vld.sshfl [vmem:[%s7432_s11] sm:$0x33 pattern:$0x76325410] }
 0x94e   :  { %5008 = vmatprep.subr.bf16.mxu0 %v6802_v28  ;;  %5016 = vmatprep.subr.bf16.mxu1 %v5015_v27  ;;  %v1835_v27 = vrot.slane %v1614_v19, %v5675_v15 }
 0x94f   :  { %5010 = vmatpush1.bf16.msra.mxu0 %v6804_v57 }
 0x951   :  { %5018 = vmatpush3.bf16.msra.mxu1 %v5017_v54  ;;  %v1839_v54 = vmul.f32 %v1835_v27, %v6392_v39  ;;  %v3166_v39 = vld [vmem:[#allocation7] sm:$0xff] }
 0x952   :  { %2972 = vmatmul.mubr.f32.vlgmr.msra.gmra.mrb[12].mxu0 %v6629_v22  ;;  %v3081_v22 = vld [vmem:[#allocation9 + $0xa8] sm:$0xff] }
 0x953   :  { %3262 = vmatprep.mubr.f32.mxu0 %v5459_v1  ;;  %v5019_v8 = vpack.c.bf16 %v3081_v22, %v3080_v43  ;;  %v3064_v1 = vld [vmem:[#allocation9 + $0x20] sm:$0xff]  ;;  %v2902_v43 = vcombine.high %v4549_v59, %v4549_v59  ;;  %vm1841_vm10 = vcmp.eq.f32.partialorder %v1839_v54, %v1839_v54 }
 0x954   :  { %v5021_v40 = vpack.c.bf16 %v3065_v25, %v3064_v1 }
 0x955   :  { %5020 = vmatprep.subr.bf16.mxu1 %v5019_v8  ;;  %v1842_v8 = vand.u32 2147483647, %v1838_v53 }
 0x956   :  { %5022 = vmatpush3.bf16.msra.mxu1 %v5021_v40  ;;  %v1843_v40 = vand.u32 2147483647, %v1839_v54 }
 0x957   :  { %5024 = vmatprep.subr.bf16.mxu1 %v5023_v18  ;;  %v2992_v18 = vmul.f32 %v1614_v19, %v6194_v31  ;;  %vm1844_vm6 = vcmp.lt.f32.partialorder %v1842_v8, inf }
 0x958   :  { %vm1845_vm7 = vcmp.lt.f32.partialorder %v1843_v40, inf  ;;  %vm6820_vm9 = vmand %vm1840_vm8, %vm1844_vm6 }
 0x959   :  { %v3010_v46 = vmul.f32 4.0, %v2992_v18  ;;  %v2997_v62 = vrot.slane %v2992_v18, %v5673_v14  ;;  %vm1847_vm11 = vmand %vm1841_vm10, %vm1845_vm7  ;;  %v1848_v50 = vsel %vm6820_vm9, %v1838_v53, 0.0 }
 0x95a   :  { %5026 = vmatpush3.bf16.msra.mxu1 %v5025_v60  ;;  %v1849_v0 = vsel %vm1847_vm11, %v1839_v54, 0.0 }
 0x95b   :  { %5028 = vmatprep.subr.bf16.mxu1 %v5027_v63  ;;  %v3015_v38 = vrot.slane %v3010_v46, %v5673_v14  ;;  %v3019_v2 = vrot.slane %v3010_v46, %v5675_v15  ;;  %v3043_v8 = vmul.f32 2.0, %v1849_v0 }
 0x95d   :  { %v3022_v36 = vmul.f32 %v3015_v38, %v1848_v50 }
 0x95e   :  { %5030 = vmatpush3.bf16.msra.mxu1 %v5029_v61 }
 0x95f   :  { %5032 = vmatprep.subr.bf16.mxu1 %v5031_v5 }
 0x962   :  { %5034 = vmatpush3.bf16.msra.mxu1 %v5033_v21 }
 0x963   :  { %5036 = vmatprep.subr.bf16.mxu1 %v5035_v24  ;;  %v3023_v24 = vmul.f32 %v3019_v2, %v1849_v0  ;;  %v3177_v2 = vld [vmem:[#allocation7 + $0x58] sm:$0xff] }
 0x966   :  { %5038 = vmatpush3.bf16.msra.mxu1 %v5037_v48 }
 0x967   :  { %5040 = vmatprep.subr.bf16.mxu1 %v5039_v56 }
 0x96a   :  { %5042 = vmatpush3.bf16.msra.mxu1 %v5041_v51 }
 0xa25   :  { %v2973_v22 = vpop.f32.mrb[12].mxu0 }
 0xa26   :  { %v2974_v1 = vadd.f32 %v4549_v59, %v2973_v22  ;;  %v2975_v25 = vpop.f32.mrb[13].mxu0 }
 0xa27   :  { %v2976_v10 = vadd.f32 %v2975_v25, %v2902_v43  ;;  %v3042_v43 = vmul.f32 2.0, %v1848_v50  ;;  %v3175_v50 = vld [vmem:[#allocation7 + $0x48] sm:$0xff] }
 0xa28   :  { %v2978_v9 = vadd.f32 %v2974_v1, %v6207_v32  ;;  %v3001_v32 = vrot.slane %v2992_v18, %v5675_v15  ;;  %v5051_v0 = vpack.c.bf16 %v3177_v2, %v3175_v50  ;;  %v3900_v18 = vld [vmem:[#allocation16 + $0x8] sm:$0xff] }
 0xa29   :  { %v2979_v33 = vadd.f32 %v2976_v10, %v6209_v3 }
 0xa2a   :  { %v2980_v41 = vmax.f32 %v2978_v9, 0.0 }
 0xa2b   :  { %v2981_v60 = vmax.f32 %v2979_v33, 0.0 }
 0xa2c   :  { %v2984_v20 = vand.u32 2147483647, %v2980_v41  ;;  %vm2982_vm13 = vcmp.eq.f32.partialorder %v2980_v41, %v2980_v41 }
 0xa2d   :  { %v2985_v63 = vand.u32 2147483647, %v2981_v60  ;;  %vm2983_vm14 = vcmp.eq.f32.partialorder %v2981_v60, %v2981_v60 }
 0xa2e   :  { %vm2986_vm15 = vcmp.lt.f32.partialorder %v2984_v20, inf  ;;  %v3169_v20 = vld [vmem:[#allocation7 + $0x18] sm:$0xff] }
 0xa2f   :  { %vm2988_vm12 = vmand %vm2982_vm13, %vm2986_vm15  ;;  %vm2987_vm1 = vcmp.lt.f32.partialorder %v2985_v63, inf  ;;  %v3171_v63 = vld [vmem:[#allocation7 + $0x28] sm:$0xff] }
 0xa30   :  { %v2990_v3 = vsel %vm2988_vm12, %v2980_v41, 0.0  ;;  %vm2989_vm2 = vmand %vm2983_vm14, %vm2987_vm1  ;;  %v3509_v41 = vld [vmem:[#allocation13 + $0x8] sm:$0xff]  ;;  %vm7501_vm1 = vcmp.lt.s32.totalorder %v5792_v34, 127 }
 0xa31   :  { %v3004_v12 = vmul.f32 %v2997_v62, %v2990_v3  ;;  %v2991_v61 = vsel %vm2989_vm2, %v2981_v60, 0.0  ;;  %v3167_v60 = vld [vmem:[#allocation7 + $0x8] sm:$0xff]  ;;  %v3168_v62 = vld [vmem:[#allocation7 + $0x10] sm:$0xff]  ;;  %vm7502_vm2 = vmmov %vm7501_vm1 }
 0xa32   :  { %v3005_v5 = vmul.f32 %v3001_v32, %v2991_v61  ;;  %v5043_v46 = vpack.c.bf16 %v3169_v20, %v3167_v60  ;;  %v3173_v32 = vld [vmem:[#allocation7 + $0x38] sm:$0xff]  ;;  %v5045_v3 = vpack.c.bf16 %v3168_v62, %v3166_v39  ;;  %v3172_v61 = vld [vmem:[#allocation7 + $0x30] sm:$0xff] }
 0xa33   :  { %v3006_v49 = vsub.f32 1.0, %v3004_v12  ;;  %v5047_v38 = vpack.c.bf16 %v3173_v32, %v3171_v63  ;;  %v3170_v12 = vld [vmem:[#allocation7 + $0x20] sm:$0xff]  ;;  %v3197_v60 = vld [vmem:[#allocation7 + $0xf8] sm:$0xff]  ;;  %v3196_v62 = vld [vmem:[#allocation7 + $0xf0] sm:$0xff] }
 0xa34   :  { %v3007_v21 = vsub.f32 1.0, %v3005_v5  ;;  %5044 = vmatprep.subr.bf16.mxu0 %v5043_v46  ;;  %v5049_v5 = vpack.c.bf16 %v3172_v61, %v3170_v12  ;;  %v3194_v46 = vld [vmem:[#allocation7 + $0xe0] sm:$0xff] }
 0xa35   :  { %v3008_v35 = vmul.f32 %v3006_v49, %v3006_v49  ;;  %5046 = vmatpush1.bf16.msra.mxu0 %v5045_v3  ;;  %v5073_v63 = vpack.c.bf16 %v3196_v62, %v3194_v46  ;;  %v3322_v32 = vld [vmem:[#allocation12 + $0x1] ss:$8 sm:$0x3]  ;;  %v3350_v61 = vld [vmem:[#allocation12 + $0x2] ss:$8 sm:$0x3] }
 0xa36   :  { %v3009_v7 = vmul.f32 %v3007_v21, %v3007_v21  ;;  %5048 = vmatprep.subr.bf16.mxu0 %v5047_v38  ;;  %v3327_v3 = vrot.slane %v3322_v32, %v5673_v14  ;;  %v3331_v38 = vrot.slane %v3322_v32, %v5675_v15 }
 0xa37   :  { %v3024_v47 = vadd.f32 %v3022_v36, %v3008_v35  ;;  %v3179_v36 = vld [vmem:[#allocation7 + $0x68] sm:$0xff]  ;;  %v3181_v35 = vld [vmem:[#allocation7 + $0x78] sm:$0xff] }
 0xa38   :  { %v3025_v48 = vadd.f32 %v3023_v24, %v3009_v7  ;;  %v5055_v7 = vpack.c.bf16 %v3181_v35, %v3179_v36  ;;  %v3359_v36 = vrot.slane %v3350_v61, %v5675_v15 }
 0xa39   :  { %5217 = vrsqrt.f32 %v3024_v47  ;;  %vm3028_vm6 = vcmp.eq.f32.partialorder %v3024_v47, inf  ;;  %v3031_v23 = vand.u32 2147483648, %v3024_v47  ;;  %vm3030_vm7 = vcmp.eq.f32.partialorder %v3024_v47, 0.0  ;;  %5050 = vmatpush1.bf16.msra.mxu0 %v5049_v5 }
 0xa3a   :  { %5219 = vrsqrt.f32 %v3025_v48  ;;  %vm3035_vm8 = vcmp.eq.f32.partialorder %v3025_v48, inf  ;;  %v3038_v19 = vand.u32 2147483648, %v3025_v48  ;;  %vm3037_vm9 = vcmp.eq.f32.partialorder %v3025_v48, 0.0  ;;  %5052 = vmatprep.subr.bf16.mxu0 %v5051_v0 }
 0xa43   :  { %v5218_v4 = vpop.eup %5217 }
 0xa44   :  { %v5220_v55 = vpop.eup %5219  ;;  %v3027_v56 = vmul.f32 %v5218_v4, %v3024_v47 }
 0xa45   :  { %v3034_v17 = vmul.f32 %v5220_v55, %v3025_v48  ;;  %v3183_v55 = vld [vmem:[#allocation7 + $0x88] sm:$0xff] }
 0xa46   :  { %v3029_v51 = vsel %vm3028_vm6, %v3024_v47, %v3027_v56  ;;  %v3178_v47 = vld [vmem:[#allocation7 + $0x60] sm:$0xff]  ;;  %v3185_v56 = vld [vmem:[#allocation7 + $0x98] sm:$0xff]  ;;  %vm7503_vm6 = vcmp.lt.s32.totalorder %v5792_v34, 113 }
 0xa47   :  { %v3032_v37 = vsel %vm3030_vm7, %v3031_v23, %v3029_v51  ;;  %v3036_v27 = vsel %vm3035_vm8, %v3025_v48, %v3034_v17  ;;  %v3180_v48 = vld [vmem:[#allocation7 + $0x70] sm:$0xff]  ;;  %v5059_v23 = vpack.c.bf16 %v3185_v56, %v3183_v55  ;;  %v3182_v17 = vld [vmem:[#allocation7 + $0x80] sm:$0xff]  ;;  %vm7504_vm7 = vmmov %vm7503_vm6  ;;  %vm7505_vm8 = vcmp.lt.s32.totalorder %v5792_v34, 112 }
 0xa48   :  { %v3040_v59 = vadd.f32 %v3032_v37, %v3006_v49  ;;  %v3039_v53 = vsel %vm3037_vm9, %v3038_v19, %v3036_v27  ;;  %v3174_v49 = vld [vmem:[#allocation7 + $0x40] sm:$0xff]  ;;  %v5057_v4 = vpack.c.bf16 %v3180_v48, %v3178_v47  ;;  %v3184_v51 = vld [vmem:[#allocation7 + $0x90] sm:$0xff]  ;;  %v3187_v37 = vld [vmem:[#allocation7 + $0xa8] sm:$0xff] }
 0xa49   :  { %v3041_v54 = vadd.f32 %v3039_v53, %v3007_v21  ;;  %v3176_v21 = vld [vmem:[#allocation7 + $0x50] sm:$0xff]  ;;  %v5061_v19 = vpack.c.bf16 %v3184_v51, %v3182_v17  ;;  %v3189_v27 = vld [vmem:[#allocation7 + $0xb8] sm:$0xff]  ;;  %v3186_v53 = vld [vmem:[#allocation7 + $0xa0] sm:$0xff] }
 0xa4a   :  { %5221 = vrcp.f32 %v3040_v59  ;;  %v5053_v24 = vpack.c.bf16 %v3176_v21, %v3174_v49  ;;  %v5063_v59 = vpack.c.bf16 %v3189_v27, %v3187_v37  ;;  %v3355_v21 = vrot.slane %v3350_v61, %v5673_v14  ;;  %v3408_v37 = vld [vmem:[#allocation12 + $0x5] ss:$8 sm:$0x3]  ;;  %v3464_v61 = vld [vmem:[#allocation12 + $0x7] ss:$8 sm:$0x3]  ;;  %vm7506_vm9 = vmmov %vm7505_vm8 }
 0xa4b   :  { %5223 = vrcp.f32 %v3041_v54  ;;  %v3188_v54 = vld [vmem:[#allocation7 + $0xb0] sm:$0xff] }
 0xa4c   :  { %5054 = vmatpush1.bf16.msra.mxu0 %v5053_v24  ;;  %v3378_v24 = vld [vmem:[#allocation12 + $0x3] ss:$8 sm:$0x3] }
 0xa4d   :  { %5056 = vmatprep.subr.bf16.mxu0 %v5055_v7  ;;  %v3383_v17 = vrot.slane %v3378_v24, %v5673_v14  ;;  %v3387_v51 = vrot.slane %v3378_v24, %v5675_v15  ;;  %v3473_v24 = vrot.slane %v3464_v61, %v5675_v15 }
 0xa50   :  { %5058 = vmatpush1.bf16.msra.mxu0 %v5057_v4 }
 0xa51   :  { %5060 = vmatprep.subr.bf16.mxu0 %v5059_v23 }
 0xa54   :  { %v5222_v22 = vpop.eup %5221  ;;  %5062 = vmatpush1.bf16.msra.mxu0 %v5061_v19 }
 0xa55   :  { %v5224_v1 = vpop.eup %5223  ;;  %v6830_v25 = vmul.f32 %v5222_v22, %v3042_v43  ;;  %v5065_v43 = vpack.c.bf16 %v3188_v54, %v3186_v53  ;;  %v3191_v22 = vld [vmem:[#allocation7 + $0xc8] sm:$0xff]  ;;  %5064 = vmatprep.subr.bf16.mxu0 %v5063_v59 }
 0xa56   :  { %v6832_v40 = vmul.f32 %v5224_v1, %v3043_v8  ;;  %v3193_v8 = vld [vmem:[#allocation7 + $0xd8] sm:$0xff]  ;;  %v3190_v1 = vld [vmem:[#allocation7 + $0xc0] sm:$0xff] }
 0xa57   :  { %3400 = vst [vmem:[#allocation2 + $0x10] sm:$0x3] %v6830_v25  ;;  %3316 = vrot.lane.b32.xlu0 %v6830_v25, %s5447_s14  ;;  %v3050_v10 = vand.u32 2147483647, %v6830_v25  ;;  %vm3048_vm12 = vcmp.eq.f32.partialorder %v6830_v25, %v6830_v25 }
 0xa58   :  { %3401 = vst [vmem:[#allocation2 + $0x18] sm:$0x3] %v6832_v40  ;;  %3318 = vrot.lane.b32.xlu1 %v6832_v40, %s5447_s14  ;;  %v3051_v9 = vand.u32 2147483647, %v6832_v40  ;;  %vm3049_vm11 = vcmp.eq.f32.partialorder %v6832_v40, %v6832_v40  ;;  %5066 = vmatpush1.bf16.msra.mxu0 %v5065_v43 }
 0xa59   :  { %vm3052_vm10 = vcmp.lt.f32.partialorder %v3050_v10, inf  ;;  %v5067_v10 = vpack.c.bf16 %v3193_v8, %v3191_v22 }
 0xa5a   :  { %vm3053_vm13 = vcmp.lt.f32.partialorder %v3051_v9, inf  ;;  %vm6857_vm14 = vmand %vm3048_vm12, %vm3052_vm10  ;;  %v3192_v9 = vld [vmem:[#allocation7 + $0xd0] sm:$0xff]  ;;  %vm7507_vm10 = vcmp.lt.s32.totalorder %v5792_v34, 17 }
 0xa5b   :  { %3344 = vrot.lane.b32.xlu0 %v6830_v25, %s5461_s13  ;;  %vm6846_vm15 = vmand %vm3049_vm11, %vm3053_vm13  ;;  %v5069_v20 = vpack.c.bf16 %v3192_v9, %v3190_v1  ;;  %5068 = vmatprep.subr.bf16.mxu0 %v5067_v10  ;;  %v3413_v1 = vrot.slane %v3408_v37, %v5673_v14  ;;  %v3417_v10 = vrot.slane %v3408_v37, %v5675_v15  ;;  %vm7509_vm13 = vcmp.lt.s32.totalorder %v5792_v34, 111 }
 0xa5c   :  { %3346 = vrot.lane.b32.xlu1 %v6832_v40, %s5461_s13  ;;  %4551 = vmatprep.mubr.msk.f32.mxu1 %vm6846_vm15, %v6832_v40  ;;  %vm7508_vm11 = vmmov %vm7507_vm10 }
 0xa5d   :  { %4552 = vmatmul.mubr.msk.f32.vlgmr.msra.gmra.mrb[14].mxu1 %vm6857_vm14, %v6830_v25  ;;  %5070 = vmatpush1.bf16.msra.mxu0 %v5069_v20  ;;  %vm7510_vm12 = vmmov %vm7509_vm13 }
 0xa5e   :  { %4554 = vmatprep.mubr.msk.f32.mxu1 %vm662_vm0, %v3509_v41  ;;  %v3195_v41 = vld [vmem:[#allocation7 + $0xe8] sm:$0xff] }
 0xa5f   :  { %3372 = vrot.lane.b32.xlu0 %v6830_v25, %s5458_s18  ;;  %v5071_v39 = vpack.c.bf16 %v3197_v60, %v3195_v41  ;;  %v3436_v41 = vld [vmem:[#allocation12 + $0x6] ss:$8 sm:$0x3] }
 0xa60   :  { %3374 = vrot.lane.b32.xlu1 %v6832_v40, %s5458_s18 }
 0xa61   :  { %5072 = vmatprep.subr.bf16.mxu0 %v5071_v39 }
 0xa62   :  { %5074 = vmatpush1.bf16.msra.mxu0 %v5073_v63 }
 0xa63   :  { %3402 = vrot.lane.b32.xlu0 %v6830_v25, %s5460_s8 }
 0xa64   :  { %3404 = vrot.lane.b32.xlu1 %v6832_v40, %s5460_s8 }
 0xa67   :  { %3430 = vrot.lane.b32.xlu0 %v6830_v25, %s5463_s27 }
 0xa68   :  { %3432 = vrot.lane.b32.xlu1 %v6832_v40, %s5463_s27 }
 0xa6b   :  { %3458 = vrot.lane.b32.xlu0 %v6830_v25, %s5462_s25 }
 0xa6c   :  { %3460 = vrot.lane.b32.xlu1 %v6832_v40, %s5462_s25 }
 0xa6f   :  { %3294 = vrot.lane.b32.xlu0 %v6830_v25, %s5464_s2 }
 0xa70   :  { %3296 = vrot.lane.b32.xlu1 %v6832_v40, %s5464_s2 }
 0xa73   :  { %3486 = vrot.lane.b32.xlu0 %v6830_v25, %s5465_s1 }
 0xa74   :  { %3488 = vrot.lane.b32.xlu1 %v6832_v40, %s5465_s1 }
 0xac9   :  { %v3317_v12 = vpop.permute.xlu0 %3316 }
 0xaca   :  { %v3319_v50 = vpop.permute.xlu1 %3318 }
 0xacb   :  { %v3320_v2 = vsel %vm442_vm3, %v3317_v12, %v3319_v50  ;;  %v3321_v5 = vsel %vm442_vm3, %v3319_v50, %v3317_v12 }
 0xacc   :  { %v3334_v0 = vmul.f32 %v3327_v3, %v3321_v5  ;;  %v3335_v49 = vmul.f32 %v3331_v38, %v3320_v2  ;;  %v3441_v3 = vrot.slane %v3436_v41, %v5673_v14  ;;  %v3445_v38 = vrot.slane %v3436_v41, %v5675_v15 }
 0xacd   :  { %v3345_v35 = vpop.permute.xlu0 %3344 }
 0xace   :  { %v3338_v7 = vrot.slane %v3334_v0, 6  ;;  %v3339_v47 = vrot.slane %v3335_v49, 6  ;;  %v3347_v48 = vpop.permute.xlu1 %3346 }
 0xacf   :  { %v3348_v4 = vsel %vm468_vm4, %v3345_v35, %v3347_v48  ;;  %v3349_v55 = vsel %vm468_vm4, %v3347_v48, %v3345_v35  ;;  %v3469_v35 = vrot.slane %v3464_v61, %v5673_v14 }
 0xad0   :  { %3342 = vst [vmem:[#allocation2] sm:$0xc] %v3338_v7  ;;  %3343 = vst [vmem:[#allocation2 + $0x8] sm:$0xc] %v3339_v47  ;;  %v3362_v56 = vmul.f32 %v3355_v21, %v3349_v55  ;;  %v3363_v23 = vmul.f32 %v3359_v36, %v3348_v4 }
 0xad1   :  { %v3373_v19 = vpop.permute.xlu0 %3372  ;;  %v3300_v47 = vld [vmem:[#allocation12] ss:$8 sm:$0x3] }
 0xad2   :  { %v3366_v27 = vrot.slane %v3362_v56, 4  ;;  %v3367_v59 = vrot.slane %v3363_v23, 4  ;;  %v3375_v53 = vpop.permute.xlu1 %3374  ;;  %v3309_v37 = vrot.slane %v3300_v47, %v5675_v15 }
 0xad3   :  { %v3376_v54 = vsel %vm494_vm5, %v3373_v19, %v3375_v53  ;;  %v3377_v43 = vsel %vm494_vm5, %v3375_v53, %v3373_v19  ;;  %v3305_v19 = vrot.slane %v3300_v47, %v5673_v14 }
 0xad4   :  { %3370 = vst [vmem:[#allocation2] sm:$0x30] %v3366_v27  ;;  %3371 = vst [vmem:[#allocation2 + $0x8] sm:$0x30] %v3367_v59  ;;  %v3390_v22 = vmul.f32 %v3383_v17, %v3377_v43  ;;  %v3391_v8 = vmul.f32 %v3387_v51, %v3376_v54 }
 0xad5   :  { %v3403_v9 = vpop.permute.xlu0 %3402  ;;  %v3492_v59 = vld [vmem:[#allocation12 + $0x10] ss:$8 sm:$0x3] }
 0xad6   :  { %v3394_v60 = vrot.slane %v3390_v22, 2  ;;  %v3395_v20 = vrot.slane %v3391_v8, 2  ;;  %v3405_v39 = vpop.permute.xlu1 %3404  ;;  %v3501_v41 = vrot.slane %v3492_v59, %v5675_v15 }
 0xad7   :  { %v3406_v46 = vsel %vm7501_vm1, %v3403_v9, %v3405_v39  ;;  %v3407_v62 = vsel %vm7502_vm2, %v3405_v39, %v3403_v9  ;;  %v3497_v9 = vrot.slane %v3492_v59, %v5673_v14  ;;  %vm7513_vm2 = vmmov %vm7507_vm10 }
 0xad8   :  { %3398 = vst [vmem:[#allocation2] sm:$0xc0] %v3394_v60  ;;  %3399 = vst [vmem:[#allocation2 + $0x8] sm:$0xc0] %v3395_v20  ;;  %v3420_v63 = vmul.f32 %v3413_v1, %v3406_v46  ;;  %v3421_v32 = vmul.f32 %v3417_v10, %v3407_v62 }
 0xad9   :  { %v3431_v12 = vpop.permute.xlu0 %3430 }
 0xada   :  { %v3424_v50 = vrot.slane %v3420_v63, 6  ;;  %v3425_v2 = vrot.slane %v3421_v32, 6  ;;  %v3433_v5 = vpop.permute.xlu1 %3432 }
 0xadb   :  { %v3434_v0 = vsel %vm7503_vm6, %v3431_v12, %v3433_v5  ;;  %v3435_v49 = vsel %vm7504_vm7, %v3433_v5, %v3431_v12  ;;  %vm7514_vm6 = vmmov %vm7513_vm2  ;;  %vm7515_vm7 = vcmp.lt.s32.totalorder %v5792_v34, 127 }
 0xadc   :  { %3428 = vst [vmem:[#allocation2 + $0x10] sm:$0xc] %v3424_v50  ;;  %3429 = vst [vmem:[#allocation2 + $0x18] sm:$0xc] %v3425_v2  ;;  %v3448_v21 = vmul.f32 %v3441_v3, %v3434_v0  ;;  %v3449_v36 = vmul.f32 %v3445_v38, %v3435_v49 }
 0xadd   :  { %v3459_v7 = vpop.permute.xlu0 %3458 }
 0xade   :  { %v3452_v48 = vrot.slane %v3448_v21, 4  ;;  %v3453_v4 = vrot.slane %v3449_v36, 4  ;;  %v3461_v55 = vpop.permute.xlu1 %3460  ;;  %v3531_v21 = vld [vmem:[#allocation2 + $0x98] sm:$0xff]  ;;  %v3529_v36 = vld [vmem:[#allocation2 + $0x88] sm:$0xff] }
 0xadf   :  { %v3462_v56 = vsel %vm7505_vm8, %v3459_v7, %v3461_v55  ;;  %v3463_v23 = vsel %vm7506_vm9, %v3461_v55, %v3459_v7  ;;  %v3528_v7 = vld [vmem:[#allocation2 + $0x80] sm:$0xff]  ;;  %vm7516_vm8 = vmmov %vm7515_vm7 }
 0xae0   :  { %3456 = vst [vmem:[#allocation2 + $0x10] sm:$0x30] %v3452_v48  ;;  %3457 = vst [vmem:[#allocation2 + $0x18] sm:$0x30] %v3453_v4  ;;  %v3476_v17 = vmul.f32 %v3469_v35, %v3462_v56  ;;  %v3477_v51 = vmul.f32 %v3473_v24, %v3463_v23  ;;  %v5091_v35 = vpack.c.bf16 %v3531_v21, %v3529_v36  ;;  %v3530_v24 = vld [vmem:[#allocation2 + $0x90] sm:$0xff]  ;;  %v3551_v55 = vld [vmem:[#allocation15 + $0x18] sm:$0xff] }
 0xae1   :  { %v3295_v27 = vpop.permute.xlu0 %3294  ;;  %v5093_v47 = vpack.c.bf16 %v3530_v24, %v3528_v7  ;;  %v3550_v48 = vld [vmem:[#allocation15 + $0x10] sm:$0xff]  ;;  %v3683_v21 = vld [vmem:[#allocation12 + $0x1] ss:$8 sm:$0x3]  ;;  %vm7517_vm9 = vmmov %vm7515_vm7 }
 0xae2   :  { %v3480_v53 = vrot.slane %v3476_v17, 2  ;;  %v3481_v54 = vrot.slane %v3477_v51, 2  ;;  %v3297_v43 = vpop.permute.xlu1 %3296 }
 0xae3   :  { %v3298_v22 = vsel %vm7507_vm10, %v3295_v27, %v3297_v43  ;;  %v3299_v8 = vsel %vm7508_vm11, %v3297_v43, %v3295_v27  ;;  %v3056_v43 = vsel %vm6857_vm14, %v6830_v25, 0.0  ;;  %vm7512_vm14 = vmmov %vm7507_vm10  ;;  %vm7519_vm11 = vcmp.lt.s32.totalorder %v5792_v34, 113 }
 0xae4   :  { %3484 = vst [vmem:[#allocation2 + $0x10] sm:$0xc0] %v3480_v53  ;;  %3485 = vst [vmem:[#allocation2 + $0x18] sm:$0xc0] %v3481_v54  ;;  %v3312_v1 = vmul.f32 %v3305_v19, %v3299_v8  ;;  %v3313_v10 = vmul.f32 %v3309_v37, %v3298_v22 }
 0xae5   :  { %v3487_v60 = vpop.permute.xlu0 %3486 }
 0xae6   :  { %3314 = vst [vmem:[#allocation2] sm:$0x3] %v3312_v1  ;;  %3315 = vst [vmem:[#allocation2 + $0x8] sm:$0x3] %v3313_v10  ;;  %v3489_v20 = vpop.permute.xlu1 %3488  ;;  %v3057_v1 = vsel %vm6846_vm15, %v6832_v40, 0.0 }
 0xae7   :  { %v3490_v39 = vsel %vm7509_vm13, %v3487_v60, %v3489_v20  ;;  %v3491_v46 = vsel %vm7510_vm12, %v3489_v20, %v3487_v60  ;;  %vm7511_vm15 = vmmov %vm7507_vm10 }
 0xae8   :  { %v3504_v62 = vmul.f32 %v3497_v9, %v3490_v39  ;;  %v3505_v63 = vmul.f32 %v3501_v41, %v3491_v46  ;;  %vm7518_vm10 = vmmov %vm7515_vm7 }
 0xae9   :  { %vm7520_vm13 = vmmov %vm7519_vm11 }
 0xaea   :  { %3506 = vst [vmem:[#allocation2 + $0x20] sm:$0x3] %v3504_v62  ;;  %3507 = vst [vmem:[#allocation2 + $0x28] sm:$0x3] %v3505_v63 }
 0xaeb   :  { %v3515_v32 = vld [vmem:[#allocation2 + $0x18] sm:$0xff]  ;;  %v3514_v12 = vld [vmem:[#allocation2 + $0x10] sm:$0xff]  ;;  %vm7521_vm12 = vmmov %vm7519_vm11 }
 0xaed   :  { %v3513_v3 = vld [vmem:[#allocation2 + $0x8] sm:$0xff]  ;;  %v3512_v38 = vld [vmem:[#allocation2] sm:$0xff] }
 0xaee   :  { %v5075_v61 = vpack.c.bf16 %v3515_v32, %v3513_v3  ;;  %v5077_v50 = vpack.c.bf16 %v3514_v12, %v3512_v38 }
 0xaf0   :  { %5076 = vmatprep.subr.bf16.mxu1 %v5075_v61 }
 0xaf1   :  { %5078 = vmatpush1.bf16.msra.mxu1 %v5077_v50  ;;  %v3517_v2 = vld [vmem:[#allocation2 + $0x28] sm:$0xff]  ;;  %v3516_v5 = vld [vmem:[#allocation2 + $0x20] sm:$0xff] }
 0xaf2   :  { %v5079_v0 = vpack.c.bf16 %v6678_v6, %v3517_v2  ;;  %v5081_v49 = vpack.c.bf16 %v6676_v30, %v3516_v5  ;;  %v3508_v30 = vld [vmem:[#allocation13] sm:$0xff]  ;;  %v3511_v6 = vld [vmem:[#allocation13 + $0x18] sm:$0xff] }
 0xaf3   :  { %v3651_v50 = vld [vmem:[#allocation12] ss:$8 sm:$0x3] }
 0xaf4   :  { %5080 = vmatprep.subr.bf16.mxu1 %v5079_v0  ;;  %v3656_v0 = vrot.slane %v3651_v50, %v5673_v14 }
 0xaf5   :  { %5082 = vmatpush1.bf16.msra.mxu1 %v5081_v49  ;;  %v3660_v49 = vrot.slane %v3651_v50, %v5675_v15 }
 0xaf6   :  { %5084 = vmatprep.subr.bf16.mxu1 %v6702_v26  ;;  %v3510_v26 = vld [vmem:[#allocation13 + $0x10] sm:$0xff] }
 0xaf9   :  { %5086 = vmatpush1.bf16.msra.mxu1 %v6704_v16 }
 0xafa   :  { %5088 = vmatprep.subr.bf16.mxu1 %v6716_v42 }
 0xafd   :  { %5090 = vmatpush1.bf16.msra.mxu1 %v6718_v11 }
 0xafe   :  { %5092 = vmatprep.subr.bf16.mxu1 %v5091_v35 }
 0xb01   :  { %5094 = vmatpush1.bf16.msra.mxu1 %v5093_v47 }
 0xb02   :  { %5096 = vmatprep.subr.bf16.mxu1 %v6750_v44  ;;  %v3059_v44 = vld [vmem:[#allocation4] sm:$0x3] }
 0xb05   :  { %5098 = vmatpush1.bf16.msra.mxu1 %v6752_v45 }
 0xb06   :  { %5100 = vmatprep.subr.bf16.mxu1 %v6770_v52 }
 0xb09   :  { %5102 = vmatpush1.bf16.msra.mxu1 %v6772_v58  ;;  %v3548_v58 = vld [vmem:[#allocation15] sm:$0xff] }
 0xb0a   :  { %5104 = vmatprep.subr.bf16.mxu1 %v6790_v29 }
 0xb0d   :  { %5106 = vmatpush1.bf16.msra.mxu1 %v6792_v13 }
 0xb0e   :  { %5108 = vmatprep.subr.bf16.mxu1 %v6802_v28  ;;  %v3549_v28 = vld [vmem:[#allocation15 + $0x8] sm:$0xff] }
 0xb11   :  { %5110 = vmatpush1.bf16.msra.mxu1 %v6804_v57 }
 0xb14   :  { %3623 = vmatmul.mubr.f32.vlgmr.msra.gmra.mrb[16].mxu1 %v3508_v30 }
 0xb15   :  { %4555 = vmatprep.mubr.msk.f32.mxu1 %vm662_vm0, %v3511_v6  ;;  %v3688_v6 = vrot.slane %v3683_v21, %v5673_v14 }
 0xb18   :  { %3629 = vmatmul.mubr.f32.gmra.mrb[18].mxu1 %v3510_v26  ;;  %v3692_v26 = vrot.slane %v3683_v21, %v5675_v15 }
 0xb30   :  { %v4664_v16 = vpop.f32.mrb[14].mxu1 }
 0xb31   :  { %v4665_v42 = vpop.f32.mrb[15].mxu1 }
 0xb32   :  { %v4666_v11 = vadd.f32 %v4665_v42, %v4664_v16 }
 0xb34   :  { %5225 = vrcp.f32 %v4666_v11  ;;  %vm3162_vm1 = vcmp.gt.f32.partialorder %v4666_v11, 0.0 }
 0xb3e   :  { %v5226_v45 = vpop.eup %5225 }
 0xb3f   :  { %v3164_v52 = vmul.f32 %v5226_v45, %v3059_v44  ;;  %v3715_v45 = vld [vmem:[#allocation12 + $0x2] ss:$8 sm:$0x3] }
 0xb41   :  { %4553 = vmatmul.mubr.msk.f32.vlgmr.msra.gmra.mrb[14].mxu0 %vm3162_vm1, %v3164_v52  ;;  %vm7522_vm1 = vmmov %vm7519_vm11 }
 0xb42   :  { %4556 = vmatprep.mubr.msk.f32.mxu0 %vm662_vm0, %v3900_v18 }
 0xbe7   :  { %v3624_v29 = vpop.f32.mrb[16].mxu1 }
 0xbe8   :  { %v3625_v13 = vadd.f32 %v3624_v29, %v3548_v58  ;;  %v3626_v57 = vpop.f32.mrb[17].mxu1 }
 0xbe9   :  { %v3627_v56 = vadd.f32 %v3626_v57, %v3549_v28 }
 0xbea   :  { %v6952_v4 = vmax.f32 %v3625_v13, 0.0 }
 0xbeb   :  { %v3630_v23 = vpop.f32.mrb[18].mxu1  ;;  %v6958_v27 = vmax.f32 %v3627_v56, 0.0  ;;  %v3720_v56 = vrot.slane %v3715_v45, %v5673_v14 }
 0xbec   :  { %v3631_v17 = vadd.f32 %v3630_v23, %v3550_v48  ;;  %v3632_v51 = vpop.f32.mrb[19].mxu1  ;;  %3639 = vrot.lane.b32.xlu0 %v6952_v4, %s5464_s2  ;;  %v3724_v23 = vrot.slane %v3715_v45, %v5675_v15 }
 0xbed   :  { %v3633_v19 = vadd.f32 %v3632_v51, %v3551_v55 }
 0xbee   :  { %v6956_v37 = vmax.f32 %v3631_v17, 0.0 }
 0xbef   :  { %v6960_v59 = vmax.f32 %v3633_v19, 0.0 }
 0xbf0   :  { %3641 = vrot.lane.b32.xlu1 %v6956_v37, %s5464_s2  ;;  %3671 = vrot.lane.b32.xlu0 %v6952_v4, %s5447_s14  ;;  %v5129_v53 = vpack.c.bf16 %v6956_v37, %v6952_v4 }
 0xbf1   :  { %v5127_v54 = vpack.c.bf16 %v6960_v59, %v6958_v27 }
 0xbf4   :  { %3673 = vrot.lane.b32.xlu1 %v6956_v37, %s5447_s14  ;;  %3703 = vrot.lane.b32.xlu0 %v6952_v4, %s5461_s13 }
 0xbf8   :  { %3705 = vrot.lane.b32.xlu1 %v6956_v37, %s5461_s13  ;;  %3735 = vrot.lane.b32.xlu0 %v6952_v4, %s5458_s18 }
 0xbfc   :  { %3737 = vrot.lane.b32.xlu1 %v6956_v37, %s5458_s18  ;;  %3771 = vrot.lane.b32.xlu0 %v6952_v4, %s5460_s8 }
 0xc00   :  { %3773 = vrot.lane.b32.xlu1 %v6956_v37, %s5460_s8  ;;  %3803 = vrot.lane.b32.xlu0 %v6952_v4, %s5463_s27 }
 0xc04   :  { %3805 = vrot.lane.b32.xlu1 %v6956_v37, %s5463_s27  ;;  %3835 = vrot.lane.b32.xlu0 %v6952_v4, %s5462_s25 }
 0xc08   :  { %3837 = vrot.lane.b32.xlu1 %v6956_v37, %s5462_s25  ;;  %3643 = vrot.lane.b32.xlu0 %v6958_v27, %s5464_s2 }
 0xc0c   :  { %3645 = vrot.lane.b32.xlu1 %v6960_v59, %s5464_s2  ;;  %3675 = vrot.lane.b32.xlu0 %v6958_v27, %s5447_s14 }
 0xc10   :  { %3677 = vrot.lane.b32.xlu1 %v6960_v59, %s5447_s14  ;;  %3707 = vrot.lane.b32.xlu0 %v6958_v27, %s5461_s13 }
 0xc14   :  { %3709 = vrot.lane.b32.xlu1 %v6960_v59, %s5461_s13  ;;  %3739 = vrot.lane.b32.xlu0 %v6958_v27, %s5458_s18  ;;  %v3264_v22 = vpop.f32.mrb[14].mxu0 }
 0xc15   :  { %v7009_v8 = vmul.f32 %v3264_v22, %v3056_v43  ;;  %v3266_v10 = vpop.f32.mrb[15].mxu0  ;;  %v3747_v22 = vld [vmem:[#allocation12 + $0x3] ss:$8 sm:$0x3] }
 0xc16   :  { %v7014_v9 = vmul.f32 %v3266_v10, %v3057_v1 }
 0xc18   :  { %3741 = vrot.lane.b32.xlu1 %v6960_v59, %s5458_s18  ;;  %3867 = vrot.lane.b32.xlu0 %v6952_v4, %s5465_s1 }
 0xc1c   :  { %3869 = vrot.lane.b32.xlu1 %v6956_v37, %s5465_s1  ;;  %3775 = vrot.lane.b32.xlu0 %v6958_v27, %s5460_s8 }
 0xc20   :  { %3777 = vrot.lane.b32.xlu1 %v6960_v59, %s5460_s8  ;;  %3807 = vrot.lane.b32.xlu0 %v6958_v27, %s5463_s27 }
 0xc24   :  { %3809 = vrot.lane.b32.xlu1 %v6960_v59, %s5463_s27  ;;  %3839 = vrot.lane.b32.xlu0 %v6958_v27, %s5462_s25 }
 0xc28   :  { %3841 = vrot.lane.b32.xlu1 %v6960_v59, %s5462_s25  ;;  %3871 = vrot.lane.b32.xlu0 %v6958_v27, %s5465_s1 }
 0xc2c   :  { %3873 = vrot.lane.b32.xlu1 %v6960_v59, %s5465_s1 }
 0xc5e   :  { %v3640_v33 = vpop.permute.xlu0 %3639 }
 0xc62   :  { %v3642_v41 = vpop.permute.xlu1 %3641  ;;  %v3672_v60 = vpop.permute.xlu0 %3671 }
 0xc66   :  { %v3674_v20 = vpop.permute.xlu1 %3673  ;;  %v3704_v39 = vpop.permute.xlu0 %3703 }
 0xc6a   :  { %v3706_v46 = vpop.permute.xlu1 %3705  ;;  %v3736_v62 = vpop.permute.xlu0 %3735 }
 0xc6e   :  { %v7039_v63 = vpop.permute.xlu1 %3737  ;;  %v7041_v32 = vpop.permute.xlu0 %3771 }
 0xc72   :  { %v7043_v3 = vpop.permute.xlu1 %3773  ;;  %v7045_v38 = vpop.permute.xlu0 %3803 }
 0xc76   :  { %v7047_v12 = vpop.permute.xlu1 %3805  ;;  %v7049_v61 = vpop.permute.xlu0 %3835 }
 0xc7a   :  { %v7051_v2 = vpop.permute.xlu1 %3837  ;;  %v3644_v5 = vpop.permute.xlu0 %3643 }
 0xc7b   :  { %v3647_v36 = vsel %vm7511_vm15, %v3640_v33, %v3644_v5  ;;  %v3649_v35 = vsel %vm7512_vm14, %v3644_v5, %v3640_v33  ;;  %v3752_v5 = vrot.slane %v3747_v22, %v5673_v14  ;;  %vm7523_vm15 = vcmp.lt.s32.totalorder %v5792_v34, 112 }
 0xc7c   :  { %v3663_v16 = vmul.f32 %v3656_v0, %v3649_v35  ;;  %v3664_v42 = vmul.f32 %v3660_v49, %v3647_v36  ;;  %vm7524_vm14 = vmmov %vm7523_vm15 }
 0xc7e   :  { %v3646_v24 = vpop.permute.xlu1 %3645  ;;  %v3676_v7 = vpop.permute.xlu0 %3675 }
 0xc7f   :  { %v3648_v47 = vsel %vm7513_vm2, %v3642_v41, %v3646_v24  ;;  %v3650_v30 = vsel %vm7514_vm6, %v3646_v24, %v3642_v41  ;;  %v3679_v52 = vsel %vm442_vm3, %v3672_v60, %v3676_v7  ;;  %v3681_v58 = vsel %vm442_vm3, %v3676_v7, %v3672_v60  ;;  %vm7525_vm2 = vmmov %vm7524_vm14 }
 0xc80   :  { %v3665_v11 = vmul.f32 %v3656_v0, %v3650_v30  ;;  %v3666_v44 = vmul.f32 %v3660_v49, %v3648_v47  ;;  %v3695_v17 = vmul.f32 %v3688_v6, %v3681_v58  ;;  %v3696_v51 = vmul.f32 %v3692_v26, %v3679_v52  ;;  %vm7526_vm6 = vmmov %vm7525_vm2 }
 0xc81   :  { %v3756_v0 = vrot.slane %v3747_v22, %v5675_v15 }
 0xc82   :  { %v3678_v29 = vpop.permute.xlu1 %3677  ;;  %v3708_v13 = vpop.permute.xlu0 %3707  ;;  %v5111_v28 = vpack.c.bf16 %v3666_v44, %v3664_v42  ;;  %v5113_v57 = vpack.c.bf16 %v3665_v11, %v3663_v16 }
 0xc83   :  { %v3680_v48 = vsel %vm442_vm3, %v3674_v20, %v3678_v29  ;;  %v3682_v55 = vsel %vm442_vm3, %v3678_v29, %v3674_v20  ;;  %v3711_v1 = vsel %vm468_vm4, %v3704_v39, %v3708_v13  ;;  %v3713_v10 = vsel %vm468_vm4, %v3708_v13, %v3704_v39 }
 0xc84   :  { %v3697_v19 = vmul.f32 %v3688_v6, %v3682_v55  ;;  %v3698_v43 = vmul.f32 %v3692_v26, %v3680_v48  ;;  %5112 = vmatprep.subr.bf16.mxu0 %v5111_v28  ;;  %v3727_v49 = vmul.f32 %v3720_v56, %v3713_v10  ;;  %v3728_v21 = vmul.f32 %v3724_v23, %v3711_v1  ;;  %v3847_v10 = vld [vmem:[#allocation12 + $0x7] ss:$8 sm:$0x3] }
 0xc85   :  { %5114 = vmatpush1.bf16.msra.mxu0 %v5113_v57  ;;  %v3815_v57 = vld [vmem:[#allocation12 + $0x6] ss:$8 sm:$0x3] }
 0xc86   :  { %v3710_v18 = vpop.permute.xlu1 %3709  ;;  %v3740_v33 = vpop.permute.xlu0 %3739  ;;  %v5115_v41 = vpack.c.bf16 %v3698_v43, %v3696_v51  ;;  %v5117_v60 = vpack.c.bf16 %v3697_v19, %v3695_v17  ;;  %v3820_v51 = vrot.slane %v3815_v57, %v5673_v14  ;;  %v3824_v19 = vrot.slane %v3815_v57, %v5675_v15 }
 0xc87   :  { %v3712_v20 = vsel %vm468_vm4, %v3706_v46, %v3710_v18  ;;  %v3714_v50 = vsel %vm468_vm4, %v3710_v18, %v3706_v46  ;;  %v3743_v39 = vsel %vm494_vm5, %v3736_v62, %v3740_v33  ;;  %v3745_v24 = vsel %vm494_vm5, %v3740_v33, %v3736_v62  ;;  %v3783_v62 = vld [vmem:[#allocation12 + $0x5] ss:$8 sm:$0x3] }
 0xc88   :  { %v3729_v36 = vmul.f32 %v3720_v56, %v3714_v50  ;;  %v3730_v35 = vmul.f32 %v3724_v23, %v3712_v20  ;;  %5116 = vmatprep.subr.bf16.mxu0 %v5115_v41  ;;  %v3759_v16 = vmul.f32 %v3752_v5, %v3745_v24  ;;  %v3760_v42 = vmul.f32 %v3756_v0, %v3743_v39 }
 0xc89   :  { %5118 = vmatpush1.bf16.msra.mxu0 %v5117_v60  ;;  %v3788_v13 = vrot.slane %v3783_v62, %v5673_v14  ;;  %v3792_v28 = vrot.slane %v3783_v62, %v5675_v15  ;;  %v3852_v20 = vrot.slane %v3847_v10, %v5673_v14 }
 0xc8a   :  { %v3742_v7 = vpop.permute.xlu1 %3741  ;;  %v7089_v47 = vpop.permute.xlu0 %3867  ;;  %v5119_v46 = vpack.c.bf16 %v3730_v35, %v3728_v21  ;;  %v5121_v30 = vpack.c.bf16 %v3729_v36, %v3727_v49 }
 0xc8b   :  { %v3744_v6 = vsel %vm494_vm5, %v7039_v63, %v3742_v7  ;;  %v3746_v26 = vsel %vm494_vm5, %v3742_v7, %v7039_v63 }
 0xc8c   :  { %v3761_v11 = vmul.f32 %v3752_v5, %v3746_v26  ;;  %v3762_v44 = vmul.f32 %v3756_v0, %v3744_v6  ;;  %5120 = vmatprep.subr.bf16.mxu0 %v5119_v46 }
 0xc8d   :  { %5122 = vmatpush1.bf16.msra.mxu0 %v5121_v30 }
 0xc8e   :  { %v7097_v45 = vpop.permute.xlu1 %3869  ;;  %v3776_v52 = vpop.permute.xlu0 %3775  ;;  %v5123_v58 = vpack.c.bf16 %v3762_v44, %v3760_v42  ;;  %v5125_v29 = vpack.c.bf16 %v3761_v11, %v3759_v16 }
 0xc8f   :  { %v3779_v63 = vsel %vm7515_vm7, %v7041_v32, %v3776_v52  ;;  %v3781_v48 = vsel %vm7516_vm8, %v3776_v52, %v7041_v32  ;;  %vm7527_vm7 = vcmp.lt.s32.totalorder %v5792_v34, 111 }
 0xc90   :  { %5124 = vmatprep.subr.bf16.mxu0 %v5123_v58  ;;  %v3795_v32 = vmul.f32 %v3788_v13, %v3779_v63  ;;  %v3796_v43 = vmul.f32 %v3792_v28, %v3781_v48  ;;  %vm7528_vm8 = vmmov %vm7527_vm7  ;;  %v3899_v63 = vld [vmem:[#allocation16] sm:$0xff]  ;;  %v3902_v48 = vld [vmem:[#allocation16 + $0x18] sm:$0xff] }
 0xc91   :  { %5126 = vmatpush1.bf16.msra.mxu0 %v5125_v29 }
 0xc92   :  { %v3778_v55 = vpop.permute.xlu1 %3777  ;;  %v3808_v56 = vpop.permute.xlu0 %3807  ;;  %5128 = vmatprep.subr.bf16.mxu0 %v5127_v54 }
 0xc93   :  { %v3780_v23 = vsel %vm7517_vm9, %v7043_v3, %v3778_v55  ;;  %v3782_v17 = vsel %vm7518_vm10, %v3778_v55, %v7043_v3  ;;  %v3811_v27 = vsel %vm7519_vm11, %v7045_v38, %v3808_v56  ;;  %v3813_v59 = vsel %vm7520_vm13, %v3808_v56, %v7045_v38  ;;  %vm7529_vm9 = vmmov %vm7527_vm7  ;;  %v3901_v55 = vld [vmem:[#allocation16 + $0x10] sm:$0xff]  ;;  %v3940_v56 = vld [vmem:[%s7430_s9 + $0x8] sm:$0xff] }
 0xc94   :  { %v3797_v22 = vmul.f32 %v3788_v13, %v3780_v23  ;;  %v3798_v1 = vmul.f32 %v3792_v28, %v3782_v17  ;;  %v3856_v38 = vrot.slane %v3847_v10, %v5675_v15  ;;  %v3827_v50 = vmul.f32 %v3820_v51, %v3811_v27  ;;  %vm7530_vm10 = vmmov %vm7527_vm7 }
 0xc95   :  { %5130 = vmatpush1.bf16.msra.mxu0 %v5129_v53  ;;  %v3828_v5 = vmul.f32 %v3824_v19, %v3813_v59  ;;  %v3879_v53 = vld [vmem:[#allocation12 + $0x10] ss:$8 sm:$0x3] }
 0xc96   :  { %v3810_v54 = vpop.permute.xlu1 %3809  ;;  %v3840_v3 = vpop.permute.xlu0 %3839  ;;  %v5131_v18 = vpack.c.bf16 %v3798_v1, %v3796_v43  ;;  %v5133_v33 = vpack.c.bf16 %v3797_v22, %v3795_v32  ;;  %v3884_v7 = vrot.slane %v3879_v53, %v5673_v14  ;;  %v3888_v46 = vrot.slane %v3879_v53, %v5675_v15  ;;  %v3941_v32 = vld [vmem:[%s7430_s9 + $0x10] sm:$0xff]  ;;  %v3942_v22 = vld [vmem:[%s7430_s9 + $0x18] sm:$0xff] }
 0xc97   :  { %v3812_v41 = vsel %vm7521_vm12, %v7047_v12, %v3810_v54  ;;  %v3814_v60 = vsel %vm7522_vm1, %v3810_v54, %v7047_v12  ;;  %v3843_v0 = vsel %vm7523_vm15, %v7049_v61, %v3840_v3  ;;  %v3845_v49 = vsel %vm7524_vm14, %v3840_v3, %v7049_v61 }
 0xc98   :  { %v3829_v4 = vmul.f32 %v3820_v51, %v3812_v41  ;;  %v3830_v37 = vmul.f32 %v3824_v19, %v3814_v60  ;;  %5132 = vmatprep.subr.bf16.mxu0 %v5131_v18  ;;  %v3859_v30 = vmul.f32 %v3852_v20, %v3843_v0  ;;  %v3860_v6 = vmul.f32 %v3856_v38, %v3845_v49  ;;  %v7251_v60 = vld.sshfl [vmem:[%s7431_s10] sm:$0x33 pattern:$0x76325410] }
 0xc99   :  { %5134 = vmatpush1.bf16.msra.mxu0 %v5133_v33  ;;  %vm7539_vm15 = vcmp.lt.s32.totalorder %v5792_v34, 113 }
 0xc9a   :  { %v3842_v12 = vpop.permute.xlu1 %3841  ;;  %v3872_v21 = vpop.permute.xlu0 %3871  ;;  %v5135_v36 = vpack.c.bf16 %v3830_v37, %v3828_v5  ;;  %v5137_v35 = vpack.c.bf16 %v3829_v4, %v3827_v50  ;;  %vm7540_vm14 = vmmov %vm7539_vm15 }
 0xc9b   :  { %v3844_v39 = vsel %vm7525_vm2, %v7051_v2, %v3842_v12  ;;  %v3846_v24 = vsel %vm7526_vm6, %v3842_v12, %v7051_v2  ;;  %v3875_v16 = vsel %vm7527_vm7, %v7089_v47, %v3872_v21  ;;  %v3877_v42 = vsel %vm7528_vm8, %v3872_v21, %v7089_v47  ;;  %vm7541_vm2 = vmmov %vm7540_vm14 }
 0xc9c   :  { %v3861_v61 = vmul.f32 %v3852_v20, %v3844_v39  ;;  %v3862_v26 = vmul.f32 %v3856_v38, %v3846_v24  ;;  %5136 = vmatprep.subr.bf16.mxu0 %v5135_v36  ;;  %v3891_v58 = vmul.f32 %v3884_v7, %v3875_v16  ;;  %v3892_v29 = vmul.f32 %v3888_v46, %v3877_v42  ;;  %v4106_v42 = vld [vmem:[#allocation12 + $0x2] ss:$8 sm:$0x3]  ;;  %vm7542_vm6 = vmmov %vm7541_vm2 }
 0xc9d   :  { %5138 = vmatpush1.bf16.msra.mxu0 %v5137_v35  ;;  %v4336_v20 = vcombine.high %v7251_v60, %v7251_v60  ;;  %v4042_v35 = vld [vmem:[#allocation12] ss:$8 sm:$0x3]  ;;  %vm7543_vm7 = vcmp.lt.s32.totalorder %v5792_v34, 112 }
 0xc9e   :  { %v3874_v11 = vpop.permute.xlu1 %3873  ;;  %v5139_v2 = vpack.c.bf16 %v3862_v26, %v3860_v6  ;;  %v5141_v44 = vpack.c.bf16 %v3861_v61, %v3859_v30  ;;  %v4074_v30 = vld [vmem:[#allocation12 + $0x1] ss:$8 sm:$0x3]  ;;  %vm7544_vm8 = vmmov %vm7543_vm7 }
 0xc9f   :  { %v3876_v62 = vsel %vm7529_vm9, %v7097_v45, %v3874_v11  ;;  %v3878_v52 = vsel %vm7530_vm10, %v3874_v11, %v7097_v45  ;;  %v3939_v45 = vld [vmem:[%s7430_s9] sm:$0xff]  ;;  %4560 = vmatprep.mubr.msk.f32.mxu1 %vm662_vm0, %v4336_v20  ;;  %vm7545_vm9 = vmmov %vm7543_vm7 }
 0xca0   :  { %v3893_v13 = vmul.f32 %v3884_v7, %v3876_v62  ;;  %v3894_v28 = vmul.f32 %v3888_v46, %v3878_v52  ;;  %5140 = vmatprep.subr.bf16.mxu0 %v5139_v2  ;;  %v4047_v7 = vrot.slane %v4042_v35, %v5673_v14  ;;  %v4051_v46 = vrot.slane %v4042_v35, %v5675_v15  ;;  %vm7546_vm10 = vmmov %vm7543_vm7 }
 0xca1   :  { %5142 = vmatpush1.bf16.msra.mxu0 %v5141_v44  ;;  %v4079_v44 = vrot.slane %v4074_v30, %v5673_v14  ;;  %v4083_v62 = vrot.slane %v4074_v30, %v5675_v15 }
 0xca2   :  { %v5143_v57 = vpack.c.bf16 %v3894_v28, %v3892_v29  ;;  %v5145_v47 = vpack.c.bf16 %v3893_v13, %v3891_v58  ;;  %v4111_v29 = vrot.slane %v4106_v42, %v5673_v14  ;;  %v4115_v13 = vrot.slane %v4106_v42, %v5675_v15 }
 0xca4   :  { %5144 = vmatprep.subr.bf16.mxu0 %v5143_v57 }
 0xca5   :  { %5146 = vmatpush1.bf16.msra.mxu0 %v5145_v47 }
 0xca8   :  { %4014 = vmatmul.mubr.f32.vlgmr.msra.gmra.mrb[16].mxu0 %v3899_v63 }
 0xca9   :  { %4557 = vmatprep.mubr.msk.f32.mxu0 %vm662_vm0, %v3902_v48  ;;  %vm7531_vm0 = vcmp.lt.s32.totalorder %v5792_v34, 17  ;;  %v4138_v48 = vld [vmem:[#allocation12 + $0x3] ss:$8 sm:$0x3] }
 0xcaa   :  { %vm7532_vm11 = vmmov %vm7531_vm0 }
 0xcab   :  { %vm7533_vm13 = vmmov %vm7531_vm0 }
 0xcac   :  { %4020 = vmatmul.mubr.f32.gmra.mrb[18].mxu0 %v3901_v55  ;;  %vm7534_vm12 = vmmov %vm7531_vm0 }
 0xd7b   :  { %v4015_v23 = vpop.f32.mrb[16].mxu0 }
 0xd7c   :  { %v4016_v17 = vadd.f32 %v4015_v23, %v3939_v45  ;;  %v4017_v51 = vpop.f32.mrb[17].mxu0 }
 0xd7d   :  { %v4018_v19 = vadd.f32 %v4017_v51, %v3940_v56 }
 0xd7e   :  { %v7171_v43 = vmax.f32 %v4016_v17, 0.0 }
 0xd7f   :  { %v7176_v1 = vmax.f32 %v4018_v19, 0.0  ;;  %v4021_v10 = vpop.f32.mrb[18].mxu0  ;;  %v4143_v19 = vrot.slane %v4138_v48, %v5673_v14 }
 0xd80   :  { %4158 = vst [vmem:[#allocation2 + $0x80] sm:$0xff] %v7171_v43  ;;  %v4022_v27 = vadd.f32 %v4021_v10, %v3941_v32  ;;  %v4023_v59 = vpop.f32.mrb[19].mxu0  ;;  %4030 = vrot.lane.b32.xlu0 %v7171_v43, %s5464_s2  ;;  %v4147_v32 = vrot.slane %v4138_v48, %v5675_v15  ;;  %v4206_v48 = vld [vmem:[#allocation12 + $0x6] ss:$8 sm:$0x3] }
 0xd81   :  { %4159 = vst [vmem:[#allocation2 + $0x88] sm:$0xff] %v7176_v1  ;;  %v4024_v54 = vadd.f32 %v4023_v59, %v3942_v22 }
 0xd82   :  { %v7182_v3 = vmax.f32 %v4022_v27, 0.0 }
 0xd83   :  { %v7184_v18 = vmax.f32 %v4024_v54, 0.0 }
 0xd84   :  { %4160 = vst [vmem:[#allocation2 + $0x90] sm:$0xff] %v7182_v3  ;;  %4032 = vrot.lane.b32.xlu1 %v7182_v3, %s5464_s2  ;;  %4062 = vrot.lane.b32.xlu0 %v7171_v43, %s5447_s14  ;;  %v5165_v33 = vpack.c.bf16 %v7182_v3, %v7171_v43 }
 0xd85   :  { %4161 = vst [vmem:[#allocation2 + $0x98] sm:$0xff] %v7184_v18  ;;  %v5163_v41 = vpack.c.bf16 %v7184_v18, %v7176_v1 }
 0xd88   :  { %4064 = vrot.lane.b32.xlu1 %v7182_v3, %s5447_s14  ;;  %4094 = vrot.lane.b32.xlu0 %v7171_v43, %s5461_s13 }
 0xd8c   :  { %4096 = vrot.lane.b32.xlu1 %v7182_v3, %s5461_s13  ;;  %4126 = vrot.lane.b32.xlu0 %v7171_v43, %s5458_s18 }
 0xd90   :  { %4128 = vrot.lane.b32.xlu1 %v7182_v3, %s5458_s18  ;;  %4162 = vrot.lane.b32.xlu0 %v7171_v43, %s5460_s8 }
 0xd94   :  { %4164 = vrot.lane.b32.xlu1 %v7182_v3, %s5460_s8  ;;  %4194 = vrot.lane.b32.xlu0 %v7171_v43, %s5463_s27 }
 0xd98   :  { %4196 = vrot.lane.b32.xlu1 %v7182_v3, %s5463_s27  ;;  %4226 = vrot.lane.b32.xlu0 %v7171_v43, %s5462_s25 }
 0xd9c   :  { %4228 = vrot.lane.b32.xlu1 %v7182_v3, %s5462_s25  ;;  %4034 = vrot.lane.b32.xlu0 %v7176_v1, %s5464_s2 }
 0xda0   :  { %4036 = vrot.lane.b32.xlu1 %v7184_v18, %s5464_s2  ;;  %4066 = vrot.lane.b32.xlu0 %v7176_v1, %s5447_s14 }
 0xda4   :  { %4068 = vrot.lane.b32.xlu1 %v7184_v18, %s5447_s14  ;;  %4098 = vrot.lane.b32.xlu0 %v7176_v1, %s5461_s13 }
 0xda8   :  { %4100 = vrot.lane.b32.xlu1 %v7184_v18, %s5461_s13  ;;  %4130 = vrot.lane.b32.xlu0 %v7176_v1, %s5458_s18 }
 0xdac   :  { %4132 = vrot.lane.b32.xlu1 %v7184_v18, %s5458_s18  ;;  %4258 = vrot.lane.b32.xlu0 %v7171_v43, %s5465_s1 }
 0xdb0   :  { %4260 = vrot.lane.b32.xlu1 %v7182_v3, %s5465_s1  ;;  %4166 = vrot.lane.b32.xlu0 %v7176_v1, %s5460_s8 }
 0xdb4   :  { %4168 = vrot.lane.b32.xlu1 %v7184_v18, %s5460_s8  ;;  %4198 = vrot.lane.b32.xlu0 %v7176_v1, %s5463_s27 }
 0xdb8   :  { %4200 = vrot.lane.b32.xlu1 %v7184_v18, %s5463_s27  ;;  %4230 = vrot.lane.b32.xlu0 %v7176_v1, %s5462_s25 }
 0xdbc   :  { %4232 = vrot.lane.b32.xlu1 %v7184_v18, %s5462_s25  ;;  %4262 = vrot.lane.b32.xlu0 %v7176_v1, %s5465_s1 }
 0xdc0   :  { %4264 = vrot.lane.b32.xlu1 %v7184_v18, %s5465_s1 }
 0xdf2   :  { %v4031_v38 = vpop.permute.xlu0 %4030 }
 0xdf6   :  { %v4033_v50 = vpop.permute.xlu1 %4032  ;;  %v4063_v5 = vpop.permute.xlu0 %4062 }
 0xdfa   :  { %v4065_v4 = vpop.permute.xlu1 %4064  ;;  %v4095_v37 = vpop.permute.xlu0 %4094 }
 0xdfe   :  { %v4097_v53 = vpop.permute.xlu1 %4096  ;;  %v7262_v0 = vpop.permute.xlu0 %4126 }
 0xe02   :  { %v7264_v49 = vpop.permute.xlu1 %4128  ;;  %v7266_v12 = vpop.permute.xlu0 %4162 }
 0xe06   :  { %v7268_v21 = vpop.permute.xlu1 %4164  ;;  %v7270_v36 = vpop.permute.xlu0 %4194 }
 0xe0a   :  { %v7272_v39 = vpop.permute.xlu1 %4196  ;;  %v7274_v24 = vpop.permute.xlu0 %4226 }
 0xe0e   :  { %v7278_v6 = vpop.permute.xlu1 %4228  ;;  %v4035_v61 = vpop.permute.xlu0 %4034 }
 0xe0f   :  { %v4038_v26 = vsel %vm7531_vm0, %v4031_v38, %v4035_v61  ;;  %v4040_v16 = vsel %vm7532_vm11, %v4035_v61, %v4031_v38  ;;  %vm7547_vm0 = vcmp.lt.s32.totalorder %v5792_v34, 111 }
 0xe10   :  { %v4054_v11 = vmul.f32 %v4047_v7, %v4040_v16  ;;  %v4055_v2 = vmul.f32 %v4051_v46, %v4038_v26  ;;  %vm7548_vm11 = vmmov %vm7547_vm0 }
 0xe12   :  { %4058 = vst [vmem:[#allocation2] sm:$0xff] %v4054_v11  ;;  %4059 = vst [vmem:[#allocation2 + $0x8] sm:$0xff] %v4055_v2  ;;  %v4037_v52 = vpop.permute.xlu1 %4036  ;;  %v4067_v58 = vpop.permute.xlu0 %4066 }
 0xe13   :  { %v4039_v28 = vsel %vm7533_vm13, %v4033_v50, %v4037_v52  ;;  %v4041_v57 = vsel %vm7534_vm12, %v4037_v52, %v4033_v50  ;;  %v4070_v47 = vsel %vm442_vm3, %v4063_v5, %v4067_v58  ;;  %v4072_v63 = vsel %vm442_vm3, %v4067_v58, %v4063_v5  ;;  %vm7549_vm13 = vmmov %vm7547_vm0 }
 0xe14   :  { %v4056_v55 = vmul.f32 %v4047_v7, %v4041_v57  ;;  %v4057_v45 = vmul.f32 %v4051_v46, %v4039_v28  ;;  %v4086_v56 = vmul.f32 %v4079_v44, %v4072_v63  ;;  %v4087_v23 = vmul.f32 %v4083_v62, %v4070_v47  ;;  %vm7550_vm12 = vmmov %vm7547_vm0 }
 0xe16   :  { %4060 = vst [vmem:[#allocation2 + $0x10] sm:$0xff] %v4056_v55  ;;  %4061 = vst [vmem:[#allocation2 + $0x18] sm:$0xff] %v4057_v45  ;;  %v4069_v17 = vpop.permute.xlu1 %4068  ;;  %v4099_v51 = vpop.permute.xlu0 %4098  ;;  %v5147_v22 = vpack.c.bf16 %v4057_v45, %v4055_v2  ;;  %v5149_v10 = vpack.c.bf16 %v4056_v55, %v4054_v11 }
 0xe17   :  { %4090 = vst [vmem:[#allocation2 + $0x20] sm:$0xff] %v4086_v56  ;;  %4091 = vst [vmem:[#allocation2 + $0x28] sm:$0xff] %v4087_v23  ;;  %v4071_v27 = vsel %vm442_vm3, %v4065_v4, %v4069_v17  ;;  %v4073_v59 = vsel %vm442_vm3, %v4069_v17, %v4065_v4  ;;  %v4102_v54 = vsel %vm468_vm4, %v4095_v37, %v4099_v51  ;;  %vm7535_vm3 = vcmp.lt.s32.totalorder %v5792_v34, 127 }
 0xe18   :  { %v4104_v20 = vsel %vm468_vm4, %v4099_v51, %v4095_v37  ;;  %v4088_v38 = vmul.f32 %v4079_v44, %v4073_v59  ;;  %v4089_v50 = vmul.f32 %v4083_v62, %v4071_v27  ;;  %v4119_v35 = vmul.f32 %v4115_v13, %v4102_v54  ;;  %5148 = vmatprep.subr.bf16.mxu1 %v5147_v22  ;;  %v4174_v62 = vld [vmem:[#allocation12 + $0x5] ss:$8 sm:$0x3]  ;;  %v4238_v51 = vld [vmem:[#allocation12 + $0x7] ss:$8 sm:$0x3]  ;;  %vm7538_vm1 = vmmov %vm7535_vm3 }
 0xe19   :  { %v4118_v5 = vmul.f32 %v4111_v29, %v4104_v20  ;;  %5150 = vmatpush1.bf16.msra.mxu1 %v5149_v10  ;;  %v4179_v47 = vrot.slane %v4174_v62, %v5673_v14  ;;  %v4183_v63 = vrot.slane %v4174_v62, %v5675_v15  ;;  %v4211_v22 = vrot.slane %v4206_v48, %v5673_v14  ;;  %v4559_v34 = vld.sshfl [vmem:[%s7432_s11] sm:$0x33 pattern:$0x76325410]  ;;  %s5467_s11 = smov [#allocation18]  }
 0xe1a   :  { %v4101_v7 = vpop.permute.xlu1 %4100  ;;  %v4131_v46 = vpop.permute.xlu0 %4130  ;;  %v5151_v30 = vpack.c.bf16 %v4089_v50, %v4087_v23  ;;  %v5153_v61 = vpack.c.bf16 %v4088_v38, %v4086_v56  ;;  %v4215_v10 = vrot.slane %v4206_v48, %v5675_v15  ;;  %v4243_v54 = vrot.slane %v4238_v51, %v5673_v14  ;;  %s4520_s8 = sshll.u32 %s5467_s11, 4  ;;  %s4521_s8 = int_to_ptr.vmem [resolvable:$true] %s4520_s8 }
 0xe1b   :  { %v4103_v26 = vsel %vm468_vm4, %v4097_v53, %v4101_v7  ;;  %v4105_v4 = vsel %vm468_vm4, %v4101_v7, %v4097_v53  ;;  %v4134_v37 = vsel %vm494_vm5, %v7262_v0, %v4131_v46  ;;  %v4136_v16 = vsel %vm494_vm5, %v4131_v46, %v7262_v0  ;;  %vm7536_vm4 = vmmov %vm7535_vm3  ;;  %s5411_s13 = scalar_lea.vmem %s4521_s8, 64  ;;  %p5416_p9 = scmp.lt.s32.totalorder %s4521_s8, %s4521_s8 }
 0xe1c   :  { %v4120_v42 = vmul.f32 %v4111_v29, %v4105_v4  ;;  %v4121_v11 = vmul.f32 %v4115_v13, %v4103_v26  ;;  %v4150_v2 = vmul.f32 %v4143_v19, %v4136_v16  ;;  %v4151_v44 = vmul.f32 %v4147_v32, %v4134_v37  ;;  %5152 = vmatprep.subr.bf16.mxu1 %v5151_v30  ;;  %p5412_p8 = scmp.ne.s32.totalorder %s4521_s8, %s5411_s13  ;;  %p5417_p10 = scmp.lt.s32.totalorder %s5411_s13, %s5411_s13 }
 0xe1d   :  { %5154 = vmatpush1.bf16.msra.mxu1 %v5153_v61  ;;  %v4247_v20 = vrot.slane %v4238_v51, %v5675_v15 }
 0xe1e   :  { %v4133_v52 = vpop.permute.xlu1 %4132  ;;  %v7316_v58 = vpop.permute.xlu0 %4258  ;;  %v5155_v28 = vpack.c.bf16 %v4121_v11, %v4119_v35  ;;  %v5157_v53 = vpack.c.bf16 %v4120_v42, %v4118_v5  ;;  %v4270_v35 = vld [vmem:[#allocation12 + $0x10] ss:$8 sm:$0x3]  ;;  %p5418_p11 = por %p5417_p10, %p5416_p9 }
 0xe1f   :  { %v4135_v57 = vsel %vm494_vm5, %v7264_v49, %v4133_v52  ;;  %v4137_v0 = vsel %vm494_vm5, %v4133_v52, %v7264_v49  ;;  %vm7537_vm5 = vmmov %vm7535_vm3  ;;  %v4279_v61 = vrot.slane %v4270_v35, %v5675_v15 }
 0xe20   :  { %v4152_v29 = vmul.f32 %v4143_v19, %v4137_v0  ;;  %v4153_v13 = vmul.f32 %v4147_v32, %v4135_v57  ;;  %5156 = vmatprep.subr.bf16.mxu1 %v5155_v28  ;;  %p5419_p12 = pnand %p5418_p11, %p5412_p8 }
 0xe21   :  { %5158 = vmatpush1.bf16.msra.mxu1 %v5157_v53 }
 0xe22   :  { %v7326_v55 = vpop.permute.xlu1 %4260  ;;  %v4167_v45 = vpop.permute.xlu0 %4166  ;;  %v5159_v56 = vpack.c.bf16 %v4153_v13, %v4151_v44  ;;  %v5161_v23 = vpack.c.bf16 %v4152_v29, %v4150_v2 }
 0xe23   :  { %v4170_v17 = vsel %vm7535_vm3, %v7266_v12, %v4167_v45  ;;  %v4172_v49 = vsel %vm7536_vm4, %v4167_v45, %v7266_v12 }
 0xe24   :  { %v4186_v19 = vmul.f32 %v4179_v47, %v4170_v17  ;;  %v4187_v32 = vmul.f32 %v4183_v63, %v4172_v49  ;;  %5160 = vmatprep.subr.bf16.mxu1 %v5159_v56  ;;  %v3058_v49 = vld [vmem:[#allocation10] sm:$0x3] }
 0xe25   :  { %5162 = vmatpush1.bf16.msra.mxu1 %v5161_v23  ;;  %v3275_v51 = vrot.slane %v3058_v49, %v5673_v14 }
 0xe26   :  { %v4169_v27 = vpop.permute.xlu1 %4168  ;;  %v4199_v59 = vpop.permute.xlu0 %4198  ;;  %5164 = vmatprep.subr.bf16.mxu1 %v5163_v41 }
 0xe27   :  { %v4171_v12 = vsel %vm7537_vm5, %v7268_v21, %v4169_v27  ;;  %v4173_v38 = vsel %vm7538_vm1, %v4169_v27, %v7268_v21  ;;  %v4202_v50 = vsel %vm7539_vm15, %v7270_v36, %v4199_v59  ;;  %v4204_v5 = vsel %vm7540_vm14, %v4199_v59, %v7270_v36 }
 0xe28   :  { %v4188_v7 = vmul.f32 %v4179_v47, %v4171_v12  ;;  %v4189_v1 = vmul.f32 %v4183_v63, %v4173_v38  ;;  %v4218_v18 = vmul.f32 %v4211_v22, %v4202_v50  ;;  %v4219_v41 = vmul.f32 %v4215_v10, %v4204_v5 }
 0xe29   :  { %5166 = vmatpush1.bf16.msra.mxu1 %v5165_v33  ;;  %v4275_v21 = vrot.slane %v4270_v35, %v5673_v14  ;;  %v4436_v38 = vmul.f32 %v3058_v49, %v6194_v31 }
 0xe2a   :  { %v4201_v46 = vpop.permute.xlu1 %4200  ;;  %v4231_v30 = vpop.permute.xlu0 %4230  ;;  %v5167_v26 = vpack.c.bf16 %v4189_v1, %v4187_v32  ;;  %v5169_v4 = vpack.c.bf16 %v4188_v7, %v4186_v19  ;;  %v3279_v19 = vrot.slane %v3058_v49, %v5675_v15 }
 0xe2b   :  { %v4203_v36 = vsel %vm7541_vm2, %v7272_v39, %v4201_v46  ;;  %v4205_v37 = vsel %vm7542_vm6, %v4201_v46, %v7272_v39  ;;  %v4234_v43 = vsel %vm7543_vm7, %v7274_v24, %v4231_v30  ;;  %v4236_v3 = vsel %vm7544_vm8, %v4231_v30, %v7274_v24 }
 0xe2c   :  { %v4220_v33 = vmul.f32 %v4211_v22, %v4203_v36  ;;  %v4221_v16 = vmul.f32 %v4215_v10, %v4205_v37  ;;  %v4250_v42 = vmul.f32 %v4243_v54, %v4234_v43  ;;  %v4251_v11 = vmul.f32 %v4247_v20, %v4236_v3  ;;  %5168 = vmatprep.subr.bf16.mxu1 %v5167_v26 }
 0xe2d   :  { %5170 = vmatpush1.bf16.msra.mxu1 %v5169_v4  ;;  %v3283_v32 = vmul.f32 %v3279_v19, %v7014_v9  ;;  %v4346_v22 = vcombine.high %v4559_v34, %v4559_v34  ;;  %v4454_v7 = vmul.f32 4.0, %v4436_v38  ;;  %v4441_v1 = vrot.slane %v4436_v38, %v5673_v14 }
 0xe2e   :  { %v4233_v2 = vpop.permute.xlu1 %4232  ;;  %v4263_v44 = vpop.permute.xlu0 %4262  ;;  %v5171_v62 = vpack.c.bf16 %v4221_v16, %v4219_v41  ;;  %v5173_v52 = vpack.c.bf16 %v4220_v33, %v4218_v18  ;;  %v4445_v31 = vrot.slane %v4436_v38, %v5675_v15 }
 0xe2f   :  { %v4235_v39 = vsel %vm7545_vm9, %v7278_v6, %v4233_v2  ;;  %v4237_v28 = vsel %vm7546_vm10, %v4233_v2, %v7278_v6  ;;  %v4266_v24 = vsel %vm7547_vm0, %v7316_v58, %v4263_v44  ;;  %v4268_v53 = vsel %vm7548_vm11, %v4263_v44, %v7316_v58 }
 0xe30   :  { %v4252_v57 = vmul.f32 %v4243_v54, %v4235_v39  ;;  %v4253_v0 = vmul.f32 %v4247_v20, %v4237_v28  ;;  %v4282_v29 = vmul.f32 %v4275_v21, %v4266_v24  ;;  %v4283_v13 = vmul.f32 %v4279_v61, %v4268_v53  ;;  %5172 = vmatprep.subr.bf16.mxu1 %v5171_v62 }
 0xe31   :  { %5174 = vmatpush1.bf16.msra.mxu1 %v5173_v52  ;;  %v3287_v20 = vand.u32 2147483647, %v3283_v32  ;;  %vm3285_vm15 = vcmp.eq.f32.partialorder %v3283_v32, %v3283_v32 }
 0xe32   :  { %v4265_v47 = vpop.permute.xlu1 %4264  ;;  %v5175_v63 = vpack.c.bf16 %v4253_v0, %v4251_v11  ;;  %v5177_v48 = vpack.c.bf16 %v4252_v57, %v4250_v42 }
 0xe33   :  { %v4267_v6 = vsel %vm7549_vm13, %v7326_v55, %v4265_v47  ;;  %v4269_v45 = vsel %vm7550_vm12, %v4265_v47, %v7326_v55  ;;  %v3282_v55 = vmul.f32 %v3275_v51, %v7009_v8  ;;  %vm3289_vm4 = vcmp.lt.f32.partialorder %v3287_v20, inf }
 0xe34   :  { %v4284_v56 = vmul.f32 %v4275_v21, %v4267_v6  ;;  %v4285_v23 = vmul.f32 %v4279_v61, %v4269_v45  ;;  %5176 = vmatprep.subr.bf16.mxu1 %v5175_v63  ;;  %vm3291_vm14 = vmand %vm3285_vm15, %vm3289_vm4  ;;  %v4463_v21 = vrot.slane %v4454_v7, %v5675_v15 }
 0xe35   :  { %5178 = vmatpush1.bf16.msra.mxu1 %v5177_v48  ;;  %v3286_v27 = vand.u32 2147483647, %v3282_v55  ;;  %vm3284_vm5 = vcmp.eq.f32.partialorder %v3282_v55, %v3282_v55  ;;  %v3293_v26 = vsel %vm3291_vm14, %v3283_v32, 0.0 }
 0xe36   :  { %v5179_v58 = vpack.c.bf16 %v4285_v23, %v4283_v13  ;;  %v5181_v17 = vpack.c.bf16 %v4284_v56, %v4282_v29  ;;  %v4467_v3 = vmul.f32 %v4463_v21, %v3293_v26  ;;  %v4487_v13 = vmul.f32 2.0, %v3293_v26 }
 0xe37   :  { %vm3288_vm3 = vcmp.lt.f32.partialorder %v3286_v27, inf }
 0xe38   :  { %5180 = vmatprep.subr.bf16.mxu1 %v5179_v58  ;;  %vm7399_vm1 = vmand %vm3284_vm5, %vm3288_vm3 }
 0xe39   :  { %5182 = vmatpush1.bf16.msra.mxu1 %v5181_v17  ;;  %v3292_v30 = vsel %vm7399_vm1, %v3282_v55, 0.0 }
 0xe3a   :  { %v4486_v0 = vmul.f32 2.0, %v3292_v30 }
 0xe3c   :  { %4416 = vmatmul.mubr.f32.vlgmr.msra.gmra.mrb[20].mxu1 %v7251_v60 }
 0xf0f   :  { %v4417_v10 = vpop.f32.mrb[20].mxu1 }
 0xf10   :  { %v4418_v59 = vadd.f32 %v4559_v34, %v4417_v10  ;;  %v4419_v54 = vpop.f32.mrb[21].mxu1 }
 0xf11   :  { %v4420_v60 = vadd.f32 %v4419_v54, %v4346_v22 }
 0xf12   :  { %v4422_v12 = vadd.f32 %v4418_v59, %v6830_v25 }
 0xf13   :  { %v4423_v50 = vadd.f32 %v4420_v60, %v6832_v40  ;;  %v4459_v40 = vrot.slane %v4454_v7, %v5673_v14 }
 0xf14   :  { %v4424_v5 = vmax.f32 %v4422_v12, 0.0 }
 0xf15   :  { %v4425_v35 = vmax.f32 %v4423_v50, 0.0  ;;  %v4466_v37 = vmul.f32 %v4459_v40, %v3292_v30 }
 0xf16   :  { %v4428_v8 = vand.u32 2147483647, %v4424_v5  ;;  %vm4426_vm2 = vcmp.eq.f32.partialorder %v4424_v5, %v4424_v5 }
 0xf17   :  { %v4429_v18 = vand.u32 2147483647, %v4425_v35  ;;  %vm4427_vm8 = vcmp.eq.f32.partialorder %v4425_v35, %v4425_v35 }
 0xf18   :  { %vm4430_vm6 = vcmp.lt.f32.partialorder %v4428_v8, inf }
 0xf19   :  { %vm4432_vm7 = vmand %vm4426_vm2, %vm4430_vm6  ;;  %vm4431_vm9 = vcmp.lt.f32.partialorder %v4429_v18, inf }
 0xf1a   :  { %v4434_v25 = vsel %vm4432_vm7, %v4424_v5, 0.0  ;;  %vm4433_vm10 = vmand %vm4427_vm8, %vm4431_vm9 }
 0xf1b   :  { %v4448_v41 = vmul.f32 %v4441_v1, %v4434_v25  ;;  %v4435_v46 = vsel %vm4433_vm10, %v4425_v35, 0.0 }
 0xf1c   :  { %v4449_v61 = vmul.f32 %v4445_v31, %v4435_v46 }
 0xf1d   :  { %v4450_v4 = vsub.f32 1.0, %v4448_v41 }
 0xf1e   :  { %v4451_v36 = vsub.f32 1.0, %v4449_v61 }
 0xf1f   :  { %v4452_v43 = vmul.f32 %v4450_v4, %v4450_v4 }
 0xf20   :  { %v4453_v33 = vmul.f32 %v4451_v36, %v4451_v36 }
 0xf21   :  { %v4468_v16 = vadd.f32 %v4466_v37, %v4452_v43 }
 0xf22   :  { %v4469_v42 = vadd.f32 %v4467_v3, %v4453_v33 }
 0xf23   :  { %5227 = vrsqrt.f32 %v4468_v16  ;;  %vm4472_vm0 = vcmp.eq.f32.partialorder %v4468_v16, inf  ;;  %v4475_v44 = vand.u32 2147483648, %v4468_v16  ;;  %vm4474_vm11 = vcmp.eq.f32.partialorder %v4468_v16, 0.0 }
 0xf24   :  { %5229 = vrsqrt.f32 %v4469_v42  ;;  %vm4479_vm13 = vcmp.eq.f32.partialorder %v4469_v42, inf  ;;  %v4482_v15 = vand.u32 2147483648, %v4469_v42  ;;  %vm4481_vm12 = vcmp.eq.f32.partialorder %v4469_v42, 0.0 }
 0xf2d   :  { %v5228_v14 = vpop.eup %5227 }
 0xf2e   :  { %v5230_v11 = vpop.eup %5229  ;;  %v4471_v2 = vmul.f32 %v5228_v14, %v4468_v16 }
 0xf2f   :  { %v4478_v62 = vmul.f32 %v5230_v11, %v4469_v42 }
 0xf30   :  { %v4473_v52 = vsel %vm4472_vm0, %v4468_v16, %v4471_v2 }
 0xf31   :  { %v4476_v39 = vsel %vm4474_vm11, %v4475_v44, %v4473_v52  ;;  %v4480_v28 = vsel %vm4479_vm13, %v4469_v42, %v4478_v62 }
 0xf32   :  { %v4484_v24 = vadd.f32 %v4476_v39, %v4450_v4  ;;  %v4483_v53 = vsel %vm4481_vm12, %v4482_v15, %v4480_v28 }
 0xf33   :  { %v4485_v57 = vadd.f32 %v4483_v53, %v4451_v36 }
 0xf34   :  { %5231 = vrcp.f32 %v4484_v24 }
 0xf35   :  { %5233 = vrcp.f32 %v4485_v57 }
 0xf3e   :  { %v5232_v29 = vpop.eup %5231 }
 0xf3f   :  { %v5234_v47 = vpop.eup %5233  ;;  %v4490_v63 = vmul.f32 %v5232_v29, %v4486_v0 }
 0xf40   :  { %v4491_v48 = vmul.f32 %v5234_v47, %v4487_v13 }
 0xf41   :  { %v4494_v6 = vand.u32 2147483647, %v4490_v63  ;;  %vm4492_vm3 = vcmp.eq.f32.partialorder %v4490_v63, %v4490_v63 }
 0xf42   :  { %v4495_v45 = vand.u32 2147483647, %v4491_v48  ;;  %vm4493_vm5 = vcmp.eq.f32.partialorder %v4491_v48, %v4491_v48 }
 0xf43   :  { %vm4496_vm4 = vcmp.lt.f32.partialorder %v4494_v6, inf }
 0xf44   :  { %vm4497_vm1 = vcmp.lt.f32.partialorder %v4495_v45, inf  ;;  %vm4498_vm15 = vmand %vm4492_vm3, %vm4496_vm4 }
 0xf45   :  { %vm4499_vm14 = vmand %vm4493_vm5, %vm4497_vm1  ;;  %v4500_v56 = vsel %vm4498_vm15, %v4490_v63, 0.0 }
 0xf46   :  { %v4501_v23 = vsel %vm4499_vm14, %v4491_v48, 0.0 }
 0xf47   :  { %v4504_v58 = vcombine.low %v4500_v56, %v4501_v23 }
 0xf49   :  { %4561 = vst.sshfl [vmem:[#allocation18] sm:$0x33 pattern:$0x76325410] %v4504_v58 }
 0xf4a   :  { %5422 = shalt.err (!%p5419_p12)
}
 0xf4b   :  { %s5423_s2 = scalar_lea.hbm %s7433_s12, 64 }
 0xf4c   :  { %p5424_p13 = scmp.ne.s32.totalorder %s7433_s12, %s5423_s2  ;;  %p5427_p0 = scmp.lt.u32.totalorder %s5423_s2, %s7433_s12 }
 0xf4e   :  { %p5429_p1 = pnand %p5427_p0, %p5424_p13 }
 0xf50   :  { %5432 = shalt.err (!%p5429_p1)
}
 0xf51   :  { %4523 = dma.vmem_to_hbm [thread:$0]  %s4521_s8, 64, %s7433_s12, [#allocation6]  }
 0xf52   :  { %5443 = dma.done.wait [#allocation6], 64  }
 0xf53   :  { %5444 = vsyncadd [#allocation6], 4294967232 }
 0xf54   :  { %4527 = vsyncpa [#allocation5], 1 }
 0xf55   :  { %4528 = vsyncpa [#allocation8], 1 }
 0xf56   :  { %4529 = vsyncpa [#allocation11], 1 }
 0xf57   :  { %4530 = vsyncpa [#allocation14], 1 }
 0xf58   :  { %4531 = vsyncpa [#allocation17], 1 }
 0xf59   :  { %4532 = vsyncpa [#allocation6], 1 }

</bundles_post_ra>
